<compile_context>
chip_gen: v7x
topology: tpu7x:2x2x1
jax: 0.10.0
libtpu: 0.0.40
codegen_flags: <defaults>
</compile_context>

<pallas_src>
import functools
import math

import jax
import jax.numpy as jnp
from jax.experimental import pallas as pl
from jax.experimental.pallas import tpu as pltpu

IN_FEATURES = 28 * 28   # 784
HIDDEN = 512
OUT = 10
DROP_P = 0.2
_DROP_THRESH = int(DROP_P * (1 << 32))   # keep iff uniform u32 bits >= p * 2^32
_DROP_SCALE = 1.0 / (1.0 - DROP_P)


def _round_up(n, m):
    return ((n + m - 1) // m) * m


def _simple_dnn_kernel(*refs, mode):
    """One batch tile of the full forward pass.

    mode == "prng": refs = (seed_ref[SMEM (1,) i32], x, w1, b1, w2, b2, o)
    mode == "bits": refs = (x, w1, b1, w2, b2, bits, o)
    mode == "none": refs = (x, w1, b1, w2, b2, o)

    x_ref  : VMEM (TB, 784)  f32  (cast to bf16 in-kernel)
    w1_ref : VMEM (784, 512) bf16 (VMEM-resident across grid steps)
    b1_ref : VMEM (1, 512)   f32
    w2_ref : VMEM (512, 10)  bf16
    b2_ref : VMEM (1, 10)    f32
    o_ref  : VMEM (TB, 10)   f32
    """
    if mode == "prng":
        seed_ref, x_ref, w1_ref, b1_ref, w2_ref, b2_ref, o_ref = refs
    elif mode == "bits":
        x_ref, w1_ref, b1_ref, w2_ref, b2_ref, bits_ref, o_ref = refs
    else:
        x_ref, w1_ref, b1_ref, w2_ref, b2_ref, o_ref = refs

    # fc1 (bf16 MXU, f32 accumulation) + bias + ReLU. Cast f32 -> bf16 here so the HBM
    # stream for x needs no separate wrapper-side cast pass.
    xb = x_ref[...].astype(jnp.bfloat16)
    h = jnp.dot(xb, w1_ref[...], preferred_element_type=jnp.float32)
    h = jnp.maximum(h + b1_ref[...], 0.0)

    if mode == "prng":
        # In-kernel dropout mask: per-tile seed so every batch tile is independent.
        pltpu.prng_seed(seed_ref[0] + pl.program_id(0))
        raw = pltpu.prng_random_bits(h.shape)
        bits = raw if raw.dtype == jnp.uint32 else pltpu.bitcast(raw, jnp.uint32)
        keep = bits >= jnp.uint32(_DROP_THRESH)
        h = jnp.where(keep, h * jnp.float32(_DROP_SCALE), 0.0)
    elif mode == "bits":
        keep = bits_ref[...] >= jnp.uint32(_DROP_THRESH)
        h = jnp.where(keep, h * jnp.float32(_DROP_SCALE), 0.0)

    # fc2 (bf16 MXU, f32 accumulation) + bias
    y = jnp.dot(h.astype(jnp.bfloat16), w2_ref[...], preferred_element_type=jnp.float32)
    o_ref[...] = (y + b2_ref[...]).astype(o_ref.dtype)


def _resident_spec(shape, buffered):
    """Constant-index_map BlockSpec; single-buffered (Buffered(1)) when requested/available."""
    n = len(shape)
    index_map = lambda i: (0,) * n
    if buffered and hasattr(pl, "Buffered"):
        try:
            return pl.BlockSpec(shape, index_map, pipeline_mode=pl.Buffered(1))
        except TypeError:
            pass
    return pl.BlockSpec(shape, index_map)


def _build_call(TB, n_tiles, Bp, mode, resident_buffered):
    in_specs = []
    if mode == "prng":
        # Scalar dropout seed lives in SMEM.
        in_specs.append(pl.BlockSpec(memory_space=pltpu.MemorySpace.SMEM))
    in_specs += [
        pl.BlockSpec((TB, IN_FEATURES), lambda i: (i, 0)),          # x tile (f32)
        _resident_spec((IN_FEATURES, HIDDEN), resident_buffered),   # w1 (resident)
        _resident_spec((1, HIDDEN), resident_buffered),             # b1 (resident)
        _resident_spec((HIDDEN, OUT), resident_buffered),           # w2 (resident)
        _resident_spec((1, OUT), resident_buffered),                # b2 (resident)
    ]
    if mode == "bits":
        in_specs.append(pl.BlockSpec((TB, HIDDEN), lambda i: (i, 0)))  # streamed mask bits

    return pl.pallas_call(
        functools.partial(_simple_dnn_kernel, mode=mode),
        out_shape=jax.ShapeDtypeStruct((Bp, OUT), jnp.float32),
        grid=(n_tiles,),
        in_specs=in_specs,
        out_specs=pl.BlockSpec((TB, OUT), lambda i: (i, 0)),
        compiler_params=pltpu.CompilerParams(dimension_semantics=("parallel",)),
    )


def simple_dnn_forward(x, params, *, key=None, dropout=True, block_b=512):
    """x: (B, 1, 28, 28) or (B, 784). Returns logits (B, 10) in float32."""
    w1, b1, w2, b2 = params
    B = x.shape[0]
    xf = x.reshape(B, -1).astype(jnp.float32)   # stays f32; bf16 cast happens in-kernel
    assert xf.shape[1] == IN_FEATURES

    # Batch tile: multiple of 16 (bf16 sublane packing), capped at ceil(B/2) so batches
    # larger than one tile always produce >= 2 grid steps (megacore split on v7x).
    block_b = max(16, (block_b // 16) * 16)
    TB = max(16, min(block_b, _round_up(-(-B // 2), 16)))
    Bp = _round_up(B, TB)
    if Bp != B:
        xf = jnp.pad(xf, ((0, Bp - B), (0, 0)))
    n_tiles = Bp // TB

    w1b = w1.astype(jnp.bfloat16)
    w2b = w2.astype(jnp.bfloat16)
    b1f = b1.reshape(1, HIDDEN).astype(jnp.float32)
    b2f = b2.reshape(1, OUT).astype(jnp.float32)
    base_args = (xf, w1b, b1f, w2b, b2f)

    if not dropout:
        attempts = [("none", True), ("none", False)]
        seed = None
    else:
        if key is None:
            key = jax.random.PRNGKey(0)
        seed = jax.random.randint(key, (1,), 0, jnp.iinfo(jnp.int32).max, dtype=jnp.int32)
        # Preferred: in-kernel PRNG (no HBM mask stream). Fallback: streamed u32 bits
        # (the previously validated path) if the PRNG/Buffered path fails to lower.
        attempts = [("prng", True), ("prng", False), ("bits", False)]

    bits = None
    last_err = None
    for mode, buffered in attempts:
        try:
            if mode == "prng":
                args = (seed,) + base_args
            elif mode == "bits":
                if bits is None:
                    bits = jax.random.bits(key, (Bp, HIDDEN), dtype=jnp.uint32)
                args = base_args + (bits,)
            else:
                args = base_args
            out = _build_call(TB, n_tiles, Bp, mode, buffered)(*args)
            return out[:B]
        except Exception as e:  # fall back to the next (more conservative) variant
            last_err = e
    raise last_err


def init_params(key):
    """Deterministic init mimicking nn.Linear's default U(-1/sqrt(fan_in), 1/sqrt(fan_in))."""
    k1, k2, k3, k4 = jax.random.split(key, 4)
    bound1 = 1.0 / math.sqrt(IN_FEATURES)
    bound2 = 1.0 / math.sqrt(HIDDEN)
    w1 = jax.random.uniform(k1, (IN_FEATURES, HIDDEN), jnp.float32, -bound1, bound1)
    b1 = jax.random.uniform(k2, (1, HIDDEN), jnp.float32, -bound1, bound1)
    w2 = jax.random.uniform(k3, (HIDDEN, OUT), jnp.float32, -bound2, bound2)
    b2 = jax.random.uniform(k4, (1, OUT), jnp.float32, -bound2, bound2)
    return w1, b1, w2, b2


def _reference_no_dropout_bf16(x, params):
    """Plain-JAX reference matching the kernel's bf16-matmul / f32-accumulate numerics."""
    w1, b1, w2, b2 = params
    xf = x.reshape(x.shape[0], -1).astype(jnp.bfloat16)
    h = jnp.dot(xf, w1.astype(jnp.bfloat16), preferred_element_type=jnp.float32)
    h = jnp.maximum(h + b1.astype(jnp.float32), 0.0)
    y = jnp.dot(h.astype(jnp.bfloat16), w2.astype(jnp.bfloat16),
                preferred_element_type=jnp.float32)
    return y + b2.astype(jnp.float32)


if __name__ == "__main__":
    root = jax.random.PRNGKey(0)
    k_params, k_x, k_drop = jax.random.split(root, 3)

    params = init_params(k_params)
    # Small MNIST-like batch: (B, C, H, W) = (8, 1, 28, 28), NCHW like PyTorch.
    x = jax.random.normal(k_x, (8, 1, 28, 28), dtype=jnp.float32)

    # Forward with dropout enabled (matches SimpleDNN.forward default).
    out_train = simple_dnn_forward(x, params, key=k_drop, dropout=True)
    out_train = jax.block_until_ready(out_train)
    assert out_train.shape == (8, 10)
    assert bool(jnp.all(jnp.isfinite(out_train)))

    # Forward with dropout disabled -> deterministic; check against plain-JAX reference.
    # (bf16 matmuls with f32 accumulation deviate slightly from PyTorch's f32 path; 2e-2 tol.)
    out_eval = simple_dnn_forward(x, params, dropout=False)
    out_eval = jax.block_until_ready(out_eval)
    ref = _reference_no_dropout_bf16(x, params)
    assert jnp.allclose(out_eval, ref, atol=2e-2, rtol=2e-2), "mismatch vs reference"

    print("KERNEL_OK")
</pallas_src>

<mosaic_0001>
module attributes {stable_mosaic.version = 11 : i64} {
  func.func @_simple_dnn_kernel(%arg0: i32, %arg1: memref<1xi32, #tpu.memory_space<smem>>, %arg2: memref<16x784xf32, #tpu.memory_space<vmem>>, %arg3: memref<784x512xbf16, #tpu.memory_space<vmem>>, %arg4: memref<1x512xf32, #tpu.memory_space<vmem>>, %arg5: memref<512x10xbf16, #tpu.memory_space<vmem>>, %arg6: memref<1x10xf32, #tpu.memory_space<vmem>>, %arg7: memref<16x10xf32, #tpu.memory_space<vmem>>) attributes {dimension_semantics = [#tpu.dimension_semantics<parallel>], iteration_bounds = array<i64: 1>, scalar_prefetch = 0 : i64, scratch_operands = 0 : i64, tpu.core_type = #tpu.core_type<tc>, window_params = [{transform_indices = @transform_0, window_bounds = array<i64: 1>}, {transform_indices = @transform_1, window_bounds = array<i64: 16, 784>}, {pipeline_mode = #tpu.pipeline_mode<synchronous>, transform_indices = @transform_2, window_bounds = array<i64: 784, 512>}, {pipeline_mode = #tpu.pipeline_mode<synchronous>, transform_indices = @transform_3, window_bounds = array<i64: 1, 512>}, {pipeline_mode = #tpu.pipeline_mode<synchronous>, transform_indices = @transform_4, window_bounds = array<i64: 512, 10>}, {pipeline_mode = #tpu.pipeline_mode<synchronous>, transform_indices = @transform_5, window_bounds = array<i64: 1, 10>}, {transform_indices = @transform_6, window_bounds = array<i64: 16, 10>}]} {
    %c0 = arith.constant 0 : index
    %c0_0 = arith.constant 0 : index
    %0 = vector.load %arg2[%c0, %c0_0] : memref<16x784xf32, #tpu.memory_space<vmem>>, vector<16x784xf32>
    %1 = arith.truncf %0 : vector<16x784xf32> to vector<16x784xbf16>
    %c0_1 = arith.constant 0 : index
    %c0_2 = arith.constant 0 : index
    %2 = vector.load %arg3[%c0_1, %c0_2] : memref<784x512xbf16, #tpu.memory_space<vmem>>, vector<784x512xbf16>
    %cst = arith.constant dense<0.000000e+00> : vector<16x512xf32>
    %3 = tpu.matmul %1, %2, %cst {dimension_numbers = #tpu.dot_dimension_numbers<[1], [0], [0], [1], [0, 0, 1, 1], [], []>} : vector<16x784xbf16>, vector<784x512xbf16>, vector<16x512xf32> -> vector<16x512xf32>
    %c0_3 = arith.constant 0 : index
    %c0_4 = arith.constant 0 : index
    %4 = vector.load %arg4[%c0_3, %c0_4] : memref<1x512xf32, #tpu.memory_space<vmem>>, vector<1x512xf32>
    %5 = vector.broadcast %4 : vector<1x512xf32> to vector<16x512xf32>
    %6 = arith.addf %3, %5 : vector<16x512xf32>
    %cst_5 = arith.constant 0.000000e+00 : f32
    %7 = vector.broadcast %cst_5 : f32 to vector<16x512xf32>
    %8 = arith.maximumf %6, %7 : vector<16x512xf32>
    %c0_6 = arith.constant 0 : index
    %9 = memref.load %arg1[%c0_6] : memref<1xi32, #tpu.memory_space<smem>>
    %10 = arith.addi %9, %arg0 : i32
    "tpu.prng_set_seed_32"(%10) : (i32) -> ()
    %11 = "tpu.prng_random_bits"() : () -> vector<16x512xi32>
    %12 = tpu.bitcast %11 : vector<16x512xi32> -> vector<16x512xi32>
    %c858993459_i32 = arith.constant 858993459 : i32
    %13 = vector.broadcast %c858993459_i32 : i32 to vector<16x512xi32>
    %14 = arith.cmpi uge, %12, %13 : vector<16x512xi32>
    %cst_7 = arith.constant 1.250000e+00 : f32
    %15 = vector.broadcast %cst_7 : f32 to vector<16x512xf32>
    %16 = arith.mulf %8, %15 : vector<16x512xf32>
    %cst_8 = arith.constant 0.000000e+00 : f32
    %17 = vector.broadcast %cst_8 : f32 to vector<16x512xf32>
    %18 = arith.select %14, %16, %17 : vector<16x512xi1>, vector<16x512xf32>
    %19 = arith.truncf %18 : vector<16x512xf32> to vector<16x512xbf16>
    %c0_9 = arith.constant 0 : index
    %c0_10 = arith.constant 0 : index
    %20 = vector.load %arg5[%c0_9, %c0_10] : memref<512x10xbf16, #tpu.memory_space<vmem>>, vector<512x10xbf16>
    %cst_11 = arith.constant dense<0.000000e+00> : vector<16x10xf32>
    %21 = tpu.matmul %19, %20, %cst_11 {dimension_numbers = #tpu.dot_dimension_numbers<[1], [0], [0], [1], [0, 0, 1, 1], [], []>} : vector<16x512xbf16>, vector<512x10xbf16>, vector<16x10xf32> -> vector<16x10xf32>
    %c0_12 = arith.constant 0 : index
    %c0_13 = arith.constant 0 : index
    %22 = vector.load %arg6[%c0_12, %c0_13] : memref<1x10xf32, #tpu.memory_space<vmem>>, vector<1x10xf32>
    %23 = vector.broadcast %22 : vector<1x10xf32> to vector<16x10xf32>
    %24 = arith.addf %21, %23 : vector<16x10xf32>
    %c0_14 = arith.constant 0 : index
    %c0_15 = arith.constant 0 : index
    %25 = vector.load %arg7[%c0_14, %c0_15] : memref<16x10xf32, #tpu.memory_space<vmem>>, vector<16x10xf32>
    tpu.vector_store %arg7[%c0_14, %c0_15], %24 {strides = array<i32>} : memref<16x10xf32, #tpu.memory_space<vmem>>, vector<16x10xf32>,
    return
  }
  func.func @transform_0(%arg0: i32) -> i32 {
    %c0_i32 = arith.constant 0 : i32
    %c0_i32_0 = arith.constant 0 : i32
    return %c0_i32 : i32
  }
  func.func @transform_1(%arg0: i32) -> (i32, i32) {
    %c0_i32 = arith.constant 0 : i32
    %c0_i32_0 = arith.constant 0 : i32
    return %arg0, %c0_i32 : i32, i32
  }
  func.func @transform_2(%arg0: i32) -> (i32, i32) {
    %c0_i32 = arith.constant 0 : i32
    %c0_i32_0 = arith.constant 0 : i32
    %c0_i32_1 = arith.constant 0 : i32
    return %c0_i32, %c0_i32_0 : i32, i32
  }
  func.func @transform_3(%arg0: i32) -> (i32, i32) {
    %c0_i32 = arith.constant 0 : i32
    %c0_i32_0 = arith.constant 0 : i32
    %c0_i32_1 = arith.constant 0 : i32
    return %c0_i32, %c0_i32_0 : i32, i32
  }
  func.func @transform_4(%arg0: i32) -> (i32, i32) {
    %c0_i32 = arith.constant 0 : i32
    %c0_i32_0 = arith.constant 0 : i32
    %c0_i32_1 = arith.constant 0 : i32
    return %c0_i32, %c0_i32_0 : i32, i32
  }
  func.func @transform_5(%arg0: i32) -> (i32, i32) {
    %c0_i32 = arith.constant 0 : i32
    %c0_i32_0 = arith.constant 0 : i32
    %c0_i32_1 = arith.constant 0 : i32
    return %c0_i32, %c0_i32_0 : i32, i32
  }
  func.func @transform_6(%arg0: i32) -> (i32, i32) {
    %c0_i32 = arith.constant 0 : i32
    %c0_i32_0 = arith.constant 0 : i32
    return %arg0, %c0_i32 : i32, i32
  }
}

module attributes {stable_mosaic.version = 11 : i64} {
  func.func @_simple_dnn_kernel(%arg0: i32, %arg1: memref<1xi32, #tpu.memory_space<smem>>, %arg2: memref<16x784xf32, #tpu.memory_space<vmem>>, %arg3: memref<784x512xbf16, #tpu.memory_space<vmem>>, %arg4: memref<1x512xf32, #tpu.memory_space<vmem>>, %arg5: memref<512x10xbf16, #tpu.memory_space<vmem>>, %arg6: memref<1x10xf32, #tpu.memory_space<vmem>>, %arg7: memref<16x10xf32, #tpu.memory_space<vmem>>) attributes {dimension_semantics = [#tpu.dimension_semantics<parallel>], iteration_bounds = array<i64: 1>, scalar_prefetch = 0 : i64, scratch_operands = 0 : i64, tpu.core_type = #tpu.core_type<tc>, window_params = [{transform_indices = @transform_0, window_bounds = array<i64: 1>}, {transform_indices = @transform_1, window_bounds = array<i64: 16, 784>}, {pipeline_mode = #tpu.pipeline_mode<synchronous>, transform_indices = @transform_2, window_bounds = array<i64: 784, 512>}, {pipeline_mode = #tpu.pipeline_mode<synchronous>, transform_indices = @transform_3, window_bounds = array<i64: 1, 512>}, {pipeline_mode = #tpu.pipeline_mode<synchronous>, transform_indices = @transform_4, window_bounds = array<i64: 512, 10>}, {pipeline_mode = #tpu.pipeline_mode<synchronous>, transform_indices = @transform_5, window_bounds = array<i64: 1, 10>}, {transform_indices = @transform_6, window_bounds = array<i64: 16, 10>}]} {
    %c0 = arith.constant 0 : index
    %c0_0 = arith.constant 0 : index
    %0 = vector.load %arg2[%c0, %c0_0] : memref<16x784xf32, #tpu.memory_space<vmem>>, vector<16x784xf32>
    %1 = arith.truncf %0 : vector<16x784xf32> to vector<16x784xbf16>
    %c0_1 = arith.constant 0 : index
    %c0_2 = arith.constant 0 : index
    %2 = vector.load %arg3[%c0_1, %c0_2] : memref<784x512xbf16, #tpu.memory_space<vmem>>, vector<784x512xbf16>
    %cst = arith.constant dense<0.000000e+00> : vector<16x512xf32>
    %3 = tpu.matmul %1, %2, %cst {dimension_numbers = #tpu.dot_dimension_numbers<[1], [0], [0], [1], [0, 0, 1, 1], [], []>} : vector<16x784xbf16>, vector<784x512xbf16>, vector<16x512xf32> -> vector<16x512xf32>
    %c0_3 = arith.constant 0 : index
    %c0_4 = arith.constant 0 : index
    %4 = vector.load %arg4[%c0_3, %c0_4] : memref<1x512xf32, #tpu.memory_space<vmem>>, vector<1x512xf32>
    %5 = vector.broadcast %4 : vector<1x512xf32> to vector<16x512xf32>
    %6 = arith.addf %3, %5 : vector<16x512xf32>
    %cst_5 = arith.constant 0.000000e+00 : f32
    %7 = vector.broadcast %cst_5 : f32 to vector<16x512xf32>
    %8 = arith.maximumf %6, %7 : vector<16x512xf32>
    %c0_6 = arith.constant 0 : index
    %9 = memref.load %arg1[%c0_6] : memref<1xi32, #tpu.memory_space<smem>>
    %10 = arith.addi %9, %arg0 : i32
    "tpu.prng_set_seed_32"(%10) : (i32) -> ()
    %11 = "tpu.prng_random_bits"() : () -> vector<16x512xi32>
    %12 = tpu.bitcast %11 : vector<16x512xi32> -> vector<16x512xi32>
    %c858993459_i32 = arith.constant 858993459 : i32
    %13 = vector.broadcast %c858993459_i32 : i32 to vector<16x512xi32>
    %14 = arith.cmpi uge, %12, %13 : vector<16x512xi32>
    %cst_7 = arith.constant 1.250000e+00 : f32
    %15 = vector.broadcast %cst_7 : f32 to vector<16x512xf32>
    %16 = arith.mulf %8, %15 : vector<16x512xf32>
    %cst_8 = arith.constant 0.000000e+00 : f32
    %17 = vector.broadcast %cst_8 : f32 to vector<16x512xf32>
    %18 = arith.select %14, %16, %17 : vector<16x512xi1>, vector<16x512xf32>
    %19 = arith.truncf %18 : vector<16x512xf32> to vector<16x512xbf16>
    %c0_9 = arith.constant 0 : index
    %c0_10 = arith.constant 0 : index
    %20 = vector.load %arg5[%c0_9, %c0_10] : memref<512x10xbf16, #tpu.memory_space<vmem>>, vector<512x10xbf16>
    %cst_11 = arith.constant dense<0.000000e+00> : vector<16x10xf32>
    %21 = tpu.matmul %19, %20, %cst_11 {dimension_numbers = #tpu.dot_dimension_numbers<[1], [0], [0], [1], [0, 0, 1, 1], [], []>} : vector<16x512xbf16>, vector<512x10xbf16>, vector<16x10xf32> -> vector<16x10xf32>
    %c0_12 = arith.constant 0 : index
    %c0_13 = arith.constant 0 : index
    %22 = vector.load %arg6[%c0_12, %c0_13] : memref<1x10xf32, #tpu.memory_space<vmem>>, vector<1x10xf32>
    %23 = vector.broadcast %22 : vector<1x10xf32> to vector<16x10xf32>
    %24 = arith.addf %21, %23 : vector<16x10xf32>
    %c0_14 = arith.constant 0 : index
    %c0_15 = arith.constant 0 : index
    %25 = vector.load %arg7[%c0_14, %c0_15] : memref<16x10xf32, #tpu.memory_space<vmem>>, vector<16x10xf32>
    tpu.vector_store %arg7[%c0_14, %c0_15], %24 {strides = array<i32>} : memref<16x10xf32, #tpu.memory_space<vmem>>, vector<16x10xf32>,
    return
  }
  func.func @transform_0(%arg0: i32) -> i32 {
    %c0_i32 = arith.constant 0 : i32
    %c0_i32_0 = arith.constant 0 : i32
    return %c0_i32 : i32
  }
  func.func @transform_1(%arg0: i32) -> (i32, i32) {
    %c0_i32 = arith.constant 0 : i32
    %c0_i32_0 = arith.constant 0 : i32
    return %arg0, %c0_i32 : i32, i32
  }
  func.func @transform_2(%arg0: i32) -> (i32, i32) {
    %c0_i32 = arith.constant 0 : i32
    %c0_i32_0 = arith.constant 0 : i32
    %c0_i32_1 = arith.constant 0 : i32
    return %c0_i32, %c0_i32_0 : i32, i32
  }
  func.func @transform_3(%arg0: i32) -> (i32, i32) {
    %c0_i32 = arith.constant 0 : i32
    %c0_i32_0 = arith.constant 0 : i32
    %c0_i32_1 = arith.constant 0 : i32
    return %c0_i32, %c0_i32_0 : i32, i32
  }
  func.func @transform_4(%arg0: i32) -> (i32, i32) {
    %c0_i32 = arith.constant 0 : i32
    %c0_i32_0 = arith.constant 0 : i32
    %c0_i32_1 = arith.constant 0 : i32
    return %c0_i32, %c0_i32_0 : i32, i32
  }
  func.func @transform_5(%arg0: i32) -> (i32, i32) {
    %c0_i32 = arith.constant 0 : i32
    %c0_i32_0 = arith.constant 0 : i32
    %c0_i32_1 = arith.constant 0 : i32
    return %c0_i32, %c0_i32_0 : i32, i32
  }
  func.func @transform_6(%arg0: i32) -> (i32, i32) {
    %c0_i32 = arith.constant 0 : i32
    %c0_i32_0 = arith.constant 0 : i32
    return %arg0, %c0_i32 : i32, i32
  }
}

module attributes {stable_mosaic.version = 11 : i64} {
  func.func @_simple_dnn_kernel(%arg0: i32, %arg1: memref<16x784xf32, #tpu.memory_space<vmem>>, %arg2: memref<784x512xbf16, #tpu.memory_space<vmem>>, %arg3: memref<1x512xf32, #tpu.memory_space<vmem>>, %arg4: memref<512x10xbf16, #tpu.memory_space<vmem>>, %arg5: memref<1x10xf32, #tpu.memory_space<vmem>>, %arg6: memref<16x512xi32, #tpu.memory_space<vmem>>, %arg7: memref<16x10xf32, #tpu.memory_space<vmem>>) attributes {dimension_semantics = [#tpu.dimension_semantics<parallel>], iteration_bounds = array<i64: 1>, scalar_prefetch = 0 : i64, scratch_operands = 0 : i64, tpu.core_type = #tpu.core_type<tc>, window_params = [{transform_indices = @transform_0, window_bounds = array<i64: 16, 784>}, {pipeline_mode = #tpu.pipeline_mode<synchronous>, transform_indices = @transform_1, window_bounds = array<i64: 784, 512>}, {pipeline_mode = #tpu.pipeline_mode<synchronous>, transform_indices = @transform_2, window_bounds = array<i64: 1, 512>}, {pipeline_mode = #tpu.pipeline_mode<synchronous>, transform_indices = @transform_3, window_bounds = array<i64: 512, 10>}, {pipeline_mode = #tpu.pipeline_mode<synchronous>, transform_indices = @transform_4, window_bounds = array<i64: 1, 10>}, {transform_indices = @transform_5, window_bounds = array<i64: 16, 512>}, {transform_indices = @transform_6, window_bounds = array<i64: 16, 10>}]} {
    %c0 = arith.constant 0 : index
    %c0_0 = arith.constant 0 : index
    %0 = vector.load %arg1[%c0, %c0_0] : memref<16x784xf32, #tpu.memory_space<vmem>>, vector<16x784xf32>
    %1 = arith.truncf %0 : vector<16x784xf32> to vector<16x784xbf16>
    %c0_1 = arith.constant 0 : index
    %c0_2 = arith.constant 0 : index
    %2 = vector.load %arg2[%c0_1, %c0_2] : memref<784x512xbf16, #tpu.memory_space<vmem>>, vector<784x512xbf16>
    %cst = arith.constant dense<0.000000e+00> : vector<16x512xf32>
    %3 = tpu.matmul %1, %2, %cst {dimension_numbers = #tpu.dot_dimension_numbers<[1], [0], [0], [1], [0, 0, 1, 1], [], []>} : vector<16x784xbf16>, vector<784x512xbf16>, vector<16x512xf32> -> vector<16x512xf32>
    %c0_3 = arith.constant 0 : index
    %c0_4 = arith.constant 0 : index
    %4 = vector.load %arg3[%c0_3, %c0_4] : memref<1x512xf32, #tpu.memory_space<vmem>>, vector<1x512xf32>
    %5 = vector.broadcast %4 : vector<1x512xf32> to vector<16x512xf32>
    %6 = arith.addf %3, %5 : vector<16x512xf32>
    %cst_5 = arith.constant 0.000000e+00 : f32
    %7 = vector.broadcast %cst_5 : f32 to vector<16x512xf32>
    %8 = arith.maximumf %6, %7 : vector<16x512xf32>
    %c0_6 = arith.constant 0 : index
    %c0_7 = arith.constant 0 : index
    %9 = vector.load %arg6[%c0_6, %c0_7] : memref<16x512xi32, #tpu.memory_space<vmem>>, vector<16x512xi32>
    %c858993459_i32 = arith.constant 858993459 : i32
    %10 = vector.broadcast %c858993459_i32 : i32 to vector<16x512xi32>
    %11 = arith.cmpi uge, %9, %10 : vector<16x512xi32>
    %cst_8 = arith.constant 1.250000e+00 : f32
    %12 = vector.broadcast %cst_8 : f32 to vector<16x512xf32>
    %13 = arith.mulf %8, %12 : vector<16x512xf32>
    %cst_9 = arith.constant 0.000000e+00 : f32
    %14 = vector.broadcast %cst_9 : f32 to vector<16x512xf32>
    %15 = arith.select %11, %13, %14 : vector<16x512xi1>, vector<16x512xf32>
    %16 = arith.truncf %15 : vector<16x512xf32> to vector<16x512xbf16>
    %c0_10 = arith.constant 0 : index
    %c0_11 = arith.constant 0 : index
    %17 = vector.load %arg4[%c0_10, %c0_11] : memref<512x10xbf16, #tpu.memory_space<vmem>>, vector<512x10xbf16>
    %cst_12 = arith.constant dense<0.000000e+00> : vector<16x10xf32>
    %18 = tpu.matmul %16, %17, %cst_12 {dimension_numbers = #tpu.dot_dimension_numbers<[1], [0], [0], [1], [0, 0, 1, 1], [], []>} : vector<16x512xbf16>, vector<512x10xbf16>, vector<16x10xf32> -> vector<16x10xf32>
    %c0_13 = arith.constant 0 : index
    %c0_14 = arith.constant 0 : index
    %19 = vector.load %arg5[%c0_13, %c0_14] : memref<1x10xf32, #tpu.memory_space<vmem>>, vector<1x10xf32>
    %20 = vector.broadcast %19 : vector<1x10xf32> to vector<16x10xf32>
    %21 = arith.addf %18, %20 : vector<16x10xf32>
    %c0_15 = arith.constant 0 : index
    %c0_16 = arith.constant 0 : index
    %22 = vector.load %arg7[%c0_15, %c0_16] : memref<16x10xf32, #tpu.memory_space<vmem>>, vector<16x10xf32>
    tpu.vector_store %arg7[%c0_15, %c0_16], %21 {strides = array<i32>} : memref<16x10xf32, #tpu.memory_space<vmem>>, vector<16x10xf32>,
    return
  }
  func.func @transform_0(%arg0: i32) -> (i32, i32) {
    %c0_i32 = arith.constant 0 : i32
    %c0_i32_0 = arith.constant 0 : i32
    return %arg0, %c0_i32 : i32, i32
  }
  func.func @transform_1(%arg0: i32) -> (i32, i32) {
    %c0_i32 = arith.constant 0 : i32
    %c0_i32_0 = arith.constant 0 : i32
    %c0_i32_1 = arith.constant 0 : i32
    return %c0_i32, %c0_i32_0 : i32, i32
  }
  func.func @transform_2(%arg0: i32) -> (i32, i32) {
    %c0_i32 = arith.constant 0 : i32
    %c0_i32_0 = arith.constant 0 : i32
    %c0_i32_1 = arith.constant 0 : i32
    return %c0_i32, %c0_i32_0 : i32, i32
  }
  func.func @transform_3(%arg0: i32) -> (i32, i32) {
    %c0_i32 = arith.constant 0 : i32
    %c0_i32_0 = arith.constant 0 : i32
    %c0_i32_1 = arith.constant 0 : i32
    return %c0_i32, %c0_i32_0 : i32, i32
  }
  func.func @transform_4(%arg0: i32) -> (i32, i32) {
    %c0_i32 = arith.constant 0 : i32
    %c0_i32_0 = arith.constant 0 : i32
    %c0_i32_1 = arith.constant 0 : i32
    return %c0_i32, %c0_i32_0 : i32, i32
  }
  func.func @transform_5(%arg0: i32) -> (i32, i32) {
    %c0_i32 = arith.constant 0 : i32
    %c0_i32_0 = arith.constant 0 : i32
    return %arg0, %c0_i32 : i32, i32
  }
  func.func @transform_6(%arg0: i32) -> (i32, i32) {
    %c0_i32 = arith.constant 0 : i32
    %c0_i32_0 = arith.constant 0 : i32
    return %arg0, %c0_i32 : i32, i32
  }
}

</mosaic_0001>

<bundles_post_ra>
// kernel: tpu_custom_call.1
= control target key start
LH: loop header
LB: loop body
LE: loop exit
PB: predicated region body
PF: predicated region fallthrough
CT: control target
= control target key end

     0   :  { %12 = vsyncpa [#allocation4], 0  ;;  %s3081_s0 = inlined_call_operand.<no memory space> [shape: s32[1], index: 0, kind: input, shape index: {}]   ;;  %s3082_s1 = inlined_call_operand.vmem [shape: f32[16,784], index: 1, kind: input, shape index: {}]   ;;  %s3083_s2 = inlined_call_operand.hbm [shape: bf16[784,512], index: 2, kind: input, shape index: {}]   ;;  %s3084_s3 = inlined_call_operand.vmem [shape: f32[1,512], index: 3, kind: input, shape index: {}]   ;;  %s3085_s4 = inlined_call_operand.vmem [shape: bf16[512,10], index: 4, kind: input, shape index: {}]   ;;  %s3086_s5 = inlined_call_operand.vmem [shape: f32[1,10], index: 5, kind: input, shape index: {}]   ;;  %s3087_s6 = inlined_call_operand.hbm [shape: f32[16,10], index: 6, kind: output, shape index: {}]  }
   0x1   :  { %13 = vsyncpa [#allocation5], 0  ;;  %s2840_s21 = smov [#allocation3]   ;;  %s2792_s25 = scalar_lea.hbm %s3083_s2, 25088 }
   0x2   :  { %s23_s22 = sshll.u32 %s2840_s21, 4  ;;  %p2793_p0 = scmp.ne.s32.totalorder %s3083_s2, %s2792_s25  ;;  %s24_s22 = int_to_ptr.vmem [resolvable:$true] %s23_s22 }
   0x3   :  { %p2796_p1 = scmp.lt.u32.totalorder %s2792_s25, %s3083_s2 }
   0x5   :  { %p2798_p2 = pnand %p2796_p1, %p2793_p0 }
   0x7   :  { %2801 = shalt.err (!%p2798_p2)
}
   0x8   :  { %s2802_s30 = scalar_lea.vmem %s24_s22, 25088  ;;  %p2807_p4 = scmp.lt.s32.totalorder %s24_s22, %s24_s22 }
   0x9   :  { %p2803_p3 = scmp.ne.s32.totalorder %s24_s22, %s2802_s30  ;;  %p2808_p5 = scmp.lt.s32.totalorder %s2802_s30, %s2802_s30 }
   0xb   :  { %p2809_p6 = por %p2808_p5, %p2807_p4 }
   0xd   :  { %p2810_p7 = pnand %p2809_p6, %p2803_p3 }
   0xf   :  { %2813 = shalt.err (!%p2810_p7)
}
  0x10   :  { %s2841_s7 = smov 256   ;;  %s2842_s8 = smov 16  }
  0x11   :  { %29 = dma.hbm_to_vmem [thread:$0]  %s3083_s2, 25088, %s24_s22, [#allocation4], %s2841_s7, %s2841_s7, %s2842_s8  }
  0x12   :  { %2836 = dma.done.wait [#allocation4], 25088  }
  0x13   :  { %2837 = vsyncadd [#allocation4], 4294942208  ;;  %v2466_v0 = vld [vmem:[#allocation3 + $0x4] ss:$16 sps:$4 sm:$0xff]   ;;  %v2468_v1 = vld [vmem:[#allocation3 + $0xc] ss:$16 sps:$4 sm:$0xff]  }
  0x14   :  { %1263 = vmatprep.subr.bf16.mxu0 %v2466_v0  ;;  %v2470_v2 = vld [vmem:[#allocation3] ss:$16 sps:$4 sm:$0xff]   ;;  %v2471_v3 = vld [vmem:[#allocation3 + $0x8] ss:$16 sps:$4 sm:$0xff]   ;;  %1435 = vmatprep.subr.bf16.mxu1 %v2468_v1  ;;  %v2472_v4 = vld [vmem:[#allocation3 + $0x24] ss:$16 sps:$4 sm:$0xff]  }
  0x15   :  { %1264 = vmatpush1.bf16.msra.mxu0 %v2470_v2  ;;  %1436 = vmatpush1.bf16.msra.mxu1 %v2471_v3  ;;  %v2474_v5 = vld [vmem:[#allocation3 + $0x2c] ss:$16 sps:$4 sm:$0xff]   ;;  %v2476_v6 = vld [vmem:[#allocation3 + $0x20] ss:$16 sps:$4 sm:$0xff]   ;;  %v2477_v7 = vld [vmem:[#allocation3 + $0x28] ss:$16 sps:$4 sm:$0xff]  }
  0x16   :  { %1265 = vmatprep.subr.bf16.mxu0 %v2472_v4  ;;  %1437 = vmatprep.subr.bf16.mxu1 %v2474_v5  ;;  %v2478_v8 = vld [vmem:[#allocation3 + $0x44] ss:$16 sps:$4 sm:$0xff]   ;;  %v2480_v9 = vld [vmem:[#allocation3 + $0x4c] ss:$16 sps:$4 sm:$0xff]   ;;  %v2482_v10 = vld [vmem:[#allocation3 + $0x40] ss:$16 sps:$4 sm:$0xff]  }
  0x17   :  { %v2483_v11 = vld [vmem:[#allocation3 + $0x48] ss:$16 sps:$4 sm:$0xff]   ;;  %v2484_v12 = vld [vmem:[#allocation3 + $0x64] ss:$16 sps:$4 sm:$0xff]   ;;  %v2486_v13 = vld [vmem:[#allocation3 + $0x6c] ss:$16 sps:$4 sm:$0xff]  }
  0x18   :  { %v2488_v14 = vld [vmem:[#allocation3 + $0x60] ss:$16 sps:$4 sm:$0xff]   ;;  %v2489_v15 = vld [vmem:[#allocation3 + $0x68] ss:$16 sps:$4 sm:$0xff]   ;;  %v2490_v16 = vld [vmem:[#allocation3 + $0x84] ss:$16 sps:$4 sm:$0xff]  }
  0x19   :  { %1266 = vmatpush1.bf16.msra.mxu0 %v2476_v6  ;;  %1438 = vmatpush1.bf16.msra.mxu1 %v2477_v7  ;;  %v2492_v17 = vld [vmem:[#allocation3 + $0x8c] ss:$16 sps:$4 sm:$0xff]   ;;  %v2494_v18 = vld [vmem:[#allocation3 + $0x80] ss:$16 sps:$4 sm:$0xff]   ;;  %v2495_v19 = vld [vmem:[#allocation3 + $0x88] ss:$16 sps:$4 sm:$0xff]  }
  0x1a   :  { %1267 = vmatprep.subr.bf16.mxu0 %v2478_v8  ;;  %1439 = vmatprep.subr.bf16.mxu1 %v2480_v9  ;;  %v2496_v20 = vld [vmem:[#allocation3 + $0xa4] ss:$16 sps:$4 sm:$0xff]   ;;  %v2498_v21 = vld [vmem:[#allocation3 + $0xac] ss:$16 sps:$4 sm:$0xff]   ;;  %v2500_v22 = vld [vmem:[#allocation3 + $0xa0] ss:$16 sps:$4 sm:$0xff]  }
  0x1b   :  { %v2501_v23 = vld [vmem:[#allocation3 + $0xa8] ss:$16 sps:$4 sm:$0xff]   ;;  %v2502_v24 = vld [vmem:[#allocation3 + $0xc4] ss:$16 sps:$4 sm:$0xff]   ;;  %v2504_v25 = vld [vmem:[#allocation3 + $0xcc] ss:$16 sps:$4 sm:$0xff]  }
  0x1c   :  { %v2506_v26 = vld [vmem:[#allocation3 + $0xc0] ss:$16 sps:$4 sm:$0xff]   ;;  %v2507_v27 = vld [vmem:[#allocation3 + $0xc8] ss:$16 sps:$4 sm:$0xff]   ;;  %v2508_v28 = vld [vmem:[#allocation3 + $0xe4] ss:$16 sps:$4 sm:$0xff]  }
  0x1d   :  { %1268 = vmatpush1.bf16.msra.mxu0 %v2482_v10  ;;  %1440 = vmatpush1.bf16.msra.mxu1 %v2483_v11  ;;  %v2510_v29 = vld [vmem:[#allocation3 + $0xec] ss:$16 sps:$4 sm:$0xff]   ;;  %v2512_v30 = vld [vmem:[#allocation3 + $0xe0] ss:$16 sps:$4 sm:$0xff]   ;;  %v2513_v31 = vld [vmem:[#allocation3 + $0xe8] ss:$16 sps:$4 sm:$0xff]  }
  0x1e   :  { %1269 = vmatprep.subr.bf16.mxu0 %v2484_v12  ;;  %1441 = vmatprep.subr.bf16.mxu1 %v2486_v13  ;;  %v2514_v32 = vld [vmem:[#allocation3 + $0x104] ss:$16 sps:$4 sm:$0xff]   ;;  %v2516_v33 = vld [vmem:[#allocation3 + $0x10c] ss:$16 sps:$4 sm:$0xff]   ;;  %v2518_v34 = vld [vmem:[#allocation3 + $0x100] ss:$16 sps:$4 sm:$0xff]  }
  0x1f   :  { %v2519_v35 = vld [vmem:[#allocation3 + $0x108] ss:$16 sps:$4 sm:$0xff]   ;;  %v2520_v36 = vld [vmem:[#allocation3 + $0x124] ss:$16 sps:$4 sm:$0xff]   ;;  %v2522_v37 = vld [vmem:[#allocation3 + $0x12c] ss:$16 sps:$4 sm:$0xff]  }
  0x20   :  { %v2524_v38 = vld [vmem:[#allocation3 + $0x120] ss:$16 sps:$4 sm:$0xff]   ;;  %v2525_v39 = vld [vmem:[#allocation3 + $0x128] ss:$16 sps:$4 sm:$0xff]   ;;  %v2526_v40 = vld [vmem:[#allocation3 + $0x144] ss:$16 sps:$4 sm:$0xff]  }
  0x21   :  { %1270 = vmatpush1.bf16.msra.mxu0 %v2488_v14  ;;  %1442 = vmatpush1.bf16.msra.mxu1 %v2489_v15  ;;  %v2528_v41 = vld [vmem:[#allocation3 + $0x14c] ss:$16 sps:$4 sm:$0xff]   ;;  %v2530_v42 = vld [vmem:[#allocation3 + $0x140] ss:$16 sps:$4 sm:$0xff]   ;;  %v2531_v43 = vld [vmem:[#allocation3 + $0x148] ss:$16 sps:$4 sm:$0xff]  }
  0x22   :  { %1271 = vmatprep.subr.bf16.mxu0 %v2490_v16  ;;  %1443 = vmatprep.subr.bf16.mxu1 %v2492_v17  ;;  %v2532_v44 = vld [vmem:[#allocation3 + $0x164] ss:$16 sps:$4 sm:$0xff]   ;;  %v2534_v45 = vld [vmem:[#allocation3 + $0x16c] ss:$16 sps:$4 sm:$0xff]   ;;  %v2536_v48 = vld [vmem:[#allocation3 + $0x160] ss:$16 sps:$4 sm:$0xff]  }
  0x23   :  { %v41_v46 = vld [vmem:[%s3082_s1 + $0x8] sm:$0xff]  ;;  %v48_v47 = vld [vmem:[%s3082_s1 + $0x40] sm:$0xff]  ;;  %v47_v5 = vld [vmem:[%s3082_s1 + $0x38] sm:$0xff]  ;;  %vm1259_vm0 = vcmask 130048   ;;  %s2844_s25 = smov [#allocation6]   ;;  %vm2120_vm13 = vcmask 80896  }
  0x24   :  { %v2537_v49 = vld [vmem:[#allocation3 + $0x168] ss:$16 sps:$4 sm:$0xff]   ;;  %v55_v50 = vpack.c.bf16 %v48_v47, %v41_v46  ;;  %v2538_v51 = vld [vmem:[#allocation3 + $0x184] ss:$16 sps:$4 sm:$0xff]   ;;  %v2540_v52 = vld [vmem:[#allocation3 + $0x18c] ss:$16 sps:$4 sm:$0xff]  }
  0x25   :  { %1272 = vmatpush1.bf16.msra.mxu0 %v2494_v18  ;;  %1444 = vmatpush1.bf16.msra.mxu1 %v2495_v19  ;;  %v2542_v53 = vld [vmem:[#allocation3 + $0x180] ss:$16 sps:$4 sm:$0xff]   ;;  %v2543_v54 = vld [vmem:[#allocation3 + $0x188] ss:$16 sps:$4 sm:$0xff]   ;;  %v2544_v55 = vld [vmem:[#allocation3 + $0x1a4] ss:$16 sps:$4 sm:$0xff]  }
  0x26   :  { %1273 = vmatprep.subr.bf16.mxu0 %v2496_v20  ;;  %1445 = vmatprep.subr.bf16.mxu1 %v2498_v21  ;;  %v2546_v56 = vld [vmem:[#allocation3 + $0x1ac] ss:$16 sps:$4 sm:$0xff]   ;;  %v2548_v57 = vld [vmem:[#allocation3 + $0x1a0] ss:$16 sps:$4 sm:$0xff]   ;;  %v2549_v58 = vld [vmem:[#allocation3 + $0x1a8] ss:$16 sps:$4 sm:$0xff]  }
  0x27   :  { %1295 = vmatprep.mubr.bf16.mxu0 %v55_v50  ;;  %1467 = vmatprep.mubr.bf16.mxu1 %v55_v50  ;;  %v2550_v59 = vld [vmem:[#allocation3 + $0x1c4] ss:$16 sps:$4 sm:$0xff]   ;;  %v2552_v60 = vld [vmem:[#allocation3 + $0x1cc] ss:$16 sps:$4 sm:$0xff]   ;;  %v2554_v61 = vld [vmem:[#allocation3 + $0x1c0] ss:$16 sps:$4 sm:$0xff]  }
  0x28   :  { %v2555_v62 = vld [vmem:[#allocation3 + $0x1c8] ss:$16 sps:$4 sm:$0xff]   ;;  %v2556_v63 = vld [vmem:[#allocation3 + $0x1e4] ss:$16 sps:$4 sm:$0xff]   ;;  %v2558_v0 = vld [vmem:[#allocation3 + $0x1ec] ss:$16 sps:$4 sm:$0xff]  }
  0x29   :  { %1274 = vmatpush1.bf16.msra.mxu0 %v2500_v22  ;;  %1446 = vmatpush1.bf16.msra.mxu1 %v2501_v23  ;;  %v2560_v1 = vld [vmem:[#allocation3 + $0x1e0] ss:$16 sps:$4 sm:$0xff]   ;;  %v2561_v2 = vld [vmem:[#allocation3 + $0x1e8] ss:$16 sps:$4 sm:$0xff]   ;;  %v2564_v3 = vld [vmem:[#allocation3 + $0x204] ss:$16 sps:$4 sm:$0xff]  }
  0x2a   :  { %1275 = vmatprep.subr.bf16.mxu0 %v2502_v24  ;;  %1447 = vmatprep.subr.bf16.mxu1 %v2504_v25  ;;  %v40_v4 = vld [vmem:[%s3082_s1] sm:$0xff]  ;;  %v2567_v6 = vld [vmem:[#allocation3 + $0x20c] ss:$16 sps:$4 sm:$0xff]   ;;  %v2565_v8 = vld [vmem:[#allocation3 + $0x208] ss:$16 sps:$4 sm:$0xff]   ;;  %s2128_s26 = sshll.u32 %s2844_s25, 4  ;;  %s2129_s26 = int_to_ptr.vmem [resolvable:$true] %s2128_s26 }
  0x2b   :  { %v2562_v7 = vld [vmem:[#allocation3 + $0x200] ss:$16 sps:$4 sm:$0xff]   ;;  %v54_v9 = vpack.c.bf16 %v47_v5, %v40_v4  ;;  %v2570_v10 = vld [vmem:[#allocation3 + $0x224] ss:$16 sps:$4 sm:$0xff]   ;;  %v2573_v11 = vld [vmem:[#allocation3 + $0x22c] ss:$16 sps:$4 sm:$0xff]   ;;  %p2819_p9 = scmp.lt.s32.totalorder %s2129_s26, %s2129_s26 }
  0x2c   :  { %v2568_v12 = vld [vmem:[#allocation3 + $0x220] ss:$16 sps:$4 sm:$0xff]   ;;  %v2571_v13 = vld [vmem:[#allocation3 + $0x228] ss:$16 sps:$4 sm:$0xff]   ;;  %v2576_v14 = vld [vmem:[#allocation3 + $0x244] ss:$16 sps:$4 sm:$0xff]  }
  0x2d   :  { %1276 = vmatpush1.bf16.msra.mxu0 %v2506_v26  ;;  %1448 = vmatpush1.bf16.msra.mxu1 %v2507_v27  ;;  %v2579_v15 = vld [vmem:[#allocation3 + $0x24c] ss:$16 sps:$4 sm:$0xff]   ;;  %v2574_v16 = vld [vmem:[#allocation3 + $0x240] ss:$16 sps:$4 sm:$0xff]   ;;  %v2577_v17 = vld [vmem:[#allocation3 + $0x248] ss:$16 sps:$4 sm:$0xff]  }
  0x2e   :  { %1277 = vmatprep.subr.bf16.mxu0 %v2508_v28  ;;  %1449 = vmatprep.subr.bf16.mxu1 %v2510_v29  ;;  %v2582_v18 = vld [vmem:[#allocation3 + $0x264] ss:$16 sps:$4 sm:$0xff]   ;;  %v2585_v19 = vld [vmem:[#allocation3 + $0x26c] ss:$16 sps:$4 sm:$0xff]   ;;  %v2580_v20 = vld [vmem:[#allocation3 + $0x260] ss:$16 sps:$4 sm:$0xff]  }
  0x2f   :  { %v2583_v21 = vld [vmem:[#allocation3 + $0x268] ss:$16 sps:$4 sm:$0xff]   ;;  %v2588_v22 = vld [vmem:[#allocation3 + $0x284] ss:$16 sps:$4 sm:$0xff]   ;;  %v2591_v23 = vld [vmem:[#allocation3 + $0x28c] ss:$16 sps:$4 sm:$0xff]  }
  0x30   :  { %v2586_v24 = vld [vmem:[#allocation3 + $0x280] ss:$16 sps:$4 sm:$0xff]   ;;  %v2589_v25 = vld [vmem:[#allocation3 + $0x288] ss:$16 sps:$4 sm:$0xff]   ;;  %v2594_v26 = vld [vmem:[#allocation3 + $0x2a4] ss:$16 sps:$4 sm:$0xff]  }
  0x31   :  { %1278 = vmatpush1.bf16.msra.mxu0 %v2512_v30  ;;  %1450 = vmatpush1.bf16.msra.mxu1 %v2513_v31  ;;  %v2597_v27 = vld [vmem:[#allocation3 + $0x2ac] ss:$16 sps:$4 sm:$0xff]   ;;  %v2592_v28 = vld [vmem:[#allocation3 + $0x2a0] ss:$16 sps:$4 sm:$0xff]   ;;  %v2595_v29 = vld [vmem:[#allocation3 + $0x2a8] ss:$16 sps:$4 sm:$0xff]  }
  0x32   :  { %1279 = vmatprep.subr.bf16.mxu0 %v2514_v32  ;;  %1451 = vmatprep.subr.bf16.mxu1 %v2516_v33  ;;  %v2600_v30 = vld [vmem:[#allocation3 + $0x2c4] ss:$16 sps:$4 sm:$0xff]   ;;  %v2603_v31 = vld [vmem:[#allocation3 + $0x2cc] ss:$16 sps:$4 sm:$0xff]   ;;  %v2616_v47 = vld [vmem:[#allocation3 + $0x320] ss:$16 sps:$4 sm:$0xff]  }
  0x33   :  { %v43_v32 = vld [vmem:[%s3082_s1 + $0x18] sm:$0xff]  ;;  %v50_v33 = vld [vmem:[%s3082_s1 + $0x50] sm:$0xff] }
  0x34   :  { %v2621_v46 = vld [vmem:[#allocation3 + $0x32c] ss:$16 sps:$4 sm:$0xff]   ;;  %v2649_v4 = vld [vmem:[#allocation3 + $0x3c8] ss:$16 sps:$4 sm:$0xff]   ;;  %v2654_v5 = vld [vmem:[#allocation3 + $0x3e4] ss:$16 sps:$4 sm:$0xff]  }
  0x35   :  { %1280 = vmatpush1.bf16.msra.mxu0 %v2518_v34  ;;  %1452 = vmatpush1.bf16.msra.mxu1 %v2519_v35  ;;  %v2598_v34 = vld [vmem:[#allocation3 + $0x2c0] ss:$16 sps:$4 sm:$0xff]   ;;  %v2601_v35 = vld [vmem:[#allocation3 + $0x2c8] ss:$16 sps:$4 sm:$0xff]   ;;  %v2627_v50 = vld [vmem:[#allocation3 + $0x34c] ss:$16 sps:$4 sm:$0xff]  }
  0x36   :  { %1281 = vmatprep.subr.bf16.mxu0 %v2520_v36  ;;  %1453 = vmatprep.subr.bf16.mxu1 %v2522_v37  ;;  %v57_v36 = vpack.c.bf16 %v50_v33, %v43_v32  ;;  %v2606_v37 = vld [vmem:[#allocation3 + $0x2e4] ss:$16 sps:$4 sm:$0xff]   ;;  %v2687_v32 = vld [vmem:[#allocation3 + $0x48c] ss:$16 sps:$4 sm:$0xff]   ;;  %v2682_v33 = vld [vmem:[#allocation3 + $0x480] ss:$16 sps:$4 sm:$0xff]  }
  0x39   :  { %1282 = vmatpush1.bf16.msra.mxu0 %v2524_v38  ;;  %1454 = vmatpush1.bf16.msra.mxu1 %v2525_v39  ;;  %v2609_v38 = vld [vmem:[#allocation3 + $0x2ec] ss:$16 sps:$4 sm:$0xff]   ;;  %v2604_v39 = vld [vmem:[#allocation3 + $0x2e0] ss:$16 sps:$4 sm:$0xff]  }
  0x3a   :  { %1283 = vmatprep.subr.bf16.mxu0 %v2526_v40  ;;  %1455 = vmatprep.subr.bf16.mxu1 %v2528_v41  ;;  %v2607_v40 = vld [vmem:[#allocation3 + $0x2e8] ss:$16 sps:$4 sm:$0xff]   ;;  %v2612_v41 = vld [vmem:[#allocation3 + $0x304] ss:$16 sps:$4 sm:$0xff]  }
  0x3d   :  { %1284 = vmatpush1.bf16.msra.mxu0 %v2530_v42  ;;  %1456 = vmatpush1.bf16.msra.mxu1 %v2531_v43  ;;  %v2615_v42 = vld [vmem:[#allocation3 + $0x30c] ss:$16 sps:$4 sm:$0xff]   ;;  %v2610_v43 = vld [vmem:[#allocation3 + $0x300] ss:$16 sps:$4 sm:$0xff]  }
  0x3e   :  { %1285 = vmatprep.subr.bf16.mxu0 %v2532_v44  ;;  %1457 = vmatprep.subr.bf16.mxu1 %v2534_v45  ;;  %v2613_v44 = vld [vmem:[#allocation3 + $0x308] ss:$16 sps:$4 sm:$0xff]   ;;  %v2618_v45 = vld [vmem:[#allocation3 + $0x324] ss:$16 sps:$4 sm:$0xff]  }
  0x41   :  { %1286 = vmatpush1.bf16.msra.mxu0 %v2536_v48  ;;  %1458 = vmatpush1.bf16.msra.mxu1 %v2537_v49  ;;  %v2619_v48 = vld [vmem:[#allocation3 + $0x328] ss:$16 sps:$4 sm:$0xff]   ;;  %v2624_v49 = vld [vmem:[#allocation3 + $0x344] ss:$16 sps:$4 sm:$0xff]  }
  0x42   :  { %1287 = vmatprep.subr.bf16.mxu0 %v2538_v51  ;;  %1459 = vmatprep.subr.bf16.mxu1 %v2540_v52  ;;  %v2622_v51 = vld [vmem:[#allocation3 + $0x340] ss:$16 sps:$4 sm:$0xff]   ;;  %v2625_v52 = vld [vmem:[#allocation3 + $0x348] ss:$16 sps:$4 sm:$0xff]  }
  0x45   :  { %1288 = vmatpush1.bf16.msra.mxu0 %v2542_v53  ;;  %1460 = vmatpush1.bf16.msra.mxu1 %v2543_v54  ;;  %v2630_v53 = vld [vmem:[#allocation3 + $0x364] ss:$16 sps:$4 sm:$0xff]   ;;  %v2633_v54 = vld [vmem:[#allocation3 + $0x36c] ss:$16 sps:$4 sm:$0xff]  }
  0x46   :  { %1289 = vmatprep.subr.bf16.mxu0 %v2544_v55  ;;  %1461 = vmatprep.subr.bf16.mxu1 %v2546_v56  ;;  %v2628_v55 = vld [vmem:[#allocation3 + $0x360] ss:$16 sps:$4 sm:$0xff]   ;;  %v2631_v56 = vld [vmem:[#allocation3 + $0x368] ss:$16 sps:$4 sm:$0xff]  }
  0x49   :  { %1290 = vmatpush1.bf16.msra.mxu0 %v2548_v57  ;;  %1462 = vmatpush1.bf16.msra.mxu1 %v2549_v58  ;;  %v2636_v57 = vld [vmem:[#allocation3 + $0x384] ss:$16 sps:$4 sm:$0xff]   ;;  %v2639_v58 = vld [vmem:[#allocation3 + $0x38c] ss:$16 sps:$4 sm:$0xff]  }
  0x4a   :  { %1291 = vmatprep.subr.bf16.mxu0 %v2550_v59  ;;  %1463 = vmatprep.subr.bf16.mxu1 %v2552_v60  ;;  %v2634_v59 = vld [vmem:[#allocation3 + $0x380] ss:$16 sps:$4 sm:$0xff]   ;;  %v2637_v60 = vld [vmem:[#allocation3 + $0x388] ss:$16 sps:$4 sm:$0xff]  }
  0x4d   :  { %1292 = vmatpush1.bf16.msra.mxu0 %v2554_v61  ;;  %1464 = vmatpush1.bf16.msra.mxu1 %v2555_v62  ;;  %v2642_v61 = vld [vmem:[#allocation3 + $0x3a4] ss:$16 sps:$4 sm:$0xff]   ;;  %v2645_v62 = vld [vmem:[#allocation3 + $0x3ac] ss:$16 sps:$4 sm:$0xff]  }
  0x4e   :  { %1293 = vmatprep.subr.bf16.mxu0 %v2556_v63  ;;  %1465 = vmatprep.subr.bf16.mxu1 %v2558_v0  ;;  %v2640_v63 = vld [vmem:[#allocation3 + $0x3a0] ss:$16 sps:$4 sm:$0xff]   ;;  %v2643_v0 = vld [vmem:[#allocation3 + $0x3a8] ss:$16 sps:$4 sm:$0xff]  }
  0x51   :  { %1294 = vmatpush1.bf16.msra.mxu0 %v2560_v1  ;;  %1466 = vmatpush1.bf16.msra.mxu1 %v2561_v2  ;;  %v2648_v1 = vld [vmem:[#allocation3 + $0x3c4] ss:$16 sps:$4 sm:$0xff]   ;;  %v2651_v2 = vld [vmem:[#allocation3 + $0x3cc] ss:$16 sps:$4 sm:$0xff]  }
  0x52   :  { %1306 = vmatprep.subr.bf16.mxu0 %v2564_v3  ;;  %1478 = vmatprep.subr.bf16.mxu1 %v2567_v6  ;;  %v2646_v3 = vld [vmem:[#allocation3 + $0x3c0] ss:$16 sps:$4 sm:$0xff]   ;;  %v2657_v6 = vld [vmem:[#allocation3 + $0x3ec] ss:$16 sps:$4 sm:$0xff]  }
  0x54   :  { %1296 = vmatmul.mubr.bf16.vlgmr.msra.gmra.mrb[0].mxu0 %v54_v9  ;;  %1468 = vmatmul.mubr.bf16.vlgmr.msra.gmra.mrb[0].mxu1 %v54_v9  ;;  %v2660_v9 = vld [vmem:[#allocation3 + $0x404] ss:$16 sps:$4 sm:$0xff]  }
  0x55   :  { %1307 = vmatpush1.bf16.msra.mxu0 %v2562_v7  ;;  %1479 = vmatpush1.bf16.msra.mxu1 %v2565_v8  ;;  %v2652_v7 = vld [vmem:[#allocation3 + $0x3e0] ss:$16 sps:$4 sm:$0xff]   ;;  %v2655_v8 = vld [vmem:[#allocation3 + $0x3e8] ss:$16 sps:$4 sm:$0xff]  }
  0x56   :  { %1308 = vmatprep.subr.bf16.mxu0 %v2570_v10  ;;  %1480 = vmatprep.subr.bf16.mxu1 %v2573_v11  ;;  %v42_v10 = vld [vmem:[%s3082_s1 + $0x10] sm:$0xff]  ;;  %v49_v11 = vld [vmem:[%s3082_s1 + $0x48] sm:$0xff] }
  0x57   :  { %1338 = vmatprep.mubr.bf16.mxu0 %v57_v36  ;;  %1510 = vmatprep.mubr.bf16.mxu1 %v57_v36  ;;  %v2690_v36 = vld [vmem:[#allocation3 + $0x4a4] ss:$16 sps:$4 sm:$0xff]  }
  0x59   :  { %1309 = vmatpush1.bf16.msra.mxu0 %v2568_v12  ;;  %1481 = vmatpush1.bf16.msra.mxu1 %v2571_v13  ;;  %v2663_v12 = vld [vmem:[#allocation3 + $0x40c] ss:$16 sps:$4 sm:$0xff]   ;;  %v2658_v13 = vld [vmem:[#allocation3 + $0x400] ss:$16 sps:$4 sm:$0xff]  }
  0x5a   :  { %1310 = vmatprep.subr.bf16.mxu0 %v2576_v14  ;;  %1482 = vmatprep.subr.bf16.mxu1 %v2579_v15  ;;  %v2661_v14 = vld [vmem:[#allocation3 + $0x408] ss:$16 sps:$4 sm:$0xff]   ;;  %v56_v15 = vpack.c.bf16 %v49_v11, %v42_v10 }
  0x5d   :  { %1311 = vmatpush1.bf16.msra.mxu0 %v2574_v16  ;;  %1483 = vmatpush1.bf16.msra.mxu1 %v2577_v17  ;;  %v2666_v16 = vld [vmem:[#allocation3 + $0x424] ss:$16 sps:$4 sm:$0xff]   ;;  %v2669_v17 = vld [vmem:[#allocation3 + $0x42c] ss:$16 sps:$4 sm:$0xff]  }
  0x5e   :  { %1312 = vmatprep.subr.bf16.mxu0 %v2582_v18  ;;  %1484 = vmatprep.subr.bf16.mxu1 %v2585_v19  ;;  %v45_v18 = vld [vmem:[%s3082_s1 + $0x28] sm:$0xff]  ;;  %v2664_v19 = vld [vmem:[#allocation3 + $0x420] ss:$16 sps:$4 sm:$0xff]  }
  0x61   :  { %1313 = vmatpush1.bf16.msra.mxu0 %v2580_v20  ;;  %1485 = vmatpush1.bf16.msra.mxu1 %v2583_v21  ;;  %v2667_v20 = vld [vmem:[#allocation3 + $0x428] ss:$16 sps:$4 sm:$0xff]   ;;  %v52_v21 = vld [vmem:[%s3082_s1 + $0x60] sm:$0xff] }
  0x62   :  { %1314 = vmatprep.subr.bf16.mxu0 %v2588_v22  ;;  %1486 = vmatprep.subr.bf16.mxu1 %v2591_v23  ;;  %v2672_v22 = vld [vmem:[#allocation3 + $0x444] ss:$16 sps:$4 sm:$0xff]   ;;  %v59_v23 = vpack.c.bf16 %v52_v21, %v45_v18  ;;  %v2729_v18 = vld [vmem:[#allocation3 + $0x56c] ss:$16 sps:$4 sm:$0xff]  }
  0x65   :  { %1315 = vmatpush1.bf16.msra.mxu0 %v2586_v24  ;;  %1487 = vmatpush1.bf16.msra.mxu1 %v2589_v25  ;;  %v2675_v24 = vld [vmem:[#allocation3 + $0x44c] ss:$16 sps:$4 sm:$0xff]   ;;  %v2670_v25 = vld [vmem:[#allocation3 + $0x440] ss:$16 sps:$4 sm:$0xff]  }
  0x66   :  { %1316 = vmatprep.subr.bf16.mxu0 %v2594_v26  ;;  %1488 = vmatprep.subr.bf16.mxu1 %v2597_v27  ;;  %v2673_v26 = vld [vmem:[#allocation3 + $0x448] ss:$16 sps:$4 sm:$0xff]   ;;  %v2678_v27 = vld [vmem:[#allocation3 + $0x464] ss:$16 sps:$4 sm:$0xff]  }
  0x69   :  { %1317 = vmatpush1.bf16.msra.mxu0 %v2592_v28  ;;  %1489 = vmatpush1.bf16.msra.mxu1 %v2595_v29  ;;  %v2681_v28 = vld [vmem:[#allocation3 + $0x46c] ss:$16 sps:$4 sm:$0xff]   ;;  %v2676_v29 = vld [vmem:[#allocation3 + $0x460] ss:$16 sps:$4 sm:$0xff]  }
  0x6a   :  { %1318 = vmatprep.subr.bf16.mxu0 %v2600_v30  ;;  %1490 = vmatprep.subr.bf16.mxu1 %v2603_v31  ;;  %v2679_v30 = vld [vmem:[#allocation3 + $0x468] ss:$16 sps:$4 sm:$0xff]   ;;  %v2684_v31 = vld [vmem:[#allocation3 + $0x484] ss:$16 sps:$4 sm:$0xff]  }
  0x6d   :  { %1319 = vmatpush1.bf16.msra.mxu0 %v2598_v34  ;;  %1491 = vmatpush1.bf16.msra.mxu1 %v2601_v35  ;;  %v259_v34 = vlaneseq  ;;  %v2685_v35 = vld [vmem:[#allocation3 + $0x488] ss:$16 sps:$4 sm:$0xff]  }
  0x6e   :  { %1320 = vmatprep.subr.bf16.mxu0 %v2606_v37  ;;  %1492 = vmatprep.subr.bf16.mxu1 %v2609_v38  ;;  %v2693_v37 = vld [vmem:[#allocation3 + $0x4ac] ss:$16 sps:$4 sm:$0xff]   ;;  %v2927_v38 = vstv %s3081_s0 }
  0x71   :  { %1321 = vmatpush1.bf16.msra.mxu0 %v2604_v39  ;;  %1493 = vmatpush1.bf16.msra.mxu1 %v2607_v40  ;;  %v2688_v39 = vld [vmem:[#allocation3 + $0x4a0] ss:$16 sps:$4 sm:$0xff]   ;;  %v2691_v40 = vld [vmem:[#allocation3 + $0x4a8] ss:$16 sps:$4 sm:$0xff]  }
  0x72   :  { %1322 = vmatprep.subr.bf16.mxu0 %v2612_v41  ;;  %1494 = vmatprep.subr.bf16.mxu1 %v2615_v42  ;;  %v1621_v41 = vadd.s32 %v2927_v38, %v259_v34  ;;  %v2696_v42 = vld [vmem:[#allocation3 + $0x4c4] ss:$16 sps:$4 sm:$0xff]  }
  0x75   :  { %1323 = vmatpush1.bf16.msra.mxu0 %v2610_v43  ;;  %1495 = vmatpush1.bf16.msra.mxu1 %v2613_v44  ;;  %v2699_v43 = vld [vmem:[#allocation3 + $0x4cc] ss:$16 sps:$4 sm:$0xff]   ;;  %v1623_v44 = vshll.u32 %v1621_v41, 13 }
  0x76   :  { %1324 = vmatprep.subr.bf16.mxu0 %v2618_v45  ;;  %1496 = vmatprep.subr.bf16.mxu1 %v2621_v46  ;;  %v1624_v45 = vshrl.u32 %v1621_v41, 19  ;;  %v2694_v46 = vld [vmem:[#allocation3 + $0x4c0] ss:$16 sps:$4 sm:$0xff]  }
  0x79   :  { %1325 = vmatpush1.bf16.msra.mxu0 %v2616_v47  ;;  %1497 = vmatpush1.bf16.msra.mxu1 %v2619_v48  ;;  %v1622_v47 = vadd.s32 %v1621_v41, %v1621_v41  ;;  %v2697_v48 = vld [vmem:[#allocation3 + $0x4c8] ss:$16 sps:$4 sm:$0xff]   ;;  %v2744_v41 = vld [vmem:[#allocation3 + $0x5c4] ss:$16 sps:$4 sm:$0xff]  }
  0x7a   :  { %1326 = vmatprep.subr.bf16.mxu0 %v2624_v49  ;;  %1498 = vmatprep.subr.bf16.mxu1 %v2627_v50  ;;  %v1625_v49 = vor.u32 %v1624_v45, %v1623_v44  ;;  %v2702_v50 = vld [vmem:[#allocation3 + $0x4e4] ss:$16 sps:$4 sm:$0xff]  }
  0x7d   :  { %1327 = vmatpush1.bf16.msra.mxu0 %v2622_v51  ;;  %1499 = vmatpush1.bf16.msra.mxu1 %v2625_v52  ;;  %v2705_v51 = vld [vmem:[#allocation3 + $0x4ec] ss:$16 sps:$4 sm:$0xff]   ;;  %v1626_v52 = vxor.u32 %v1625_v49, %v1622_v47  ;;  %v2750_v49 = vld [vmem:[#allocation3 + $0x5e4] ss:$16 sps:$4 sm:$0xff]  }
  0x7e   :  { %1328 = vmatprep.subr.bf16.mxu0 %v2630_v53  ;;  %1500 = vmatprep.subr.bf16.mxu1 %v2633_v54  ;;  %v2700_v53 = vld [vmem:[#allocation3 + $0x4e0] ss:$16 sps:$4 sm:$0xff]   ;;  %v2703_v54 = vld [vmem:[#allocation3 + $0x4e8] ss:$16 sps:$4 sm:$0xff]  }
  0x81   :  { %1329 = vmatpush1.bf16.msra.mxu0 %v2628_v55  ;;  %1501 = vmatpush1.bf16.msra.mxu1 %v2631_v56  ;;  %v2708_v55 = vld [vmem:[#allocation3 + $0x504] ss:$16 sps:$4 sm:$0xff]   ;;  %v2711_v56 = vld [vmem:[#allocation3 + $0x50c] ss:$16 sps:$4 sm:$0xff]  }
  0x82   :  { %1330 = vmatprep.subr.bf16.mxu0 %v2636_v57  ;;  %1502 = vmatprep.subr.bf16.mxu1 %v2639_v58  ;;  %v1628_v57 = vshll.u32 %v1626_v52, 15  ;;  %v1629_v58 = vshrl.u32 %v1626_v52, 17 }
  0x85   :  { %1331 = vmatpush1.bf16.msra.mxu0 %v2634_v59  ;;  %1503 = vmatpush1.bf16.msra.mxu1 %v2637_v60  ;;  %v1627_v59 = vadd.s32 %v1626_v52, %v1622_v47  ;;  %v1630_v60 = vor.u32 %v1629_v58, %v1628_v57  ;;  %v2745_v47 = vld [vmem:[#allocation3 + $0x5c8] ss:$16 sps:$4 sm:$0xff]   ;;  %v2748_v52 = vld [vmem:[#allocation3 + $0x5e0] ss:$16 sps:$4 sm:$0xff]   ;;  %v2756_v57 = vld [vmem:[#allocation3 + $0x604] ss:$16 sps:$4 sm:$0xff]  }
  0x86   :  { %1332 = vmatprep.subr.bf16.mxu0 %v2642_v61  ;;  %1504 = vmatprep.subr.bf16.mxu1 %v2645_v62  ;;  %v2706_v61 = vld [vmem:[#allocation3 + $0x500] ss:$16 sps:$4 sm:$0xff]   ;;  %v2709_v62 = vld [vmem:[#allocation3 + $0x508] ss:$16 sps:$4 sm:$0xff]   ;;  %v2759_v58 = vld [vmem:[#allocation3 + $0x60c] ss:$16 sps:$4 sm:$0xff]  }
  0x89   :  { %1333 = vmatpush1.bf16.msra.mxu0 %v2640_v63  ;;  %1505 = vmatpush1.bf16.msra.mxu1 %v2643_v0  ;;  %v2714_v63 = vld [vmem:[#allocation3 + $0x524] ss:$16 sps:$4 sm:$0xff]   ;;  %v2717_v0 = vld [vmem:[#allocation3 + $0x52c] ss:$16 sps:$4 sm:$0xff]  }
  0x8a   :  { %1334 = vmatprep.subr.bf16.mxu0 %v2648_v1  ;;  %1506 = vmatprep.subr.bf16.mxu1 %v2651_v2  ;;  %v1631_v1 = vxor.u32 %v1630_v60, %v1627_v59 }
  0x8c   :  { %v1633_v2 = vshll.u32 %v1631_v1, 26 }
  0x8d   :  { %1335 = vmatpush1.bf16.msra.mxu0 %v2646_v3  ;;  %1507 = vmatpush1.bf16.msra.mxu1 %v2649_v4  ;;  %v1634_v3 = vshrl.u32 %v1631_v1, 6  ;;  %v1632_v4 = vadd.s32 %v1631_v1, %v1627_v59  ;;  %v2757_v1 = vld [vmem:[#allocation3 + $0x608] ss:$16 sps:$4 sm:$0xff]  }
  0x8e   :  { %1336 = vmatprep.subr.bf16.mxu0 %v2654_v5  ;;  %1508 = vmatprep.subr.bf16.mxu1 %v2657_v6  ;;  %v2712_v6 = vld [vmem:[#allocation3 + $0x520] ss:$16 sps:$4 sm:$0xff]  }
  0x8f   :  { %v1635_v5 = vor.u32 %v1634_v3, %v1633_v2  ;;  %v2760_v3 = vld [vmem:[%s3085_s4 + $0x40] sm:$0xff]  }
  0x91   :  { %1337 = vmatpush1.bf16.msra.mxu0 %v2652_v7  ;;  %1509 = vmatpush1.bf16.msra.mxu1 %v2655_v8  ;;  %v2715_v7 = vld [vmem:[#allocation3 + $0x528] ss:$16 sps:$4 sm:$0xff]   ;;  %v2720_v8 = vld [vmem:[#allocation3 + $0x544] ss:$16 sps:$4 sm:$0xff]   ;;  %v1636_v10 = vxor.u32 %v1635_v5, %v1632_v4 }
  0x92   :  { %1349 = vmatprep.subr.bf16.mxu0 %v2660_v9  ;;  %1521 = vmatprep.subr.bf16.mxu1 %v2663_v12  ;;  %v2723_v9 = vld [vmem:[#allocation3 + $0x54c] ss:$16 sps:$4 sm:$0xff]  }
  0x93   :  { %v1638_v11 = vshll.u32 %v1636_v10, 6  ;;  %v1639_v12 = vshrl.u32 %v1636_v10, 26 }
  0x94   :  { %1339 = vmatmul.mubr.bf16.vlgmr.msra.gmra.mrb[0].mxu0 %v56_v15  ;;  %1511 = vmatmul.mubr.bf16.vlgmr.msra.gmra.mrb[0].mxu1 %v56_v15  ;;  %v1619_v15 = vxor.u32 %v2927_v38, %v2927_v38 }
  0x95   :  { %1350 = vmatpush1.bf16.msra.mxu0 %v2658_v13  ;;  %1522 = vmatpush1.bf16.msra.mxu1 %v2661_v14  ;;  %v2718_v13 = vld [vmem:[#allocation3 + $0x540] ss:$16 sps:$4 sm:$0xff]   ;;  %v2721_v14 = vld [vmem:[#allocation3 + $0x548] ss:$16 sps:$4 sm:$0xff]  }
  0x96   :  { %1351 = vmatprep.subr.bf16.mxu0 %v2666_v16  ;;  %1523 = vmatprep.subr.bf16.mxu1 %v2669_v17  ;;  %v1637_v16 = vadd.s32 %v1636_v10, %v1632_v4  ;;  %v2726_v17 = vld [vmem:[#allocation3 + $0x564] ss:$16 sps:$4 sm:$0xff]  }
  0x97   :  { %1381 = vmatprep.mubr.bf16.mxu0 %v59_v23  ;;  %1553 = vmatprep.mubr.bf16.mxu1 %v59_v23  ;;  %v2727_v23 = vld [vmem:[#allocation3 + $0x568] ss:$16 sps:$4 sm:$0xff]   ;;  %v2761_v4 = vld [vmem:[%s3085_s4 + $0xc0] sm:$0xff]  }
  0x99   :  { %1352 = vmatpush1.bf16.msra.mxu0 %v2664_v19  ;;  %1524 = vmatpush1.bf16.msra.mxu1 %v2667_v20  ;;  %v1640_v19 = vor.u32 %v1639_v12, %v1638_v11  ;;  %v2933_v20 = vxor.u32 466688986, %v1619_v15  ;;  %v46_v11 = vld [vmem:[%s3082_s1 + $0x30] sm:$0xff]  ;;  %v53_v12 = vld [vmem:[%s3082_s1 + $0x68] sm:$0xff] }
  0x9a   :  { %1353 = vmatprep.subr.bf16.mxu0 %v2672_v22  ;;  %1525 = vmatprep.subr.bf16.mxu1 %v2675_v24  ;;  %v2724_v22 = vld [vmem:[#allocation3 + $0x560] ss:$16 sps:$4 sm:$0xff]   ;;  %v2732_v24 = vld [vmem:[#allocation3 + $0x584] ss:$16 sps:$4 sm:$0xff]  }
  0x9b   :  { %v1641_v21 = vxor.u32 %v1640_v19, %v1637_v16  ;;  %v2764_v19 = vld [vmem:[%s3085_s4 + $0x48] sm:$0xff]  }
  0x9d   :  { %1354 = vmatpush1.bf16.msra.mxu0 %v2670_v25  ;;  %1526 = vmatpush1.bf16.msra.mxu1 %v2673_v26  ;;  %v2735_v25 = vld [vmem:[#allocation3 + $0x58c] ss:$16 sps:$4 sm:$0xff]   ;;  %v1643_v26 = vadd.s32 %v1641_v21, %v2933_v20 }
  0x9e   :  { %1355 = vmatprep.subr.bf16.mxu0 %v2678_v27  ;;  %1527 = vmatprep.subr.bf16.mxu1 %v2681_v28  ;;  %v2730_v28 = vld [vmem:[#allocation3 + $0x580] ss:$16 sps:$4 sm:$0xff]   ;;  %v2765_v21 = vld [vmem:[%s3085_s4 + $0xc8] sm:$0xff]  }
  0x9f   :  { %v1644_v27 = vadd.s32 1, %v1643_v26  ;;  %v2766_v26 = vld [vmem:[%s3085_s4 + $0x8] sm:$0xff]  }
  0xa1   :  { %1356 = vmatpush1.bf16.msra.mxu0 %v2676_v29  ;;  %1528 = vmatpush1.bf16.msra.mxu1 %v2679_v30  ;;  %v2733_v29 = vld [vmem:[#allocation3 + $0x588] ss:$16 sps:$4 sm:$0xff]   ;;  %v1642_v30 = vadd.s32 %v1637_v16, %v2927_v38  ;;  %v2762_v16 = vld [vmem:[%s3085_s4] sm:$0xff]  }
  0xa2   :  { %1357 = vmatprep.subr.bf16.mxu0 %v2684_v31  ;;  %1529 = vmatprep.subr.bf16.mxu1 %v2687_v32  ;;  %v2738_v31 = vld [vmem:[#allocation3 + $0x5a4] ss:$16 sps:$4 sm:$0xff]   ;;  %v2741_v32 = vld [vmem:[#allocation3 + $0x5ac] ss:$16 sps:$4 sm:$0xff]  }
  0xa5   :  { %1358 = vmatpush1.bf16.msra.mxu0 %v2682_v33  ;;  %1530 = vmatpush1.bf16.msra.mxu1 %v2685_v35  ;;  %v1646_v33 = vshll.u32 %v1644_v27, 17  ;;  %v1647_v35 = vshrl.u32 %v1644_v27, 15 }
  0xa6   :  { %1359 = vmatprep.subr.bf16.mxu0 %v2690_v36  ;;  %1531 = vmatprep.subr.bf16.mxu1 %v2693_v37  ;;  %v1645_v36 = vadd.s32 %v1644_v27, %v1642_v30  ;;  %v2767_v27 = vld [vmem:[%s3085_s4 + $0x88] sm:$0xff]  }
  0xa7   :  { %v1648_v37 = vor.u32 %v1647_v35, %v1646_v33  ;;  %v2770_v33 = vld [vmem:[%s3085_s4 + $0x10] sm:$0xff]  }
  0xa8   :  { %v2771_v35 = vld [vmem:[%s3085_s4 + $0x90] sm:$0xff]  }
  0xa9   :  { %1360 = vmatpush1.bf16.msra.mxu0 %v2688_v39  ;;  %1532 = vmatpush1.bf16.msra.mxu1 %v2691_v40  ;;  %v2736_v39 = vld [vmem:[#allocation3 + $0x5a0] ss:$16 sps:$4 sm:$0xff]   ;;  %v2739_v40 = vld [vmem:[#allocation3 + $0x5a8] ss:$16 sps:$4 sm:$0xff]  }
  0xaa   :  { %1361 = vmatprep.subr.bf16.mxu0 %v2696_v42  ;;  %1533 = vmatprep.subr.bf16.mxu1 %v2699_v43  ;;  %v2747_v42 = vld [vmem:[#allocation3 + $0x5cc] ss:$16 sps:$4 sm:$0xff]   ;;  %v1649_v43 = vxor.u32 %v1648_v37, %v1645_v36 }
  0xab   :  { %v2772_v37 = vld [vmem:[%s3085_s4 + $0x58] sm:$0xff]  }
  0xac   :  { %v1651_v44 = vshll.u32 %v1649_v43, 29  ;;  %v1652_v45 = vshrl.u32 %v1649_v43, 3 }
  0xad   :  { %1362 = vmatpush1.bf16.msra.mxu0 %v2694_v46  ;;  %1534 = vmatpush1.bf16.msra.mxu1 %v2697_v48  ;;  %v2742_v46 = vld [vmem:[#allocation3 + $0x5c0] ss:$16 sps:$4 sm:$0xff]   ;;  %v1650_v48 = vadd.s32 %v1649_v43, %v1645_v36  ;;  %v2775_v43 = vld [vmem:[%s3085_s4 + $0x98] sm:$0xff]  }
  0xae   :  { %1363 = vmatprep.subr.bf16.mxu0 %v2702_v50  ;;  %1535 = vmatprep.subr.bf16.mxu1 %v2705_v51  ;;  %v2753_v50 = vld [vmem:[#allocation3 + $0x5ec] ss:$16 sps:$4 sm:$0xff]   ;;  %v1653_v51 = vor.u32 %v1652_v45, %v1651_v44  ;;  %v2776_v44 = vld [vmem:[%s3085_s4 + $0x60] sm:$0xff]  }
  0xaf   :  { %v2777_v45 = vld [vmem:[%s3085_s4 + $0xe0] sm:$0xff]  }
  0xb1   :  { %1364 = vmatpush1.bf16.msra.mxu0 %v2700_v53  ;;  %1536 = vmatpush1.bf16.msra.mxu1 %v2703_v54  ;;  %v1654_v53 = vxor.u32 %v1653_v51, %v1650_v48  ;;  %v2751_v54 = vld [vmem:[#allocation3 + $0x5e8] ss:$16 sps:$4 sm:$0xff]   ;;  %v2779_v51 = vld [vmem:[%s3085_s4 + $0xa0] sm:$0xff]  }
  0xb2   :  { %1365 = vmatprep.subr.bf16.mxu0 %v2708_v55  ;;  %1537 = vmatprep.subr.bf16.mxu1 %v2711_v56  ;;  %v44_v55 = vld [vmem:[%s3082_s1 + $0x20] sm:$0xff]  ;;  %v51_v56 = vld [vmem:[%s3082_s1 + $0x58] sm:$0xff] }
  0xb3   :  { %v1656_v59 = vshll.u32 %v1654_v53, 16  ;;  %v1657_v60 = vshrl.u32 %v1654_v53, 16 }
  0xb5   :  { %1366 = vmatpush1.bf16.msra.mxu0 %v2706_v61  ;;  %1538 = vmatpush1.bf16.msra.mxu1 %v2709_v62  ;;  %v1655_v61 = vadd.s32 %v1654_v53, %v1650_v48  ;;  %v58_v62 = vpack.c.bf16 %v51_v56, %v44_v55 }
  0xb6   :  { %1367 = vmatprep.subr.bf16.mxu0 %v2714_v63  ;;  %1539 = vmatprep.subr.bf16.mxu1 %v2717_v0  ;;  %v1658_v63 = vor.u32 %v1657_v60, %v1656_v59  ;;  %v2754_v0 = vld [vmem:[#allocation3 + $0x600] ss:$16 sps:$4 sm:$0xff]  }
  0xb8   :  { %v1659_v2 = vxor.u32 %v1658_v63, %v1655_v61 }
  0xb9   :  { %1368 = vmatpush1.bf16.msra.mxu0 %v2712_v6  ;;  %1540 = vmatpush1.bf16.msra.mxu1 %v2715_v7 }
  0xba   :  { %1369 = vmatprep.subr.bf16.mxu0 %v2720_v8  ;;  %1541 = vmatprep.subr.bf16.mxu1 %v2723_v9  ;;  %v1661_v5 = vshll.u32 %v1659_v2, 24  ;;  %v1662_v6 = vshrl.u32 %v1659_v2, 8  ;;  %v1660_v7 = vadd.s32 %v1659_v2, %v1655_v61  ;;  %v2843_v8 = vmov 0  }
  0xbc   :  { %v1663_v9 = vor.u32 %v1662_v6, %v1661_v5 }
  0xbd   :  { %1370 = vmatpush1.bf16.msra.mxu0 %v2718_v13  ;;  %1542 = vmatpush1.bf16.msra.mxu1 %v2721_v14  ;;  %v60_v14 = vpack.c.bf16 %v53_v12, %v46_v11 }
  0xbe   :  { %1371 = vmatprep.subr.bf16.mxu0 %v2726_v17  ;;  %1543 = vmatprep.subr.bf16.mxu1 %v2729_v18  ;;  %v1664_v10 = vxor.u32 %v1663_v9, %v1660_v7  ;;  %v2763_v17 = vld [vmem:[%s3085_s4 + $0x80] sm:$0xff]   ;;  %v1665_v18 = vadd.s32 %v1660_v7, %v2933_v20 }
  0xc0   :  { %v1666_v13 = vadd.s32 %v1664_v10, %v2927_v38 }
  0xc1   :  { %1372 = vmatpush1.bf16.msra.mxu0 %v2724_v22  ;;  %1544 = vmatpush1.bf16.msra.mxu1 %v2727_v23 }
  0xc2   :  { %1373 = vmatprep.subr.bf16.mxu0 %v2732_v24  ;;  %1545 = vmatprep.subr.bf16.mxu1 %v2735_v25  ;;  %v1667_v15 = vadd.s32 2, %v1666_v13 }
  0xc4   :  { %v1669_v22 = vshll.u32 %v1667_v15, 13  ;;  %v1670_v23 = vshrl.u32 %v1667_v15, 19  ;;  %v1668_v24 = vadd.s32 %v1667_v15, %v1665_v18 }
  0xc5   :  { %1374 = vmatpush1.bf16.msra.mxu0 %v2730_v28  ;;  %1546 = vmatpush1.bf16.msra.mxu1 %v2733_v29  ;;  %v2768_v28 = vld [vmem:[%s3085_s4 + $0x50] sm:$0xff]  }
  0xc6   :  { %1375 = vmatprep.subr.bf16.mxu0 %v2738_v31  ;;  %1547 = vmatprep.subr.bf16.mxu1 %v2741_v32  ;;  %v1671_v25 = vor.u32 %v1670_v23, %v1669_v22  ;;  %v2769_v29 = vld [vmem:[%s3085_s4 + $0xd0] sm:$0xff]  }
  0xc8   :  { %v1672_v30 = vxor.u32 %v1671_v25, %v1668_v24 }
  0xc9   :  { %1376 = vmatpush1.bf16.msra.mxu0 %v2736_v39  ;;  %1548 = vmatpush1.bf16.msra.mxu1 %v2739_v40  ;;  %v2773_v39 = vld [vmem:[%s3085_s4 + $0xd8] sm:$0xff]  }
  0xca   :  { %1377 = vmatprep.subr.bf16.mxu0 %v2744_v41  ;;  %1549 = vmatprep.subr.bf16.mxu1 %v2747_v42  ;;  %v1674_v31 = vshll.u32 %v1672_v30, 15  ;;  %v1675_v32 = vshrl.u32 %v1672_v30, 17  ;;  %v1673_v36 = vadd.s32 %v1672_v30, %v1668_v24  ;;  %v2774_v42 = vld [vmem:[%s3085_s4 + $0x18] sm:$0xff]  }
  0xcc   :  { %v1676_v40 = vor.u32 %v1675_v32, %v1674_v31 }
  0xcd   :  { %1378 = vmatpush1.bf16.msra.mxu0 %v2742_v46  ;;  %1550 = vmatpush1.bf16.msra.mxu1 %v2745_v47 }
  0xce   :  { %1379 = vmatprep.subr.bf16.mxu0 %v2750_v49  ;;  %1551 = vmatprep.subr.bf16.mxu1 %v2753_v50  ;;  %v1677_v41 = vxor.u32 %v1676_v40, %v1673_v36  ;;  %v2778_v50 = vld [vmem:[%s3085_s4 + $0x20] sm:$0xff]  }
  0xd0   :  { %v1679_v46 = vshll.u32 %v1677_v41, 26  ;;  %v1680_v47 = vshrl.u32 %v1677_v41, 6  ;;  %v1678_v48 = vadd.s32 %v1677_v41, %v1673_v36 }
  0xd1   :  { %1380 = vmatpush1.bf16.msra.mxu0 %v2748_v52  ;;  %1552 = vmatpush1.bf16.msra.mxu1 %v2751_v54 }
  0xd2   :  { %1392 = vmatprep.subr.bf16.mxu0 %v2756_v57  ;;  %1564 = vmatprep.subr.bf16.mxu1 %v2759_v58  ;;  %v1681_v49 = vor.u32 %v1680_v47, %v1679_v46  ;;  %v2780_v47 = vld [vmem:[%s3085_s4 + $0x68] sm:$0xff]  }
  0xd4   :  { %1382 = vmatmul.mubr.bf16.vlgmr.msra.gmra.mrb[0].mxu0 %v58_v62  ;;  %1554 = vmatmul.mubr.bf16.vlgmr.msra.gmra.mrb[0].mxu1 %v58_v62  ;;  %v1682_v52 = vxor.u32 %v1681_v49, %v1678_v48  ;;  %v2782_v49 = vld [vmem:[%s3085_s4 + $0x28] sm:$0xff]  }
  0xd5   :  { %1393 = vmatpush1.bf16.msra.mxu0 %v2754_v0  ;;  %1565 = vmatpush1.bf16.msra.mxu1 %v2757_v1 }
  0xd6   :  { %1424 = vmatprep.mubr.bf16.mxu0 %v2843_v8  ;;  %1596 = vmatprep.mubr.bf16.mxu1 %v2843_v8  ;;  %v1684_v53 = vshll.u32 %v1682_v52, 6  ;;  %v1685_v54 = vshrl.u32 %v1682_v52, 26  ;;  %v1683_v55 = vadd.s32 %v1682_v52, %v1678_v48  ;;  %v2781_v48 = vld [vmem:[%s3085_s4 + $0xe8] sm:$0xff]   ;;  %v2787_v52 = vld [vmem:[%s3085_s4 + $0xb0] sm:$0xff]  }
  0xd7   :  { %2383 = vmatprep.subr.bf16.mxu0 %v2760_v3  ;;  %2405 = vmatprep.subr.bf16.mxu1 %v2761_v4 }
  0xd8   :  { %v1686_v56 = vor.u32 %v1685_v54, %v1684_v53  ;;  %v1688_v60 = vadd.s32 %v1683_v55, %v2927_v38  ;;  %v2788_v53 = vld [vmem:[%s3085_s4 + $0x78] sm:$0xff]  }
  0xd9   :  { %v2789_v54 = vld [vmem:[%s3085_s4 + $0xf8] sm:$0xff]  }
  0xda   :  { %v1687_v57 = vxor.u32 %v1686_v56, %v1683_v55  ;;  %v2790_v55 = vld [vmem:[%s3085_s4 + $0x38] sm:$0xff]  }
  0xdb   :  { %v2791_v56 = vld [vmem:[%s3085_s4 + $0xb8] sm:$0xff]  }
  0xdc   :  { %v1689_v58 = vadd.s32 %v1687_v57, %v2927_v38 }
  0xde   :  { %v1690_v59 = vadd.s32 3, %v1689_v58 }
  0xe0   :  { %2336 = vmatmul.mubr.msk.bf16.vlgmr.msra.gmra.mrb[0].mxu0 %vm1259_vm0, %v60_v14  ;;  %2337 = vmatmul.mubr.msk.bf16.vlgmr.msra.gmra.mrb[0].mxu1 %vm1259_vm0, %v60_v14  ;;  %v1692_v61 = vshll.u32 %v1690_v59, 17  ;;  %v1693_v62 = vshrl.u32 %v1690_v59, 15  ;;  %v1691_v63 = vadd.s32 %v1690_v59, %v1688_v60  ;;  %v260_v60 = vshrl.u32 %v259_v34, 7 }
  0xe1   :  { %2384 = vmatpush3.bf16.msra.mxu0 %v2762_v16  ;;  %2406 = vmatpush3.bf16.msra.mxu1 %v2763_v17 }
  0xe2   :  { %2385 = vmatprep.subr.bf16.mxu0 %v2764_v19  ;;  %2407 = vmatprep.subr.bf16.mxu1 %v2765_v21  ;;  %v1694_v0 = vor.u32 %v1693_v62, %v1692_v61  ;;  %v261_v62 = vsub.s32 0, %v260_v60 }
  0xe4   :  { %v1695_v1 = vxor.u32 %v1694_v0, %v1691_v63  ;;  %v257_v0 = vld [vmem:[%s3084_s3] sm:$0xf] }
  0xe5   :  { %2386 = vmatpush3.bf16.msra.mxu0 %v2766_v26  ;;  %2408 = vmatpush3.bf16.msra.mxu1 %v2767_v27 }
  0xe6   :  { %2387 = vmatprep.subr.bf16.mxu0 %v2768_v28  ;;  %2409 = vmatprep.subr.bf16.mxu1 %v2769_v29  ;;  %v1697_v2 = vshll.u32 %v1695_v1, 29  ;;  %v1698_v3 = vshrl.u32 %v1695_v1, 3  ;;  %v1696_v4 = vadd.s32 %v1695_v1, %v1691_v63  ;;  %v269_v63 = vsub.s32 2, %v260_v60 }
  0xe7   :  { %v265_v1 = vsub.s32 1, %v260_v60 }
  0xe8   :  { %v1699_v5 = vor.u32 %v1698_v3, %v1697_v2  ;;  %v273_v2 = vsub.s32 3, %v260_v60 }
  0xe9   :  { %2388 = vmatpush3.bf16.msra.mxu0 %v2770_v33  ;;  %2410 = vmatpush3.bf16.msra.mxu1 %v2771_v35 }
  0xea   :  { %2389 = vmatprep.subr.bf16.mxu0 %v2772_v37  ;;  %2411 = vmatprep.subr.bf16.mxu1 %v2773_v39  ;;  %v1700_v6 = vxor.u32 %v1699_v5, %v1696_v4  ;;  %v270_v5 = vrot.slane %v257_v0, %v269_v63 }
  0xec   :  { %v1702_v7 = vshll.u32 %v1700_v6, 16  ;;  %v1703_v8 = vshrl.u32 %v1700_v6, 16  ;;  %v1701_v9 = vadd.s32 %v1700_v6, %v1696_v4  ;;  %v262_v4 = vrot.slane %v257_v0, %v261_v62 }
  0xed   :  { %2390 = vmatpush3.bf16.msra.mxu0 %v2774_v42  ;;  %2412 = vmatpush3.bf16.msra.mxu1 %v2775_v43 }
  0xee   :  { %2391 = vmatprep.subr.bf16.mxu0 %v2776_v44  ;;  %2413 = vmatprep.subr.bf16.mxu1 %v2777_v45  ;;  %v1704_v10 = vor.u32 %v1703_v8, %v1702_v7  ;;  %v266_v7 = vrot.slane %v257_v0, %v265_v1  ;;  %v274_v8 = vrot.slane %v257_v0, %v273_v2 }
  0xf0   :  { %v1705_v11 = vxor.u32 %v1704_v10, %v1701_v9 }
  0xf1   :  { %2392 = vmatpush3.bf16.msra.mxu0 %v2778_v50  ;;  %2414 = vmatpush3.bf16.msra.mxu1 %v2779_v51  ;;  %v2785_v50 = vld [vmem:[%s3085_s4 + $0xf0] sm:$0xff]  }
  0xf2   :  { %v1707_v12 = vshll.u32 %v1705_v11, 24  ;;  %v1708_v13 = vshrl.u32 %v1705_v11, 8  ;;  %v1706_v14 = vadd.s32 %v1705_v11, %v1701_v9  ;;  %2393 = vmatprep.subr.bf16.mxu0 %v2780_v47  ;;  %2415 = vmatprep.subr.bf16.mxu1 %v2781_v48  ;;  %v2786_v51 = vld [vmem:[%s3085_s4 + $0x30] sm:$0xff]  }
  0xf4   :  { %v1709_v15 = vor.u32 %v1708_v13, %v1707_v12  ;;  %v1711_v19 = vadd.s32 %v1706_v14, %v2927_v38 }
  0xf5   :  { %2394 = vmatpush3.bf16.msra.mxu0 %v2782_v49 }
  0xf6   :  { %v1710_v16 = vxor.u32 %v1709_v15, %v1706_v14 }
  0xf8   :  { %v1712_v17 = vadd.s32 %v1710_v16, %v2933_v20 }
  0xfa   :  { %v1713_v18 = vadd.s32 4, %v1712_v17 }
  0xfc   :  { %v1715_v21 = vshll.u32 %v1713_v18, 13  ;;  %v1716_v22 = vshrl.u32 %v1713_v18, 19  ;;  %v1714_v23 = vadd.s32 %v1713_v18, %v1711_v19 }
  0xfe   :  { %v1717_v24 = vor.u32 %v1716_v22, %v1715_v21 }
 0x100   :  { %v1718_v25 = vxor.u32 %v1717_v24, %v1714_v23 }
 0x102   :  { %v1720_v26 = vshll.u32 %v1718_v25, 15  ;;  %v1721_v27 = vshrl.u32 %v1718_v25, 17  ;;  %v1719_v28 = vadd.s32 %v1718_v25, %v1714_v23 }
 0x104   :  { %v1722_v29 = vor.u32 %v1721_v27, %v1720_v26 }
 0x106   :  { %v1723_v30 = vxor.u32 %v1722_v29, %v1719_v28 }
 0x108   :  { %v1725_v31 = vshll.u32 %v1723_v30, 26  ;;  %v1726_v32 = vshrl.u32 %v1723_v30, 6  ;;  %v1724_v33 = vadd.s32 %v1723_v30, %v1719_v28 }
 0x10a   :  { %v1727_v35 = vor.u32 %v1726_v32, %v1725_v31 }
 0x10c   :  { %v1728_v36 = vxor.u32 %v1727_v35, %v1724_v33 }
 0x10e   :  { %v1730_v37 = vshll.u32 %v1728_v36, 6  ;;  %v1731_v39 = vshrl.u32 %v1728_v36, 26  ;;  %v1729_v40 = vadd.s32 %v1728_v36, %v1724_v33 }
 0x110   :  { %v1732_v41 = vor.u32 %v1731_v39, %v1730_v37  ;;  %v1734_v44 = vadd.s32 %v1729_v40, %v2933_v20  ;;  %v2784_v20 = vld [vmem:[%s3085_s4 + $0x70] sm:$0xff]  }
 0x111   :  { %2395 = vmatprep.subr.bf16.mxu0 %v2784_v20  ;;  %v2338_v20 = vld [vmem:[%s3086_s5] ss:$0 sm:$0xff]  ;;  %s2814_s5 = scalar_lea.vmem %s2129_s26, 256 }
 0x112   :  { %v1733_v42 = vxor.u32 %v1732_v41, %v1729_v40  ;;  %2396 = vmatpush3.bf16.msra.mxu0 %v2786_v51  ;;  %p2815_p8 = scmp.ne.s32.totalorder %s2129_s26, %s2814_s5  ;;  %p2820_p10 = scmp.lt.s32.totalorder %s2814_s5, %s2814_s5 }
 0x113   :  { %2397 = vmatprep.subr.bf16.mxu0 %v2788_v53 }
 0x114   :  { %v1735_v43 = vadd.s32 %v1733_v42, %v2927_v38  ;;  %v2783_v38 = vld [vmem:[%s3085_s4 + $0xa8] sm:$0xff]   ;;  %p2821_p11 = por %p2820_p10, %p2819_p9 }
 0x115   :  { %2416 = vmatpush3.bf16.msra.mxu1 %v2783_v38 }
 0x116   :  { %v1736_v45 = vadd.s32 5, %v1735_v43  ;;  %2417 = vmatprep.subr.bf16.mxu1 %v2785_v50  ;;  %2398 = vmatpush3.bf16.msra.mxu0 %v2790_v55  ;;  %p2822_p12 = pnand %p2821_p11, %p2815_p8 }
 0x118   :  { %v1737_v46 = vxor.u32 %v1736_v45, %v1734_v44 }
 0x119   :  { %2418 = vmatpush3.bf16.msra.mxu1 %v2787_v52 }
 0x11a   :  { %1738 = set.rngseed %v1737_v46  ;;  %2419 = vmatprep.subr.bf16.mxu1 %v2789_v54 }
 0x11b   :  { %v1739_v57 = vrng }
 0x11c   :  { %v1740_v58 = vrng  ;;  %vm1747_vm1 = vcmp.ge.u32.totalorder %v1739_v57, 858993459 }
 0x11d   :  { %2420 = vmatpush3.bf16.msra.mxu1 %v2791_v56  ;;  %v3053_v59 = vrng  ;;  %vm1748_vm2 = vcmp.ge.u32.totalorder %v1740_v58, 858993459 }
 0x11e   :  { %v1742_v61 = vrng  ;;  %vm1749_vm7 = vcmp.ge.u32.totalorder %v3053_v59, 858993459 }
 0x11f   :  { %v1743_v3 = vrng  ;;  %vm1750_vm3 = vcmp.ge.u32.totalorder %v1742_v61, 858993459 }
 0x120   :  { %v1744_v6 = vrng  ;;  %vm1751_vm4 = vcmp.ge.u32.totalorder %v1743_v3, 858993459 }
 0x121   :  { %v1745_v11 = vrng  ;;  %vm1752_vm5 = vcmp.ge.u32.totalorder %v1744_v6, 858993459 }
 0x122   :  { %v1746_v26 = vrng  ;;  %vm1753_vm9 = vcmp.ge.u32.totalorder %v1745_v11, 858993459 }
 0x123   :  { %vm1754_vm6 = vcmp.ge.u32.totalorder %v1746_v26, 858993459  ;;  %vm2374_vm8 = vmpackc.low %vm1751_vm4, %vm1747_vm1 }
 0x124   :  { %vm2371_vm10 = vmpackc.low %vm1752_vm5, %vm1748_vm2 }
 0x125   :  { %vm2377_vm11 = vmpackc.low %vm1754_vm6, %vm1750_vm3 }
 0x126   :  { %vm2380_vm12 = vmpackc.low %vm1753_vm9, %vm1749_vm7 }
 0x1b3   :  { %v1426_v9 = vpop.f32.mrb[0].mxu0  ;;  %v1598_v10 = vpop.f32.mrb[0].mxu1 }
 0x1b4   :  { %v2427_v12 = vadd.f32 %v1426_v9, %v262_v4  ;;  %v2431_v34 = vadd.f32 %v1598_v10, %v270_v5  ;;  %v1428_v13 = vpop.f32.mrb[1].mxu0  ;;  %v1600_v14 = vpop.f32.mrb[1].mxu1 }
 0x1b5   :  { %v2428_v15 = vadd.f32 %v1428_v13, %v266_v7  ;;  %v2432_v16 = vadd.f32 %v1600_v14, %v274_v8  ;;  %v1430_v17 = vpop.f32.mrb[2].mxu0  ;;  %v1602_v18 = vpop.f32.mrb[2].mxu1 }
 0x1b6   :  { %v1607_v19 = vmax.f32 %v2427_v12, 0.0  ;;  %v1609_v21 = vmax.f32 %v2431_v34, 0.0  ;;  %v2429_v22 = vadd.f32 %v1430_v17, %v262_v4  ;;  %v2433_v23 = vadd.f32 %v1602_v18, %v270_v5  ;;  %v1432_v24 = vpop.f32.mrb[3].mxu0  ;;  %v1604_v25 = vpop.f32.mrb[3].mxu1 }
 0x1b7   :  { %v1608_v27 = vmax.f32 %v2428_v15, 0.0  ;;  %v1610_v28 = vmax.f32 %v2432_v16, 0.0  ;;  %v2430_v29 = vadd.f32 %v1432_v24, %v266_v7  ;;  %v2434_v30 = vadd.f32 %v1604_v25, %v274_v8 }
 0x1b8   :  { %v1611_v31 = vmax.f32 %v2429_v22, 0.0  ;;  %v1613_v32 = vmax.f32 %v2433_v23, 0.0  ;;  %v1755_v36 = vmul.f32 1.25, %v1607_v19  ;;  %v1757_v37 = vmul.f32 1.25, %v1609_v21 }
 0x1b9   :  { %v1612_v33 = vmax.f32 %v2430_v29, 0.0  ;;  %v1614_v35 = vmax.f32 %v2434_v30, 0.0  ;;  %v1756_v41 = vmul.f32 1.25, %v1608_v27  ;;  %v1758_v42 = vmul.f32 1.25, %v1610_v28 }
 0x1ba   :  { %v1759_v39 = vmul.f32 1.25, %v1611_v31  ;;  %v1761_v40 = vmul.f32 1.25, %v1613_v32 }
 0x1bb   :  { %v1760_v43 = vmul.f32 1.25, %v1612_v33  ;;  %v1762_v44 = vmul.f32 1.25, %v1614_v35 }
 0x1bc   :  { %v2375_v45 = vpack.c.bf16 %v1759_v39, %v1755_v36  ;;  %v2381_v46 = vpack.c.bf16 %v1761_v40, %v1757_v37 }
 0x1bd   :  { %v2372_v47 = vpack.c.bf16 %v1760_v43, %v1756_v41  ;;  %v2378_v48 = vpack.c.bf16 %v1762_v44, %v1758_v42 }
 0x1bf   :  { %2373 = vmatprep.mubr.msk.bf16.mxu0 %vm2371_vm10, %v2372_v47  ;;  %2379 = vmatprep.mubr.msk.bf16.mxu1 %vm2377_vm11, %v2378_v48 }
 0x1c0   :  { %2376 = vmatmul.mubr.msk.bf16.vlgmr.msra.gmra.mrb[4].mxu0 %vm2374_vm8, %v2375_v45  ;;  %2382 = vmatmul.mubr.msk.bf16.vlgmr.msra.gmra.mrb[4].mxu1 %vm2380_vm12, %v2381_v46 }
 0x293   :  { %v2399_v49 = vpop.f32.mrb[4].mxu0  ;;  %v2421_v38 = vpop.f32.mrb[4].mxu1 }
 0x294   :  { %v2400_v50 = vpop.f32.mrb[5].mxu0  ;;  %v2422_v51 = vpop.f32.mrb[5].mxu1 }
 0x295   :  { %v2401_v52 = vadd.f32 %v2400_v50, %v2399_v49  ;;  %v2423_v53 = vadd.f32 %v2422_v51, %v2421_v38  ;;  %v2402_v54 = vpop.f32.mrb[6].mxu0  ;;  %v2424_v55 = vpop.f32.mrb[6].mxu1 }
 0x296   :  { %v2403_v56 = vpop.f32.mrb[7].mxu0  ;;  %v2425_v57 = vpop.f32.mrb[7].mxu1 }
 0x297   :  { %v2073_v58 = vadd.f32 %v2401_v52, %v2338_v20  ;;  %v2404_v59 = vadd.f32 %v2403_v56, %v2402_v54  ;;  %v2426_v60 = vadd.f32 %v2425_v57, %v2424_v55 }
 0x299   :  { %v2114_v61 = vadd.f32 %v2423_v53, %v2073_v58  ;;  %v2076_v62 = vadd.f32 %v2404_v59, %v2338_v20 }
 0x29b   :  { %2121 = vst.msk [vmem:[#allocation6] sm:$0xff] %vm2120_vm13, %v2114_v61  ;;  %v2117_v63 = vadd.f32 %v2426_v60, %v2076_v62 }
 0x29d   :  { %2122 = vst.msk [vmem:[#allocation6 + $0x8] sm:$0xff] %vm2120_vm13, %v2117_v63 }
 0x29e   :  { %2825 = shalt.err (!%p2822_p12)
}
 0x29f   :  { %s2826_s29 = scalar_lea.hbm %s3087_s6, 256 }
 0x2a0   :  { %p2827_p13 = scmp.ne.s32.totalorder %s3087_s6, %s2826_s29  ;;  %p2830_p0 = scmp.lt.u32.totalorder %s2826_s29, %s3087_s6 }
 0x2a2   :  { %p2832_p1 = pnand %p2830_p0, %p2827_p13 }
 0x2a4   :  { %2835 = shalt.err (!%p2832_p1)
}
 0x2a5   :  { %s2845_s9 = smov 128   ;;  %s2846_s10 = smov 8  }
 0x2a6   :  { %2134 = dma.vmem_to_hbm [thread:$0]  %s2129_s26, 256, %s3087_s6, [#allocation5], %s2845_s9, %s2845_s9, %s2846_s10  }
 0x2a7   :  { %2838 = dma.done.wait [#allocation5], 256  }
 0x2a8   :  { %2839 = vsyncadd [#allocation5], 4294967040 }
 0x2a9   :  { %2138 = vsyncpa [#allocation4], 1 }
 0x2aa   :  { %2139 = vsyncpa [#allocation5], 1 }

// kernel: tpu_custom_call.1
= control target key start
LH: loop header
LB: loop body
LE: loop exit
PB: predicated region body
PF: predicated region fallthrough
CT: control target
= control target key end

     0   :  { %12 = vsyncpa [#allocation4], 0  ;;  %s3081_s0 = inlined_call_operand.<no memory space> [shape: s32[1], index: 0, kind: input, shape index: {}]   ;;  %s3082_s1 = inlined_call_operand.vmem [shape: f32[16,784], index: 1, kind: input, shape index: {}]   ;;  %s3083_s2 = inlined_call_operand.hbm [shape: bf16[784,512], index: 2, kind: input, shape index: {}]   ;;  %s3084_s3 = inlined_call_operand.vmem [shape: f32[1,512], index: 3, kind: input, shape index: {}]   ;;  %s3085_s4 = inlined_call_operand.vmem [shape: bf16[512,10], index: 4, kind: input, shape index: {}]   ;;  %s3086_s5 = inlined_call_operand.vmem [shape: f32[1,10], index: 5, kind: input, shape index: {}]   ;;  %s3087_s6 = inlined_call_operand.hbm [shape: f32[16,10], index: 6, kind: output, shape index: {}]  }
   0x1   :  { %13 = vsyncpa [#allocation5], 0  ;;  %s2840_s21 = smov [#allocation3]   ;;  %s2792_s25 = scalar_lea.hbm %s3083_s2, 25088 }
   0x2   :  { %s23_s22 = sshll.u32 %s2840_s21, 4  ;;  %p2793_p0 = scmp.ne.s32.totalorder %s3083_s2, %s2792_s25  ;;  %s24_s22 = int_to_ptr.vmem [resolvable:$true] %s23_s22 }
   0x3   :  { %p2796_p1 = scmp.lt.u32.totalorder %s2792_s25, %s3083_s2 }
   0x5   :  { %p2798_p2 = pnand %p2796_p1, %p2793_p0 }
   0x7   :  { %2801 = shalt.err (!%p2798_p2)
}
   0x8   :  { %s2802_s30 = scalar_lea.vmem %s24_s22, 25088  ;;  %p2807_p4 = scmp.lt.s32.totalorder %s24_s22, %s24_s22 }
   0x9   :  { %p2803_p3 = scmp.ne.s32.totalorder %s24_s22, %s2802_s30  ;;  %p2808_p5 = scmp.lt.s32.totalorder %s2802_s30, %s2802_s30 }
   0xb   :  { %p2809_p6 = por %p2808_p5, %p2807_p4 }
   0xd   :  { %p2810_p7 = pnand %p2809_p6, %p2803_p3 }
   0xf   :  { %2813 = shalt.err (!%p2810_p7)
}
  0x10   :  { %s2841_s7 = smov 256   ;;  %s2842_s8 = smov 16  }
  0x11   :  { %29 = dma.hbm_to_vmem [thread:$0]  %s3083_s2, 25088, %s24_s22, [#allocation4], %s2841_s7, %s2841_s7, %s2842_s8  }
  0x12   :  { %2836 = dma.done.wait [#allocation4], 25088  }
  0x13   :  { %2837 = vsyncadd [#allocation4], 4294942208  ;;  %v2466_v0 = vld [vmem:[#allocation3 + $0x4] ss:$16 sps:$4 sm:$0xff]   ;;  %v2468_v1 = vld [vmem:[#allocation3 + $0xc] ss:$16 sps:$4 sm:$0xff]  }
  0x14   :  { %1263 = vmatprep.subr.bf16.mxu0 %v2466_v0  ;;  %v2470_v2 = vld [vmem:[#allocation3] ss:$16 sps:$4 sm:$0xff]   ;;  %v2471_v3 = vld [vmem:[#allocation3 + $0x8] ss:$16 sps:$4 sm:$0xff]   ;;  %1435 = vmatprep.subr.bf16.mxu1 %v2468_v1  ;;  %v2472_v4 = vld [vmem:[#allocation3 + $0x24] ss:$16 sps:$4 sm:$0xff]  }
  0x15   :  { %1264 = vmatpush1.bf16.msra.mxu0 %v2470_v2  ;;  %1436 = vmatpush1.bf16.msra.mxu1 %v2471_v3  ;;  %v2474_v5 = vld [vmem:[#allocation3 + $0x2c] ss:$16 sps:$4 sm:$0xff]   ;;  %v2476_v6 = vld [vmem:[#allocation3 + $0x20] ss:$16 sps:$4 sm:$0xff]   ;;  %v2477_v7 = vld [vmem:[#allocation3 + $0x28] ss:$16 sps:$4 sm:$0xff]  }
  0x16   :  { %1265 = vmatprep.subr.bf16.mxu0 %v2472_v4  ;;  %1437 = vmatprep.subr.bf16.mxu1 %v2474_v5  ;;  %v2478_v8 = vld [vmem:[#allocation3 + $0x44] ss:$16 sps:$4 sm:$0xff]   ;;  %v2480_v9 = vld [vmem:[#allocation3 + $0x4c] ss:$16 sps:$4 sm:$0xff]   ;;  %v2482_v10 = vld [vmem:[#allocation3 + $0x40] ss:$16 sps:$4 sm:$0xff]  }
  0x17   :  { %v2483_v11 = vld [vmem:[#allocation3 + $0x48] ss:$16 sps:$4 sm:$0xff]   ;;  %v2484_v12 = vld [vmem:[#allocation3 + $0x64] ss:$16 sps:$4 sm:$0xff]   ;;  %v2486_v13 = vld [vmem:[#allocation3 + $0x6c] ss:$16 sps:$4 sm:$0xff]  }
  0x18   :  { %v2488_v14 = vld [vmem:[#allocation3 + $0x60] ss:$16 sps:$4 sm:$0xff]   ;;  %v2489_v15 = vld [vmem:[#allocation3 + $0x68] ss:$16 sps:$4 sm:$0xff]   ;;  %v2490_v16 = vld [vmem:[#allocation3 + $0x84] ss:$16 sps:$4 sm:$0xff]  }
  0x19   :  { %1266 = vmatpush1.bf16.msra.mxu0 %v2476_v6  ;;  %1438 = vmatpush1.bf16.msra.mxu1 %v2477_v7  ;;  %v2492_v17 = vld [vmem:[#allocation3 + $0x8c] ss:$16 sps:$4 sm:$0xff]   ;;  %v2494_v18 = vld [vmem:[#allocation3 + $0x80] ss:$16 sps:$4 sm:$0xff]   ;;  %v2495_v19 = vld [vmem:[#allocation3 + $0x88] ss:$16 sps:$4 sm:$0xff]  }
  0x1a   :  { %1267 = vmatprep.subr.bf16.mxu0 %v2478_v8  ;;  %1439 = vmatprep.subr.bf16.mxu1 %v2480_v9  ;;  %v2496_v20 = vld [vmem:[#allocation3 + $0xa4] ss:$16 sps:$4 sm:$0xff]   ;;  %v2498_v21 = vld [vmem:[#allocation3 + $0xac] ss:$16 sps:$4 sm:$0xff]   ;;  %v2500_v22 = vld [vmem:[#allocation3 + $0xa0] ss:$16 sps:$4 sm:$0xff]  }
  0x1b   :  { %v2501_v23 = vld [vmem:[#allocation3 + $0xa8] ss:$16 sps:$4 sm:$0xff]   ;;  %v2502_v24 = vld [vmem:[#allocation3 + $0xc4] ss:$16 sps:$4 sm:$0xff]   ;;  %v2504_v25 = vld [vmem:[#allocation3 + $0xcc] ss:$16 sps:$4 sm:$0xff]  }
  0x1c   :  { %v2506_v26 = vld [vmem:[#allocation3 + $0xc0] ss:$16 sps:$4 sm:$0xff]   ;;  %v2507_v27 = vld [vmem:[#allocation3 + $0xc8] ss:$16 sps:$4 sm:$0xff]   ;;  %v2508_v28 = vld [vmem:[#allocation3 + $0xe4] ss:$16 sps:$4 sm:$0xff]  }
  0x1d   :  { %1268 = vmatpush1.bf16.msra.mxu0 %v2482_v10  ;;  %1440 = vmatpush1.bf16.msra.mxu1 %v2483_v11  ;;  %v2510_v29 = vld [vmem:[#allocation3 + $0xec] ss:$16 sps:$4 sm:$0xff]   ;;  %v2512_v30 = vld [vmem:[#allocation3 + $0xe0] ss:$16 sps:$4 sm:$0xff]   ;;  %v2513_v31 = vld [vmem:[#allocation3 + $0xe8] ss:$16 sps:$4 sm:$0xff]  }
  0x1e   :  { %1269 = vmatprep.subr.bf16.mxu0 %v2484_v12  ;;  %1441 = vmatprep.subr.bf16.mxu1 %v2486_v13  ;;  %v2514_v32 = vld [vmem:[#allocation3 + $0x104] ss:$16 sps:$4 sm:$0xff]   ;;  %v2516_v33 = vld [vmem:[#allocation3 + $0x10c] ss:$16 sps:$4 sm:$0xff]   ;;  %v2518_v34 = vld [vmem:[#allocation3 + $0x100] ss:$16 sps:$4 sm:$0xff]  }
  0x1f   :  { %v2519_v35 = vld [vmem:[#allocation3 + $0x108] ss:$16 sps:$4 sm:$0xff]   ;;  %v2520_v36 = vld [vmem:[#allocation3 + $0x124] ss:$16 sps:$4 sm:$0xff]   ;;  %v2522_v37 = vld [vmem:[#allocation3 + $0x12c] ss:$16 sps:$4 sm:$0xff]  }
  0x20   :  { %v2524_v38 = vld [vmem:[#allocation3 + $0x120] ss:$16 sps:$4 sm:$0xff]   ;;  %v2525_v39 = vld [vmem:[#allocation3 + $0x128] ss:$16 sps:$4 sm:$0xff]   ;;  %v2526_v40 = vld [vmem:[#allocation3 + $0x144] ss:$16 sps:$4 sm:$0xff]  }
  0x21   :  { %1270 = vmatpush1.bf16.msra.mxu0 %v2488_v14  ;;  %1442 = vmatpush1.bf16.msra.mxu1 %v2489_v15  ;;  %v2528_v41 = vld [vmem:[#allocation3 + $0x14c] ss:$16 sps:$4 sm:$0xff]   ;;  %v2530_v42 = vld [vmem:[#allocation3 + $0x140] ss:$16 sps:$4 sm:$0xff]   ;;  %v2531_v43 = vld [vmem:[#allocation3 + $0x148] ss:$16 sps:$4 sm:$0xff]  }
  0x22   :  { %1271 = vmatprep.subr.bf16.mxu0 %v2490_v16  ;;  %1443 = vmatprep.subr.bf16.mxu1 %v2492_v17  ;;  %v2532_v44 = vld [vmem:[#allocation3 + $0x164] ss:$16 sps:$4 sm:$0xff]   ;;  %v2534_v45 = vld [vmem:[#allocation3 + $0x16c] ss:$16 sps:$4 sm:$0xff]   ;;  %v2536_v48 = vld [vmem:[#allocation3 + $0x160] ss:$16 sps:$4 sm:$0xff]  }
  0x23   :  { %v41_v46 = vld [vmem:[%s3082_s1 + $0x8] sm:$0xff]  ;;  %v48_v47 = vld [vmem:[%s3082_s1 + $0x40] sm:$0xff]  ;;  %v47_v5 = vld [vmem:[%s3082_s1 + $0x38] sm:$0xff]  ;;  %vm1259_vm0 = vcmask 130048   ;;  %s2844_s25 = smov [#allocation6]   ;;  %vm2120_vm13 = vcmask 80896  }
  0x24   :  { %v2537_v49 = vld [vmem:[#allocation3 + $0x168] ss:$16 sps:$4 sm:$0xff]   ;;  %v55_v50 = vpack.c.bf16 %v48_v47, %v41_v46  ;;  %v2538_v51 = vld [vmem:[#allocation3 + $0x184] ss:$16 sps:$4 sm:$0xff]   ;;  %v2540_v52 = vld [vmem:[#allocation3 + $0x18c] ss:$16 sps:$4 sm:$0xff]  }
  0x25   :  { %1272 = vmatpush1.bf16.msra.mxu0 %v2494_v18  ;;  %1444 = vmatpush1.bf16.msra.mxu1 %v2495_v19  ;;  %v2542_v53 = vld [vmem:[#allocation3 + $0x180] ss:$16 sps:$4 sm:$0xff]   ;;  %v2543_v54 = vld [vmem:[#allocation3 + $0x188] ss:$16 sps:$4 sm:$0xff]   ;;  %v2544_v55 = vld [vmem:[#allocation3 + $0x1a4] ss:$16 sps:$4 sm:$0xff]  }
  0x26   :  { %1273 = vmatprep.subr.bf16.mxu0 %v2496_v20  ;;  %1445 = vmatprep.subr.bf16.mxu1 %v2498_v21  ;;  %v2546_v56 = vld [vmem:[#allocation3 + $0x1ac] ss:$16 sps:$4 sm:$0xff]   ;;  %v2548_v57 = vld [vmem:[#allocation3 + $0x1a0] ss:$16 sps:$4 sm:$0xff]   ;;  %v2549_v58 = vld [vmem:[#allocation3 + $0x1a8] ss:$16 sps:$4 sm:$0xff]  }
  0x27   :  { %1295 = vmatprep.mubr.bf16.mxu0 %v55_v50  ;;  %1467 = vmatprep.mubr.bf16.mxu1 %v55_v50  ;;  %v2550_v59 = vld [vmem:[#allocation3 + $0x1c4] ss:$16 sps:$4 sm:$0xff]   ;;  %v2552_v60 = vld [vmem:[#allocation3 + $0x1cc] ss:$16 sps:$4 sm:$0xff]   ;;  %v2554_v61 = vld [vmem:[#allocation3 + $0x1c0] ss:$16 sps:$4 sm:$0xff]  }
  0x28   :  { %v2555_v62 = vld [vmem:[#allocation3 + $0x1c8] ss:$16 sps:$4 sm:$0xff]   ;;  %v2556_v63 = vld [vmem:[#allocation3 + $0x1e4] ss:$16 sps:$4 sm:$0xff]   ;;  %v2558_v0 = vld [vmem:[#allocation3 + $0x1ec] ss:$16 sps:$4 sm:$0xff]  }
  0x29   :  { %1274 = vmatpush1.bf16.msra.mxu0 %v2500_v22  ;;  %1446 = vmatpush1.bf16.msra.mxu1 %v2501_v23  ;;  %v2560_v1 = vld [vmem:[#allocation3 + $0x1e0] ss:$16 sps:$4 sm:$0xff]   ;;  %v2561_v2 = vld [vmem:[#allocation3 + $0x1e8] ss:$16 sps:$4 sm:$0xff]   ;;  %v2564_v3 = vld [vmem:[#allocation3 + $0x204] ss:$16 sps:$4 sm:$0xff]  }
  0x2a   :  { %1275 = vmatprep.subr.bf16.mxu0 %v2502_v24  ;;  %1447 = vmatprep.subr.bf16.mxu1 %v2504_v25  ;;  %v40_v4 = vld [vmem:[%s3082_s1] sm:$0xff]  ;;  %v2567_v6 = vld [vmem:[#allocation3 + $0x20c] ss:$16 sps:$4 sm:$0xff]   ;;  %v2565_v8 = vld [vmem:[#allocation3 + $0x208] ss:$16 sps:$4 sm:$0xff]   ;;  %s2128_s26 = sshll.u32 %s2844_s25, 4  ;;  %s2129_s26 = int_to_ptr.vmem [resolvable:$true] %s2128_s26 }
  0x2b   :  { %v2562_v7 = vld [vmem:[#allocation3 + $0x200] ss:$16 sps:$4 sm:$0xff]   ;;  %v54_v9 = vpack.c.bf16 %v47_v5, %v40_v4  ;;  %v2570_v10 = vld [vmem:[#allocation3 + $0x224] ss:$16 sps:$4 sm:$0xff]   ;;  %v2573_v11 = vld [vmem:[#allocation3 + $0x22c] ss:$16 sps:$4 sm:$0xff]   ;;  %p2819_p9 = scmp.lt.s32.totalorder %s2129_s26, %s2129_s26 }
  0x2c   :  { %v2568_v12 = vld [vmem:[#allocation3 + $0x220] ss:$16 sps:$4 sm:$0xff]   ;;  %v2571_v13 = vld [vmem:[#allocation3 + $0x228] ss:$16 sps:$4 sm:$0xff]   ;;  %v2576_v14 = vld [vmem:[#allocation3 + $0x244] ss:$16 sps:$4 sm:$0xff]  }
  0x2d   :  { %1276 = vmatpush1.bf16.msra.mxu0 %v2506_v26  ;;  %1448 = vmatpush1.bf16.msra.mxu1 %v2507_v27  ;;  %v2579_v15 = vld [vmem:[#allocation3 + $0x24c] ss:$16 sps:$4 sm:$0xff]   ;;  %v2574_v16 = vld [vmem:[#allocation3 + $0x240] ss:$16 sps:$4 sm:$0xff]   ;;  %v2577_v17 = vld [vmem:[#allocation3 + $0x248] ss:$16 sps:$4 sm:$0xff]  }
  0x2e   :  { %1277 = vmatprep.subr.bf16.mxu0 %v2508_v28  ;;  %1449 = vmatprep.subr.bf16.mxu1 %v2510_v29  ;;  %v2582_v18 = vld [vmem:[#allocation3 + $0x264] ss:$16 sps:$4 sm:$0xff]   ;;  %v2585_v19 = vld [vmem:[#allocation3 + $0x26c] ss:$16 sps:$4 sm:$0xff]   ;;  %v2580_v20 = vld [vmem:[#allocation3 + $0x260] ss:$16 sps:$4 sm:$0xff]  }
  0x2f   :  { %v2583_v21 = vld [vmem:[#allocation3 + $0x268] ss:$16 sps:$4 sm:$0xff]   ;;  %v2588_v22 = vld [vmem:[#allocation3 + $0x284] ss:$16 sps:$4 sm:$0xff]   ;;  %v2591_v23 = vld [vmem:[#allocation3 + $0x28c] ss:$16 sps:$4 sm:$0xff]  }
  0x30   :  { %v2586_v24 = vld [vmem:[#allocation3 + $0x280] ss:$16 sps:$4 sm:$0xff]   ;;  %v2589_v25 = vld [vmem:[#allocation3 + $0x288] ss:$16 sps:$4 sm:$0xff]   ;;  %v2594_v26 = vld [vmem:[#allocation3 + $0x2a4] ss:$16 sps:$4 sm:$0xff]  }
  0x31   :  { %1278 = vmatpush1.bf16.msra.mxu0 %v2512_v30  ;;  %1450 = vmatpush1.bf16.msra.mxu1 %v2513_v31  ;;  %v2597_v27 = vld [vmem:[#allocation3 + $0x2ac] ss:$16 sps:$4 sm:$0xff]   ;;  %v2592_v28 = vld [vmem:[#allocation3 + $0x2a0] ss:$16 sps:$4 sm:$0xff]   ;;  %v2595_v29 = vld [vmem:[#allocation3 + $0x2a8] ss:$16 sps:$4 sm:$0xff]  }
  0x32   :  { %1279 = vmatprep.subr.bf16.mxu0 %v2514_v32  ;;  %1451 = vmatprep.subr.bf16.mxu1 %v2516_v33  ;;  %v2600_v30 = vld [vmem:[#allocation3 + $0x2c4] ss:$16 sps:$4 sm:$0xff]   ;;  %v2603_v31 = vld [vmem:[#allocation3 + $0x2cc] ss:$16 sps:$4 sm:$0xff]   ;;  %v2616_v47 = vld [vmem:[#allocation3 + $0x320] ss:$16 sps:$4 sm:$0xff]  }
  0x33   :  { %v43_v32 = vld [vmem:[%s3082_s1 + $0x18] sm:$0xff]  ;;  %v50_v33 = vld [vmem:[%s3082_s1 + $0x50] sm:$0xff] }
  0x34   :  { %v2621_v46 = vld [vmem:[#allocation3 + $0x32c] ss:$16 sps:$4 sm:$0xff]   ;;  %v2649_v4 = vld [vmem:[#allocation3 + $0x3c8] ss:$16 sps:$4 sm:$0xff]   ;;  %v2654_v5 = vld [vmem:[#allocation3 + $0x3e4] ss:$16 sps:$4 sm:$0xff]  }
  0x35   :  { %1280 = vmatpush1.bf16.msra.mxu0 %v2518_v34  ;;  %1452 = vmatpush1.bf16.msra.mxu1 %v2519_v35  ;;  %v2598_v34 = vld [vmem:[#allocation3 + $0x2c0] ss:$16 sps:$4 sm:$0xff]   ;;  %v2601_v35 = vld [vmem:[#allocation3 + $0x2c8] ss:$16 sps:$4 sm:$0xff]   ;;  %v2627_v50 = vld [vmem:[#allocation3 + $0x34c] ss:$16 sps:$4 sm:$0xff]  }
  0x36   :  { %1281 = vmatprep.subr.bf16.mxu0 %v2520_v36  ;;  %1453 = vmatprep.subr.bf16.mxu1 %v2522_v37  ;;  %v57_v36 = vpack.c.bf16 %v50_v33, %v43_v32  ;;  %v2606_v37 = vld [vmem:[#allocation3 + $0x2e4] ss:$16 sps:$4 sm:$0xff]   ;;  %v2687_v32 = vld [vmem:[#allocation3 + $0x48c] ss:$16 sps:$4 sm:$0xff]   ;;  %v2682_v33 = vld [vmem:[#allocation3 + $0x480] ss:$16 sps:$4 sm:$0xff]  }
  0x39   :  { %1282 = vmatpush1.bf16.msra.mxu0 %v2524_v38  ;;  %1454 = vmatpush1.bf16.msra.mxu1 %v2525_v39  ;;  %v2609_v38 = vld [vmem:[#allocation3 + $0x2ec] ss:$16 sps:$4 sm:$0xff]   ;;  %v2604_v39 = vld [vmem:[#allocation3 + $0x2e0] ss:$16 sps:$4 sm:$0xff]  }
  0x3a   :  { %1283 = vmatprep.subr.bf16.mxu0 %v2526_v40  ;;  %1455 = vmatprep.subr.bf16.mxu1 %v2528_v41  ;;  %v2607_v40 = vld [vmem:[#allocation3 + $0x2e8] ss:$16 sps:$4 sm:$0xff]   ;;  %v2612_v41 = vld [vmem:[#allocation3 + $0x304] ss:$16 sps:$4 sm:$0xff]  }
  0x3d   :  { %1284 = vmatpush1.bf16.msra.mxu0 %v2530_v42  ;;  %1456 = vmatpush1.bf16.msra.mxu1 %v2531_v43  ;;  %v2615_v42 = vld [vmem:[#allocation3 + $0x30c] ss:$16 sps:$4 sm:$0xff]   ;;  %v2610_v43 = vld [vmem:[#allocation3 + $0x300] ss:$16 sps:$4 sm:$0xff]  }
  0x3e   :  { %1285 = vmatprep.subr.bf16.mxu0 %v2532_v44  ;;  %1457 = vmatprep.subr.bf16.mxu1 %v2534_v45  ;;  %v2613_v44 = vld [vmem:[#allocation3 + $0x308] ss:$16 sps:$4 sm:$0xff]   ;;  %v2618_v45 = vld [vmem:[#allocation3 + $0x324] ss:$16 sps:$4 sm:$0xff]  }
  0x41   :  { %1286 = vmatpush1.bf16.msra.mxu0 %v2536_v48  ;;  %1458 = vmatpush1.bf16.msra.mxu1 %v2537_v49  ;;  %v2619_v48 = vld [vmem:[#allocation3 + $0x328] ss:$16 sps:$4 sm:$0xff]   ;;  %v2624_v49 = vld [vmem:[#allocation3 + $0x344] ss:$16 sps:$4 sm:$0xff]  }
  0x42   :  { %1287 = vmatprep.subr.bf16.mxu0 %v2538_v51  ;;  %1459 = vmatprep.subr.bf16.mxu1 %v2540_v52  ;;  %v2622_v51 = vld [vmem:[#allocation3 + $0x340] ss:$16 sps:$4 sm:$0xff]   ;;  %v2625_v52 = vld [vmem:[#allocation3 + $0x348] ss:$16 sps:$4 sm:$0xff]  }
  0x45   :  { %1288 = vmatpush1.bf16.msra.mxu0 %v2542_v53  ;;  %1460 = vmatpush1.bf16.msra.mxu1 %v2543_v54  ;;  %v2630_v53 = vld [vmem:[#allocation3 + $0x364] ss:$16 sps:$4 sm:$0xff]   ;;  %v2633_v54 = vld [vmem:[#allocation3 + $0x36c] ss:$16 sps:$4 sm:$0xff]  }
  0x46   :  { %1289 = vmatprep.subr.bf16.mxu0 %v2544_v55  ;;  %1461 = vmatprep.subr.bf16.mxu1 %v2546_v56  ;;  %v2628_v55 = vld [vmem:[#allocation3 + $0x360] ss:$16 sps:$4 sm:$0xff]   ;;  %v2631_v56 = vld [vmem:[#allocation3 + $0x368] ss:$16 sps:$4 sm:$0xff]  }
  0x49   :  { %1290 = vmatpush1.bf16.msra.mxu0 %v2548_v57  ;;  %1462 = vmatpush1.bf16.msra.mxu1 %v2549_v58  ;;  %v2636_v57 = vld [vmem:[#allocation3 + $0x384] ss:$16 sps:$4 sm:$0xff]   ;;  %v2639_v58 = vld [vmem:[#allocation3 + $0x38c] ss:$16 sps:$4 sm:$0xff]  }
  0x4a   :  { %1291 = vmatprep.subr.bf16.mxu0 %v2550_v59  ;;  %1463 = vmatprep.subr.bf16.mxu1 %v2552_v60  ;;  %v2634_v59 = vld [vmem:[#allocation3 + $0x380] ss:$16 sps:$4 sm:$0xff]   ;;  %v2637_v60 = vld [vmem:[#allocation3 + $0x388] ss:$16 sps:$4 sm:$0xff]  }
  0x4d   :  { %1292 = vmatpush1.bf16.msra.mxu0 %v2554_v61  ;;  %1464 = vmatpush1.bf16.msra.mxu1 %v2555_v62  ;;  %v2642_v61 = vld [vmem:[#allocation3 + $0x3a4] ss:$16 sps:$4 sm:$0xff]   ;;  %v2645_v62 = vld [vmem:[#allocation3 + $0x3ac] ss:$16 sps:$4 sm:$0xff]  }
  0x4e   :  { %1293 = vmatprep.subr.bf16.mxu0 %v2556_v63  ;;  %1465 = vmatprep.subr.bf16.mxu1 %v2558_v0  ;;  %v2640_v63 = vld [vmem:[#allocation3 + $0x3a0] ss:$16 sps:$4 sm:$0xff]   ;;  %v2643_v0 = vld [vmem:[#allocation3 + $0x3a8] ss:$16 sps:$4 sm:$0xff]  }
  0x51   :  { %1294 = vmatpush1.bf16.msra.mxu0 %v2560_v1  ;;  %1466 = vmatpush1.bf16.msra.mxu1 %v2561_v2  ;;  %v2648_v1 = vld [vmem:[#allocation3 + $0x3c4] ss:$16 sps:$4 sm:$0xff]   ;;  %v2651_v2 = vld [vmem:[#allocation3 + $0x3cc] ss:$16 sps:$4 sm:$0xff]  }
  0x52   :  { %1306 = vmatprep.subr.bf16.mxu0 %v2564_v3  ;;  %1478 = vmatprep.subr.bf16.mxu1 %v2567_v6  ;;  %v2646_v3 = vld [vmem:[#allocation3 + $0x3c0] ss:$16 sps:$4 sm:$0xff]   ;;  %v2657_v6 = vld [vmem:[#allocation3 + $0x3ec] ss:$16 sps:$4 sm:$0xff]  }
  0x54   :  { %1296 = vmatmul.mubr.bf16.vlgmr.msra.gmra.mrb[0].mxu0 %v54_v9  ;;  %1468 = vmatmul.mubr.bf16.vlgmr.msra.gmra.mrb[0].mxu1 %v54_v9  ;;  %v2660_v9 = vld [vmem:[#allocation3 + $0x404] ss:$16 sps:$4 sm:$0xff]  }
  0x55   :  { %1307 = vmatpush1.bf16.msra.mxu0 %v2562_v7  ;;  %1479 = vmatpush1.bf16.msra.mxu1 %v2565_v8  ;;  %v2652_v7 = vld [vmem:[#allocation3 + $0x3e0] ss:$16 sps:$4 sm:$0xff]   ;;  %v2655_v8 = vld [vmem:[#allocation3 + $0x3e8] ss:$16 sps:$4 sm:$0xff]  }
  0x56   :  { %1308 = vmatprep.subr.bf16.mxu0 %v2570_v10  ;;  %1480 = vmatprep.subr.bf16.mxu1 %v2573_v11  ;;  %v42_v10 = vld [vmem:[%s3082_s1 + $0x10] sm:$0xff]  ;;  %v49_v11 = vld [vmem:[%s3082_s1 + $0x48] sm:$0xff] }
  0x57   :  { %1338 = vmatprep.mubr.bf16.mxu0 %v57_v36  ;;  %1510 = vmatprep.mubr.bf16.mxu1 %v57_v36  ;;  %v2690_v36 = vld [vmem:[#allocation3 + $0x4a4] ss:$16 sps:$4 sm:$0xff]  }
  0x59   :  { %1309 = vmatpush1.bf16.msra.mxu0 %v2568_v12  ;;  %1481 = vmatpush1.bf16.msra.mxu1 %v2571_v13  ;;  %v2663_v12 = vld [vmem:[#allocation3 + $0x40c] ss:$16 sps:$4 sm:$0xff]   ;;  %v2658_v13 = vld [vmem:[#allocation3 + $0x400] ss:$16 sps:$4 sm:$0xff]  }
  0x5a   :  { %1310 = vmatprep.subr.bf16.mxu0 %v2576_v14  ;;  %1482 = vmatprep.subr.bf16.mxu1 %v2579_v15  ;;  %v2661_v14 = vld [vmem:[#allocation3 + $0x408] ss:$16 sps:$4 sm:$0xff]   ;;  %v56_v15 = vpack.c.bf16 %v49_v11, %v42_v10 }
  0x5d   :  { %1311 = vmatpush1.bf16.msra.mxu0 %v2574_v16  ;;  %1483 = vmatpush1.bf16.msra.mxu1 %v2577_v17  ;;  %v2666_v16 = vld [vmem:[#allocation3 + $0x424] ss:$16 sps:$4 sm:$0xff]   ;;  %v2669_v17 = vld [vmem:[#allocation3 + $0x42c] ss:$16 sps:$4 sm:$0xff]  }
  0x5e   :  { %1312 = vmatprep.subr.bf16.mxu0 %v2582_v18  ;;  %1484 = vmatprep.subr.bf16.mxu1 %v2585_v19  ;;  %v45_v18 = vld [vmem:[%s3082_s1 + $0x28] sm:$0xff]  ;;  %v2664_v19 = vld [vmem:[#allocation3 + $0x420] ss:$16 sps:$4 sm:$0xff]  }
  0x61   :  { %1313 = vmatpush1.bf16.msra.mxu0 %v2580_v20  ;;  %1485 = vmatpush1.bf16.msra.mxu1 %v2583_v21  ;;  %v2667_v20 = vld [vmem:[#allocation3 + $0x428] ss:$16 sps:$4 sm:$0xff]   ;;  %v52_v21 = vld [vmem:[%s3082_s1 + $0x60] sm:$0xff] }
  0x62   :  { %1314 = vmatprep.subr.bf16.mxu0 %v2588_v22  ;;  %1486 = vmatprep.subr.bf16.mxu1 %v2591_v23  ;;  %v2672_v22 = vld [vmem:[#allocation3 + $0x444] ss:$16 sps:$4 sm:$0xff]   ;;  %v59_v23 = vpack.c.bf16 %v52_v21, %v45_v18  ;;  %v2729_v18 = vld [vmem:[#allocation3 + $0x56c] ss:$16 sps:$4 sm:$0xff]  }
  0x65   :  { %1315 = vmatpush1.bf16.msra.mxu0 %v2586_v24  ;;  %1487 = vmatpush1.bf16.msra.mxu1 %v2589_v25  ;;  %v2675_v24 = vld [vmem:[#allocation3 + $0x44c] ss:$16 sps:$4 sm:$0xff]   ;;  %v2670_v25 = vld [vmem:[#allocation3 + $0x440] ss:$16 sps:$4 sm:$0xff]  }
  0x66   :  { %1316 = vmatprep.subr.bf16.mxu0 %v2594_v26  ;;  %1488 = vmatprep.subr.bf16.mxu1 %v2597_v27  ;;  %v2673_v26 = vld [vmem:[#allocation3 + $0x448] ss:$16 sps:$4 sm:$0xff]   ;;  %v2678_v27 = vld [vmem:[#allocation3 + $0x464] ss:$16 sps:$4 sm:$0xff]  }
  0x69   :  { %1317 = vmatpush1.bf16.msra.mxu0 %v2592_v28  ;;  %1489 = vmatpush1.bf16.msra.mxu1 %v2595_v29  ;;  %v2681_v28 = vld [vmem:[#allocation3 + $0x46c] ss:$16 sps:$4 sm:$0xff]   ;;  %v2676_v29 = vld [vmem:[#allocation3 + $0x460] ss:$16 sps:$4 sm:$0xff]  }
  0x6a   :  { %1318 = vmatprep.subr.bf16.mxu0 %v2600_v30  ;;  %1490 = vmatprep.subr.bf16.mxu1 %v2603_v31  ;;  %v2679_v30 = vld [vmem:[#allocation3 + $0x468] ss:$16 sps:$4 sm:$0xff]   ;;  %v2684_v31 = vld [vmem:[#allocation3 + $0x484] ss:$16 sps:$4 sm:$0xff]  }
  0x6d   :  { %1319 = vmatpush1.bf16.msra.mxu0 %v2598_v34  ;;  %1491 = vmatpush1.bf16.msra.mxu1 %v2601_v35  ;;  %v259_v34 = vlaneseq  ;;  %v2685_v35 = vld [vmem:[#allocation3 + $0x488] ss:$16 sps:$4 sm:$0xff]  }
  0x6e   :  { %1320 = vmatprep.subr.bf16.mxu0 %v2606_v37  ;;  %1492 = vmatprep.subr.bf16.mxu1 %v2609_v38  ;;  %v2693_v37 = vld [vmem:[#allocation3 + $0x4ac] ss:$16 sps:$4 sm:$0xff]   ;;  %v2927_v38 = vstv %s3081_s0 }
  0x71   :  { %1321 = vmatpush1.bf16.msra.mxu0 %v2604_v39  ;;  %1493 = vmatpush1.bf16.msra.mxu1 %v2607_v40  ;;  %v2688_v39 = vld [vmem:[#allocation3 + $0x4a0] ss:$16 sps:$4 sm:$0xff]   ;;  %v2691_v40 = vld [vmem:[#allocation3 + $0x4a8] ss:$16 sps:$4 sm:$0xff]  }
  0x72   :  { %1322 = vmatprep.subr.bf16.mxu0 %v2612_v41  ;;  %1494 = vmatprep.subr.bf16.mxu1 %v2615_v42  ;;  %v1621_v41 = vadd.s32 %v2927_v38, %v259_v34  ;;  %v2696_v42 = vld [vmem:[#allocation3 + $0x4c4] ss:$16 sps:$4 sm:$0xff]  }
  0x75   :  { %1323 = vmatpush1.bf16.msra.mxu0 %v2610_v43  ;;  %1495 = vmatpush1.bf16.msra.mxu1 %v2613_v44  ;;  %v2699_v43 = vld [vmem:[#allocation3 + $0x4cc] ss:$16 sps:$4 sm:$0xff]   ;;  %v1623_v44 = vshll.u32 %v1621_v41, 13 }
  0x76   :  { %1324 = vmatprep.subr.bf16.mxu0 %v2618_v45  ;;  %1496 = vmatprep.subr.bf16.mxu1 %v2621_v46  ;;  %v1624_v45 = vshrl.u32 %v1621_v41, 19  ;;  %v2694_v46 = vld [vmem:[#allocation3 + $0x4c0] ss:$16 sps:$4 sm:$0xff]  }
  0x79   :  { %1325 = vmatpush1.bf16.msra.mxu0 %v2616_v47  ;;  %1497 = vmatpush1.bf16.msra.mxu1 %v2619_v48  ;;  %v1622_v47 = vadd.s32 %v1621_v41, %v1621_v41  ;;  %v2697_v48 = vld [vmem:[#allocation3 + $0x4c8] ss:$16 sps:$4 sm:$0xff]   ;;  %v2744_v41 = vld [vmem:[#allocation3 + $0x5c4] ss:$16 sps:$4 sm:$0xff]  }
  0x7a   :  { %1326 = vmatprep.subr.bf16.mxu0 %v2624_v49  ;;  %1498 = vmatprep.subr.bf16.mxu1 %v2627_v50  ;;  %v1625_v49 = vor.u32 %v1624_v45, %v1623_v44  ;;  %v2702_v50 = vld [vmem:[#allocation3 + $0x4e4] ss:$16 sps:$4 sm:$0xff]  }
  0x7d   :  { %1327 = vmatpush1.bf16.msra.mxu0 %v2622_v51  ;;  %1499 = vmatpush1.bf16.msra.mxu1 %v2625_v52  ;;  %v2705_v51 = vld [vmem:[#allocation3 + $0x4ec] ss:$16 sps:$4 sm:$0xff]   ;;  %v1626_v52 = vxor.u32 %v1625_v49, %v1622_v47  ;;  %v2750_v49 = vld [vmem:[#allocation3 + $0x5e4] ss:$16 sps:$4 sm:$0xff]  }
  0x7e   :  { %1328 = vmatprep.subr.bf16.mxu0 %v2630_v53  ;;  %1500 = vmatprep.subr.bf16.mxu1 %v2633_v54  ;;  %v2700_v53 = vld [vmem:[#allocation3 + $0x4e0] ss:$16 sps:$4 sm:$0xff]   ;;  %v2703_v54 = vld [vmem:[#allocation3 + $0x4e8] ss:$16 sps:$4 sm:$0xff]  }
  0x81   :  { %1329 = vmatpush1.bf16.msra.mxu0 %v2628_v55  ;;  %1501 = vmatpush1.bf16.msra.mxu1 %v2631_v56  ;;  %v2708_v55 = vld [vmem:[#allocation3 + $0x504] ss:$16 sps:$4 sm:$0xff]   ;;  %v2711_v56 = vld [vmem:[#allocation3 + $0x50c] ss:$16 sps:$4 sm:$0xff]  }
  0x82   :  { %1330 = vmatprep.subr.bf16.mxu0 %v2636_v57  ;;  %1502 = vmatprep.subr.bf16.mxu1 %v2639_v58  ;;  %v1628_v57 = vshll.u32 %v1626_v52, 15  ;;  %v1629_v58 = vshrl.u32 %v1626_v52, 17 }
  0x85   :  { %1331 = vmatpush1.bf16.msra.mxu0 %v2634_v59  ;;  %1503 = vmatpush1.bf16.msra.mxu1 %v2637_v60  ;;  %v1627_v59 = vadd.s32 %v1626_v52, %v1622_v47  ;;  %v1630_v60 = vor.u32 %v1629_v58, %v1628_v57  ;;  %v2745_v47 = vld [vmem:[#allocation3 + $0x5c8] ss:$16 sps:$4 sm:$0xff]   ;;  %v2748_v52 = vld [vmem:[#allocation3 + $0x5e0] ss:$16 sps:$4 sm:$0xff]   ;;  %v2756_v57 = vld [vmem:[#allocation3 + $0x604] ss:$16 sps:$4 sm:$0xff]  }
  0x86   :  { %1332 = vmatprep.subr.bf16.mxu0 %v2642_v61  ;;  %1504 = vmatprep.subr.bf16.mxu1 %v2645_v62  ;;  %v2706_v61 = vld [vmem:[#allocation3 + $0x500] ss:$16 sps:$4 sm:$0xff]   ;;  %v2709_v62 = vld [vmem:[#allocation3 + $0x508] ss:$16 sps:$4 sm:$0xff]   ;;  %v2759_v58 = vld [vmem:[#allocation3 + $0x60c] ss:$16 sps:$4 sm:$0xff]  }
  0x89   :  { %1333 = vmatpush1.bf16.msra.mxu0 %v2640_v63  ;;  %1505 = vmatpush1.bf16.msra.mxu1 %v2643_v0  ;;  %v2714_v63 = vld [vmem:[#allocation3 + $0x524] ss:$16 sps:$4 sm:$0xff]   ;;  %v2717_v0 = vld [vmem:[#allocation3 + $0x52c] ss:$16 sps:$4 sm:$0xff]  }
  0x8a   :  { %1334 = vmatprep.subr.bf16.mxu0 %v2648_v1  ;;  %1506 = vmatprep.subr.bf16.mxu1 %v2651_v2  ;;  %v1631_v1 = vxor.u32 %v1630_v60, %v1627_v59 }
  0x8c   :  { %v1633_v2 = vshll.u32 %v1631_v1, 26 }
  0x8d   :  { %1335 = vmatpush1.bf16.msra.mxu0 %v2646_v3  ;;  %1507 = vmatpush1.bf16.msra.mxu1 %v2649_v4  ;;  %v1634_v3 = vshrl.u32 %v1631_v1, 6  ;;  %v1632_v4 = vadd.s32 %v1631_v1, %v1627_v59  ;;  %v2757_v1 = vld [vmem:[#allocation3 + $0x608] ss:$16 sps:$4 sm:$0xff]  }
  0x8e   :  { %1336 = vmatprep.subr.bf16.mxu0 %v2654_v5  ;;  %1508 = vmatprep.subr.bf16.mxu1 %v2657_v6  ;;  %v2712_v6 = vld [vmem:[#allocation3 + $0x520] ss:$16 sps:$4 sm:$0xff]  }
  0x8f   :  { %v1635_v5 = vor.u32 %v1634_v3, %v1633_v2  ;;  %v2760_v3 = vld [vmem:[%s3085_s4 + $0x40] sm:$0xff]  }
  0x91   :  { %1337 = vmatpush1.bf16.msra.mxu0 %v2652_v7  ;;  %1509 = vmatpush1.bf16.msra.mxu1 %v2655_v8  ;;  %v2715_v7 = vld [vmem:[#allocation3 + $0x528] ss:$16 sps:$4 sm:$0xff]   ;;  %v2720_v8 = vld [vmem:[#allocation3 + $0x544] ss:$16 sps:$4 sm:$0xff]   ;;  %v1636_v10 = vxor.u32 %v1635_v5, %v1632_v4 }
  0x92   :  { %1349 = vmatprep.subr.bf16.mxu0 %v2660_v9  ;;  %1521 = vmatprep.subr.bf16.mxu1 %v2663_v12  ;;  %v2723_v9 = vld [vmem:[#allocation3 + $0x54c] ss:$16 sps:$4 sm:$0xff]  }
  0x93   :  { %v1638_v11 = vshll.u32 %v1636_v10, 6  ;;  %v1639_v12 = vshrl.u32 %v1636_v10, 26 }
  0x94   :  { %1339 = vmatmul.mubr.bf16.vlgmr.msra.gmra.mrb[0].mxu0 %v56_v15  ;;  %1511 = vmatmul.mubr.bf16.vlgmr.msra.gmra.mrb[0].mxu1 %v56_v15  ;;  %v1619_v15 = vxor.u32 %v2927_v38, %v2927_v38 }
  0x95   :  { %1350 = vmatpush1.bf16.msra.mxu0 %v2658_v13  ;;  %1522 = vmatpush1.bf16.msra.mxu1 %v2661_v14  ;;  %v2718_v13 = vld [vmem:[#allocation3 + $0x540] ss:$16 sps:$4 sm:$0xff]   ;;  %v2721_v14 = vld [vmem:[#allocation3 + $0x548] ss:$16 sps:$4 sm:$0xff]  }
  0x96   :  { %1351 = vmatprep.subr.bf16.mxu0 %v2666_v16  ;;  %1523 = vmatprep.subr.bf16.mxu1 %v2669_v17  ;;  %v1637_v16 = vadd.s32 %v1636_v10, %v1632_v4  ;;  %v2726_v17 = vld [vmem:[#allocation3 + $0x564] ss:$16 sps:$4 sm:$0xff]  }
  0x97   :  { %1381 = vmatprep.mubr.bf16.mxu0 %v59_v23  ;;  %1553 = vmatprep.mubr.bf16.mxu1 %v59_v23  ;;  %v2727_v23 = vld [vmem:[#allocation3 + $0x568] ss:$16 sps:$4 sm:$0xff]   ;;  %v2761_v4 = vld [vmem:[%s3085_s4 + $0xc0] sm:$0xff]  }
  0x99   :  { %1352 = vmatpush1.bf16.msra.mxu0 %v2664_v19  ;;  %1524 = vmatpush1.bf16.msra.mxu1 %v2667_v20  ;;  %v1640_v19 = vor.u32 %v1639_v12, %v1638_v11  ;;  %v2933_v20 = vxor.u32 466688986, %v1619_v15  ;;  %v46_v11 = vld [vmem:[%s3082_s1 + $0x30] sm:$0xff]  ;;  %v53_v12 = vld [vmem:[%s3082_s1 + $0x68] sm:$0xff] }
  0x9a   :  { %1353 = vmatprep.subr.bf16.mxu0 %v2672_v22  ;;  %1525 = vmatprep.subr.bf16.mxu1 %v2675_v24  ;;  %v2724_v22 = vld [vmem:[#allocation3 + $0x560] ss:$16 sps:$4 sm:$0xff]   ;;  %v2732_v24 = vld [vmem:[#allocation3 + $0x584] ss:$16 sps:$4 sm:$0xff]  }
  0x9b   :  { %v1641_v21 = vxor.u32 %v1640_v19, %v1637_v16  ;;  %v2764_v19 = vld [vmem:[%s3085_s4 + $0x48] sm:$0xff]  }
  0x9d   :  { %1354 = vmatpush1.bf16.msra.mxu0 %v2670_v25  ;;  %1526 = vmatpush1.bf16.msra.mxu1 %v2673_v26  ;;  %v2735_v25 = vld [vmem:[#allocation3 + $0x58c] ss:$16 sps:$4 sm:$0xff]   ;;  %v1643_v26 = vadd.s32 %v1641_v21, %v2933_v20 }
  0x9e   :  { %1355 = vmatprep.subr.bf16.mxu0 %v2678_v27  ;;  %1527 = vmatprep.subr.bf16.mxu1 %v2681_v28  ;;  %v2730_v28 = vld [vmem:[#allocation3 + $0x580] ss:$16 sps:$4 sm:$0xff]   ;;  %v2765_v21 = vld [vmem:[%s3085_s4 + $0xc8] sm:$0xff]  }
  0x9f   :  { %v1644_v27 = vadd.s32 1, %v1643_v26  ;;  %v2766_v26 = vld [vmem:[%s3085_s4 + $0x8] sm:$0xff]  }
  0xa1   :  { %1356 = vmatpush1.bf16.msra.mxu0 %v2676_v29  ;;  %1528 = vmatpush1.bf16.msra.mxu1 %v2679_v30  ;;  %v2733_v29 = vld [vmem:[#allocation3 + $0x588] ss:$16 sps:$4 sm:$0xff]   ;;  %v1642_v30 = vadd.s32 %v1637_v16, %v2927_v38  ;;  %v2762_v16 = vld [vmem:[%s3085_s4] sm:$0xff]  }
  0xa2   :  { %1357 = vmatprep.subr.bf16.mxu0 %v2684_v31  ;;  %1529 = vmatprep.subr.bf16.mxu1 %v2687_v32  ;;  %v2738_v31 = vld [vmem:[#allocation3 + $0x5a4] ss:$16 sps:$4 sm:$0xff]   ;;  %v2741_v32 = vld [vmem:[#allocation3 + $0x5ac] ss:$16 sps:$4 sm:$0xff]  }
  0xa5   :  { %1358 = vmatpush1.bf16.msra.mxu0 %v2682_v33  ;;  %1530 = vmatpush1.bf16.msra.mxu1 %v2685_v35  ;;  %v1646_v33 = vshll.u32 %v1644_v27, 17  ;;  %v1647_v35 = vshrl.u32 %v1644_v27, 15 }
  0xa6   :  { %1359 = vmatprep.subr.bf16.mxu0 %v2690_v36  ;;  %1531 = vmatprep.subr.bf16.mxu1 %v2693_v37  ;;  %v1645_v36 = vadd.s32 %v1644_v27, %v1642_v30  ;;  %v2767_v27 = vld [vmem:[%s3085_s4 + $0x88] sm:$0xff]  }
  0xa7   :  { %v1648_v37 = vor.u32 %v1647_v35, %v1646_v33  ;;  %v2770_v33 = vld [vmem:[%s3085_s4 + $0x10] sm:$0xff]  }
  0xa8   :  { %v2771_v35 = vld [vmem:[%s3085_s4 + $0x90] sm:$0xff]  }
  0xa9   :  { %1360 = vmatpush1.bf16.msra.mxu0 %v2688_v39  ;;  %1532 = vmatpush1.bf16.msra.mxu1 %v2691_v40  ;;  %v2736_v39 = vld [vmem:[#allocation3 + $0x5a0] ss:$16 sps:$4 sm:$0xff]   ;;  %v2739_v40 = vld [vmem:[#allocation3 + $0x5a8] ss:$16 sps:$4 sm:$0xff]  }
  0xaa   :  { %1361 = vmatprep.subr.bf16.mxu0 %v2696_v42  ;;  %1533 = vmatprep.subr.bf16.mxu1 %v2699_v43  ;;  %v2747_v42 = vld [vmem:[#allocation3 + $0x5cc] ss:$16 sps:$4 sm:$0xff]   ;;  %v1649_v43 = vxor.u32 %v1648_v37, %v1645_v36 }
  0xab   :  { %v2772_v37 = vld [vmem:[%s3085_s4 + $0x58] sm:$0xff]  }
  0xac   :  { %v1651_v44 = vshll.u32 %v1649_v43, 29  ;;  %v1652_v45 = vshrl.u32 %v1649_v43, 3 }
  0xad   :  { %1362 = vmatpush1.bf16.msra.mxu0 %v2694_v46  ;;  %1534 = vmatpush1.bf16.msra.mxu1 %v2697_v48  ;;  %v2742_v46 = vld [vmem:[#allocation3 + $0x5c0] ss:$16 sps:$4 sm:$0xff]   ;;  %v1650_v48 = vadd.s32 %v1649_v43, %v1645_v36  ;;  %v2775_v43 = vld [vmem:[%s3085_s4 + $0x98] sm:$0xff]  }
  0xae   :  { %1363 = vmatprep.subr.bf16.mxu0 %v2702_v50  ;;  %1535 = vmatprep.subr.bf16.mxu1 %v2705_v51  ;;  %v2753_v50 = vld [vmem:[#allocation3 + $0x5ec] ss:$16 sps:$4 sm:$0xff]   ;;  %v1653_v51 = vor.u32 %v1652_v45, %v1651_v44  ;;  %v2776_v44 = vld [vmem:[%s3085_s4 + $0x60] sm:$0xff]  }
  0xaf   :  { %v2777_v45 = vld [vmem:[%s3085_s4 + $0xe0] sm:$0xff]  }
  0xb1   :  { %1364 = vmatpush1.bf16.msra.mxu0 %v2700_v53  ;;  %1536 = vmatpush1.bf16.msra.mxu1 %v2703_v54  ;;  %v1654_v53 = vxor.u32 %v1653_v51, %v1650_v48  ;;  %v2751_v54 = vld [vmem:[#allocation3 + $0x5e8] ss:$16 sps:$4 sm:$0xff]   ;;  %v2779_v51 = vld [vmem:[%s3085_s4 + $0xa0] sm:$0xff]  }
  0xb2   :  { %1365 = vmatprep.subr.bf16.mxu0 %v2708_v55  ;;  %1537 = vmatprep.subr.bf16.mxu1 %v2711_v56  ;;  %v44_v55 = vld [vmem:[%s3082_s1 + $0x20] sm:$0xff]  ;;  %v51_v56 = vld [vmem:[%s3082_s1 + $0x58] sm:$0xff] }
  0xb3   :  { %v1656_v59 = vshll.u32 %v1654_v53, 16  ;;  %v1657_v60 = vshrl.u32 %v1654_v53, 16 }
  0xb5   :  { %1366 = vmatpush1.bf16.msra.mxu0 %v2706_v61  ;;  %1538 = vmatpush1.bf16.msra.mxu1 %v2709_v62  ;;  %v1655_v61 = vadd.s32 %v1654_v53, %v1650_v48  ;;  %v58_v62 = vpack.c.bf16 %v51_v56, %v44_v55 }
  0xb6   :  { %1367 = vmatprep.subr.bf16.mxu0 %v2714_v63  ;;  %1539 = vmatprep.subr.bf16.mxu1 %v2717_v0  ;;  %v1658_v63 = vor.u32 %v1657_v60, %v1656_v59  ;;  %v2754_v0 = vld [vmem:[#allocation3 + $0x600] ss:$16 sps:$4 sm:$0xff]  }
  0xb8   :  { %v1659_v2 = vxor.u32 %v1658_v63, %v1655_v61 }
  0xb9   :  { %1368 = vmatpush1.bf16.msra.mxu0 %v2712_v6  ;;  %1540 = vmatpush1.bf16.msra.mxu1 %v2715_v7 }
  0xba   :  { %1369 = vmatprep.subr.bf16.mxu0 %v2720_v8  ;;  %1541 = vmatprep.subr.bf16.mxu1 %v2723_v9  ;;  %v1661_v5 = vshll.u32 %v1659_v2, 24  ;;  %v1662_v6 = vshrl.u32 %v1659_v2, 8  ;;  %v1660_v7 = vadd.s32 %v1659_v2, %v1655_v61  ;;  %v2843_v8 = vmov 0  }
  0xbc   :  { %v1663_v9 = vor.u32 %v1662_v6, %v1661_v5 }
  0xbd   :  { %1370 = vmatpush1.bf16.msra.mxu0 %v2718_v13  ;;  %1542 = vmatpush1.bf16.msra.mxu1 %v2721_v14  ;;  %v60_v14 = vpack.c.bf16 %v53_v12, %v46_v11 }
  0xbe   :  { %1371 = vmatprep.subr.bf16.mxu0 %v2726_v17  ;;  %1543 = vmatprep.subr.bf16.mxu1 %v2729_v18  ;;  %v1664_v10 = vxor.u32 %v1663_v9, %v1660_v7  ;;  %v2763_v17 = vld [vmem:[%s3085_s4 + $0x80] sm:$0xff]   ;;  %v1665_v18 = vadd.s32 %v1660_v7, %v2933_v20 }
  0xc0   :  { %v1666_v13 = vadd.s32 %v1664_v10, %v2927_v38 }
  0xc1   :  { %1372 = vmatpush1.bf16.msra.mxu0 %v2724_v22  ;;  %1544 = vmatpush1.bf16.msra.mxu1 %v2727_v23 }
  0xc2   :  { %1373 = vmatprep.subr.bf16.mxu0 %v2732_v24  ;;  %1545 = vmatprep.subr.bf16.mxu1 %v2735_v25  ;;  %v1667_v15 = vadd.s32 2, %v1666_v13 }
  0xc4   :  { %v1669_v22 = vshll.u32 %v1667_v15, 13  ;;  %v1670_v23 = vshrl.u32 %v1667_v15, 19  ;;  %v1668_v24 = vadd.s32 %v1667_v15, %v1665_v18 }
  0xc5   :  { %1374 = vmatpush1.bf16.msra.mxu0 %v2730_v28  ;;  %1546 = vmatpush1.bf16.msra.mxu1 %v2733_v29  ;;  %v2768_v28 = vld [vmem:[%s3085_s4 + $0x50] sm:$0xff]  }
  0xc6   :  { %1375 = vmatprep.subr.bf16.mxu0 %v2738_v31  ;;  %1547 = vmatprep.subr.bf16.mxu1 %v2741_v32  ;;  %v1671_v25 = vor.u32 %v1670_v23, %v1669_v22  ;;  %v2769_v29 = vld [vmem:[%s3085_s4 + $0xd0] sm:$0xff]  }
  0xc8   :  { %v1672_v30 = vxor.u32 %v1671_v25, %v1668_v24 }
  0xc9   :  { %1376 = vmatpush1.bf16.msra.mxu0 %v2736_v39  ;;  %1548 = vmatpush1.bf16.msra.mxu1 %v2739_v40  ;;  %v2773_v39 = vld [vmem:[%s3085_s4 + $0xd8] sm:$0xff]  }
  0xca   :  { %1377 = vmatprep.subr.bf16.mxu0 %v2744_v41  ;;  %1549 = vmatprep.subr.bf16.mxu1 %v2747_v42  ;;  %v1674_v31 = vshll.u32 %v1672_v30, 15  ;;  %v1675_v32 = vshrl.u32 %v1672_v30, 17  ;;  %v1673_v36 = vadd.s32 %v1672_v30, %v1668_v24  ;;  %v2774_v42 = vld [vmem:[%s3085_s4 + $0x18] sm:$0xff]  }
  0xcc   :  { %v1676_v40 = vor.u32 %v1675_v32, %v1674_v31 }
  0xcd   :  { %1378 = vmatpush1.bf16.msra.mxu0 %v2742_v46  ;;  %1550 = vmatpush1.bf16.msra.mxu1 %v2745_v47 }
  0xce   :  { %1379 = vmatprep.subr.bf16.mxu0 %v2750_v49  ;;  %1551 = vmatprep.subr.bf16.mxu1 %v2753_v50  ;;  %v1677_v41 = vxor.u32 %v1676_v40, %v1673_v36  ;;  %v2778_v50 = vld [vmem:[%s3085_s4 + $0x20] sm:$0xff]  }
  0xd0   :  { %v1679_v46 = vshll.u32 %v1677_v41, 26  ;;  %v1680_v47 = vshrl.u32 %v1677_v41, 6  ;;  %v1678_v48 = vadd.s32 %v1677_v41, %v1673_v36 }
  0xd1   :  { %1380 = vmatpush1.bf16.msra.mxu0 %v2748_v52  ;;  %1552 = vmatpush1.bf16.msra.mxu1 %v2751_v54 }
  0xd2   :  { %1392 = vmatprep.subr.bf16.mxu0 %v2756_v57  ;;  %1564 = vmatprep.subr.bf16.mxu1 %v2759_v58  ;;  %v1681_v49 = vor.u32 %v1680_v47, %v1679_v46  ;;  %v2780_v47 = vld [vmem:[%s3085_s4 + $0x68] sm:$0xff]  }
  0xd4   :  { %1382 = vmatmul.mubr.bf16.vlgmr.msra.gmra.mrb[0].mxu0 %v58_v62  ;;  %1554 = vmatmul.mubr.bf16.vlgmr.msra.gmra.mrb[0].mxu1 %v58_v62  ;;  %v1682_v52 = vxor.u32 %v1681_v49, %v1678_v48  ;;  %v2782_v49 = vld [vmem:[%s3085_s4 + $0x28] sm:$0xff]  }
  0xd5   :  { %1393 = vmatpush1.bf16.msra.mxu0 %v2754_v0  ;;  %1565 = vmatpush1.bf16.msra.mxu1 %v2757_v1 }
  0xd6   :  { %1424 = vmatprep.mubr.bf16.mxu0 %v2843_v8  ;;  %1596 = vmatprep.mubr.bf16.mxu1 %v2843_v8  ;;  %v1684_v53 = vshll.u32 %v1682_v52, 6  ;;  %v1685_v54 = vshrl.u32 %v1682_v52, 26  ;;  %v1683_v55 = vadd.s32 %v1682_v52, %v1678_v48  ;;  %v2781_v48 = vld [vmem:[%s3085_s4 + $0xe8] sm:$0xff]   ;;  %v2787_v52 = vld [vmem:[%s3085_s4 + $0xb0] sm:$0xff]  }
  0xd7   :  { %2383 = vmatprep.subr.bf16.mxu0 %v2760_v3  ;;  %2405 = vmatprep.subr.bf16.mxu1 %v2761_v4 }
  0xd8   :  { %v1686_v56 = vor.u32 %v1685_v54, %v1684_v53  ;;  %v1688_v60 = vadd.s32 %v1683_v55, %v2927_v38  ;;  %v2788_v53 = vld [vmem:[%s3085_s4 + $0x78] sm:$0xff]  }
  0xd9   :  { %v2789_v54 = vld [vmem:[%s3085_s4 + $0xf8] sm:$0xff]  }
  0xda   :  { %v1687_v57 = vxor.u32 %v1686_v56, %v1683_v55  ;;  %v2790_v55 = vld [vmem:[%s3085_s4 + $0x38] sm:$0xff]  }
  0xdb   :  { %v2791_v56 = vld [vmem:[%s3085_s4 + $0xb8] sm:$0xff]  }
  0xdc   :  { %v1689_v58 = vadd.s32 %v1687_v57, %v2927_v38 }
  0xde   :  { %v1690_v59 = vadd.s32 3, %v1689_v58 }
  0xe0   :  { %2336 = vmatmul.mubr.msk.bf16.vlgmr.msra.gmra.mrb[0].mxu0 %vm1259_vm0, %v60_v14  ;;  %2337 = vmatmul.mubr.msk.bf16.vlgmr.msra.gmra.mrb[0].mxu1 %vm1259_vm0, %v60_v14  ;;  %v1692_v61 = vshll.u32 %v1690_v59, 17  ;;  %v1693_v62 = vshrl.u32 %v1690_v59, 15  ;;  %v1691_v63 = vadd.s32 %v1690_v59, %v1688_v60  ;;  %v260_v60 = vshrl.u32 %v259_v34, 7 }
  0xe1   :  { %2384 = vmatpush3.bf16.msra.mxu0 %v2762_v16  ;;  %2406 = vmatpush3.bf16.msra.mxu1 %v2763_v17 }
  0xe2   :  { %2385 = vmatprep.subr.bf16.mxu0 %v2764_v19  ;;  %2407 = vmatprep.subr.bf16.mxu1 %v2765_v21  ;;  %v1694_v0 = vor.u32 %v1693_v62, %v1692_v61  ;;  %v261_v62 = vsub.s32 0, %v260_v60 }
  0xe4   :  { %v1695_v1 = vxor.u32 %v1694_v0, %v1691_v63  ;;  %v257_v0 = vld [vmem:[%s3084_s3] sm:$0xf] }
  0xe5   :  { %2386 = vmatpush3.bf16.msra.mxu0 %v2766_v26  ;;  %2408 = vmatpush3.bf16.msra.mxu1 %v2767_v27 }
  0xe6   :  { %2387 = vmatprep.subr.bf16.mxu0 %v2768_v28  ;;  %2409 = vmatprep.subr.bf16.mxu1 %v2769_v29  ;;  %v1697_v2 = vshll.u32 %v1695_v1, 29  ;;  %v1698_v3 = vshrl.u32 %v1695_v1, 3  ;;  %v1696_v4 = vadd.s32 %v1695_v1, %v1691_v63  ;;  %v269_v63 = vsub.s32 2, %v260_v60 }
  0xe7   :  { %v265_v1 = vsub.s32 1, %v260_v60 }
  0xe8   :  { %v1699_v5 = vor.u32 %v1698_v3, %v1697_v2  ;;  %v273_v2 = vsub.s32 3, %v260_v60 }
  0xe9   :  { %2388 = vmatpush3.bf16.msra.mxu0 %v2770_v33  ;;  %2410 = vmatpush3.bf16.msra.mxu1 %v2771_v35 }
  0xea   :  { %2389 = vmatprep.subr.bf16.mxu0 %v2772_v37  ;;  %2411 = vmatprep.subr.bf16.mxu1 %v2773_v39  ;;  %v1700_v6 = vxor.u32 %v1699_v5, %v1696_v4  ;;  %v270_v5 = vrot.slane %v257_v0, %v269_v63 }
  0xec   :  { %v1702_v7 = vshll.u32 %v1700_v6, 16  ;;  %v1703_v8 = vshrl.u32 %v1700_v6, 16  ;;  %v1701_v9 = vadd.s32 %v1700_v6, %v1696_v4  ;;  %v262_v4 = vrot.slane %v257_v0, %v261_v62 }
  0xed   :  { %2390 = vmatpush3.bf16.msra.mxu0 %v2774_v42  ;;  %2412 = vmatpush3.bf16.msra.mxu1 %v2775_v43 }
  0xee   :  { %2391 = vmatprep.subr.bf16.mxu0 %v2776_v44  ;;  %2413 = vmatprep.subr.bf16.mxu1 %v2777_v45  ;;  %v1704_v10 = vor.u32 %v1703_v8, %v1702_v7  ;;  %v266_v7 = vrot.slane %v257_v0, %v265_v1  ;;  %v274_v8 = vrot.slane %v257_v0, %v273_v2 }
  0xf0   :  { %v1705_v11 = vxor.u32 %v1704_v10, %v1701_v9 }
  0xf1   :  { %2392 = vmatpush3.bf16.msra.mxu0 %v2778_v50  ;;  %2414 = vmatpush3.bf16.msra.mxu1 %v2779_v51  ;;  %v2785_v50 = vld [vmem:[%s3085_s4 + $0xf0] sm:$0xff]  }
  0xf2   :  { %v1707_v12 = vshll.u32 %v1705_v11, 24  ;;  %v1708_v13 = vshrl.u32 %v1705_v11, 8  ;;  %v1706_v14 = vadd.s32 %v1705_v11, %v1701_v9  ;;  %2393 = vmatprep.subr.bf16.mxu0 %v2780_v47  ;;  %2415 = vmatprep.subr.bf16.mxu1 %v2781_v48  ;;  %v2786_v51 = vld [vmem:[%s3085_s4 + $0x30] sm:$0xff]  }
  0xf4   :  { %v1709_v15 = vor.u32 %v1708_v13, %v1707_v12  ;;  %v1711_v19 = vadd.s32 %v1706_v14, %v2927_v38 }
  0xf5   :  { %2394 = vmatpush3.bf16.msra.mxu0 %v2782_v49 }
  0xf6   :  { %v1710_v16 = vxor.u32 %v1709_v15, %v1706_v14 }
  0xf8   :  { %v1712_v17 = vadd.s32 %v1710_v16, %v2933_v20 }
  0xfa   :  { %v1713_v18 = vadd.s32 4, %v1712_v17 }
  0xfc   :  { %v1715_v21 = vshll.u32 %v1713_v18, 13  ;;  %v1716_v22 = vshrl.u32 %v1713_v18, 19  ;;  %v1714_v23 = vadd.s32 %v1713_v18, %v1711_v19 }
  0xfe   :  { %v1717_v24 = vor.u32 %v1716_v22, %v1715_v21 }
 0x100   :  { %v1718_v25 = vxor.u32 %v1717_v24, %v1714_v23 }
 0x102   :  { %v1720_v26 = vshll.u32 %v1718_v25, 15  ;;  %v1721_v27 = vshrl.u32 %v1718_v25, 17  ;;  %v1719_v28 = vadd.s32 %v1718_v25, %v1714_v23 }
 0x104   :  { %v1722_v29 = vor.u32 %v1721_v27, %v1720_v26 }
 0x106   :  { %v1723_v30 = vxor.u32 %v1722_v29, %v1719_v28 }
 0x108   :  { %v1725_v31 = vshll.u32 %v1723_v30, 26  ;;  %v1726_v32 = vshrl.u32 %v1723_v30, 6  ;;  %v1724_v33 = vadd.s32 %v1723_v30, %v1719_v28 }
 0x10a   :  { %v1727_v35 = vor.u32 %v1726_v32, %v1725_v31 }
 0x10c   :  { %v1728_v36 = vxor.u32 %v1727_v35, %v1724_v33 }
 0x10e   :  { %v1730_v37 = vshll.u32 %v1728_v36, 6  ;;  %v1731_v39 = vshrl.u32 %v1728_v36, 26  ;;  %v1729_v40 = vadd.s32 %v1728_v36, %v1724_v33 }
 0x110   :  { %v1732_v41 = vor.u32 %v1731_v39, %v1730_v37  ;;  %v1734_v44 = vadd.s32 %v1729_v40, %v2933_v20  ;;  %v2784_v20 = vld [vmem:[%s3085_s4 + $0x70] sm:$0xff]  }
 0x111   :  { %2395 = vmatprep.subr.bf16.mxu0 %v2784_v20  ;;  %v2338_v20 = vld [vmem:[%s3086_s5] ss:$0 sm:$0xff]  ;;  %s2814_s5 = scalar_lea.vmem %s2129_s26, 256 }
 0x112   :  { %v1733_v42 = vxor.u32 %v1732_v41, %v1729_v40  ;;  %2396 = vmatpush3.bf16.msra.mxu0 %v2786_v51  ;;  %p2815_p8 = scmp.ne.s32.totalorder %s2129_s26, %s2814_s5  ;;  %p2820_p10 = scmp.lt.s32.totalorder %s2814_s5, %s2814_s5 }
 0x113   :  { %2397 = vmatprep.subr.bf16.mxu0 %v2788_v53 }
 0x114   :  { %v1735_v43 = vadd.s32 %v1733_v42, %v2927_v38  ;;  %v2783_v38 = vld [vmem:[%s3085_s4 + $0xa8] sm:$0xff]   ;;  %p2821_p11 = por %p2820_p10, %p2819_p9 }
 0x115   :  { %2416 = vmatpush3.bf16.msra.mxu1 %v2783_v38 }
 0x116   :  { %v1736_v45 = vadd.s32 5, %v1735_v43  ;;  %2417 = vmatprep.subr.bf16.mxu1 %v2785_v50  ;;  %2398 = vmatpush3.bf16.msra.mxu0 %v2790_v55  ;;  %p2822_p12 = pnand %p2821_p11, %p2815_p8 }
 0x118   :  { %v1737_v46 = vxor.u32 %v1736_v45, %v1734_v44 }
 0x119   :  { %2418 = vmatpush3.bf16.msra.mxu1 %v2787_v52 }
 0x11a   :  { %1738 = set.rngseed %v1737_v46  ;;  %2419 = vmatprep.subr.bf16.mxu1 %v2789_v54 }
 0x11b   :  { %v1739_v57 = vrng }
 0x11c   :  { %v1740_v58 = vrng  ;;  %vm1747_vm1 = vcmp.ge.u32.totalorder %v1739_v57, 858993459 }
 0x11d   :  { %2420 = vmatpush3.bf16.msra.mxu1 %v2791_v56  ;;  %v3053_v59 = vrng  ;;  %vm1748_vm2 = vcmp.ge.u32.totalorder %v1740_v58, 858993459 }
 0x11e   :  { %v1742_v61 = vrng  ;;  %vm1749_vm7 = vcmp.ge.u32.totalorder %v3053_v59, 858993459 }
 0x11f   :  { %v1743_v3 = vrng  ;;  %vm1750_vm3 = vcmp.ge.u32.totalorder %v1742_v61, 858993459 }
 0x120   :  { %v1744_v6 = vrng  ;;  %vm1751_vm4 = vcmp.ge.u32.totalorder %v1743_v3, 858993459 }
 0x121   :  { %v1745_v11 = vrng  ;;  %vm1752_vm5 = vcmp.ge.u32.totalorder %v1744_v6, 858993459 }
 0x122   :  { %v1746_v26 = vrng  ;;  %vm1753_vm9 = vcmp.ge.u32.totalorder %v1745_v11, 858993459 }
 0x123   :  { %vm1754_vm6 = vcmp.ge.u32.totalorder %v1746_v26, 858993459  ;;  %vm2374_vm8 = vmpackc.low %vm1751_vm4, %vm1747_vm1 }
 0x124   :  { %vm2371_vm10 = vmpackc.low %vm1752_vm5, %vm1748_vm2 }
 0x125   :  { %vm2377_vm11 = vmpackc.low %vm1754_vm6, %vm1750_vm3 }
 0x126   :  { %vm2380_vm12 = vmpackc.low %vm1753_vm9, %vm1749_vm7 }
 0x1b3   :  { %v1426_v9 = vpop.f32.mrb[0].mxu0  ;;  %v1598_v10 = vpop.f32.mrb[0].mxu1 }
 0x1b4   :  { %v2427_v12 = vadd.f32 %v1426_v9, %v262_v4  ;;  %v2431_v34 = vadd.f32 %v1598_v10, %v270_v5  ;;  %v1428_v13 = vpop.f32.mrb[1].mxu0  ;;  %v1600_v14 = vpop.f32.mrb[1].mxu1 }
 0x1b5   :  { %v2428_v15 = vadd.f32 %v1428_v13, %v266_v7  ;;  %v2432_v16 = vadd.f32 %v1600_v14, %v274_v8  ;;  %v1430_v17 = vpop.f32.mrb[2].mxu0  ;;  %v1602_v18 = vpop.f32.mrb[2].mxu1 }
 0x1b6   :  { %v1607_v19 = vmax.f32 %v2427_v12, 0.0  ;;  %v1609_v21 = vmax.f32 %v2431_v34, 0.0  ;;  %v2429_v22 = vadd.f32 %v1430_v17, %v262_v4  ;;  %v2433_v23 = vadd.f32 %v1602_v18, %v270_v5  ;;  %v1432_v24 = vpop.f32.mrb[3].mxu0  ;;  %v1604_v25 = vpop.f32.mrb[3].mxu1 }
 0x1b7   :  { %v1608_v27 = vmax.f32 %v2428_v15, 0.0  ;;  %v1610_v28 = vmax.f32 %v2432_v16, 0.0  ;;  %v2430_v29 = vadd.f32 %v1432_v24, %v266_v7  ;;  %v2434_v30 = vadd.f32 %v1604_v25, %v274_v8 }
 0x1b8   :  { %v1611_v31 = vmax.f32 %v2429_v22, 0.0  ;;  %v1613_v32 = vmax.f32 %v2433_v23, 0.0  ;;  %v1755_v36 = vmul.f32 1.25, %v1607_v19  ;;  %v1757_v37 = vmul.f32 1.25, %v1609_v21 }
 0x1b9   :  { %v1612_v33 = vmax.f32 %v2430_v29, 0.0  ;;  %v1614_v35 = vmax.f32 %v2434_v30, 0.0  ;;  %v1756_v41 = vmul.f32 1.25, %v1608_v27  ;;  %v1758_v42 = vmul.f32 1.25, %v1610_v28 }
 0x1ba   :  { %v1759_v39 = vmul.f32 1.25, %v1611_v31  ;;  %v1761_v40 = vmul.f32 1.25, %v1613_v32 }
 0x1bb   :  { %v1760_v43 = vmul.f32 1.25, %v1612_v33  ;;  %v1762_v44 = vmul.f32 1.25, %v1614_v35 }
 0x1bc   :  { %v2375_v45 = vpack.c.bf16 %v1759_v39, %v1755_v36  ;;  %v2381_v46 = vpack.c.bf16 %v1761_v40, %v1757_v37 }
 0x1bd   :  { %v2372_v47 = vpack.c.bf16 %v1760_v43, %v1756_v41  ;;  %v2378_v48 = vpack.c.bf16 %v1762_v44, %v1758_v42 }
 0x1bf   :  { %2373 = vmatprep.mubr.msk.bf16.mxu0 %vm2371_vm10, %v2372_v47  ;;  %2379 = vmatprep.mubr.msk.bf16.mxu1 %vm2377_vm11, %v2378_v48 }
 0x1c0   :  { %2376 = vmatmul.mubr.msk.bf16.vlgmr.msra.gmra.mrb[4].mxu0 %vm2374_vm8, %v2375_v45  ;;  %2382 = vmatmul.mubr.msk.bf16.vlgmr.msra.gmra.mrb[4].mxu1 %vm2380_vm12, %v2381_v46 }
 0x293   :  { %v2399_v49 = vpop.f32.mrb[4].mxu0  ;;  %v2421_v38 = vpop.f32.mrb[4].mxu1 }
 0x294   :  { %v2400_v50 = vpop.f32.mrb[5].mxu0  ;;  %v2422_v51 = vpop.f32.mrb[5].mxu1 }
 0x295   :  { %v2401_v52 = vadd.f32 %v2400_v50, %v2399_v49  ;;  %v2423_v53 = vadd.f32 %v2422_v51, %v2421_v38  ;;  %v2402_v54 = vpop.f32.mrb[6].mxu0  ;;  %v2424_v55 = vpop.f32.mrb[6].mxu1 }
 0x296   :  { %v2403_v56 = vpop.f32.mrb[7].mxu0  ;;  %v2425_v57 = vpop.f32.mrb[7].mxu1 }
 0x297   :  { %v2073_v58 = vadd.f32 %v2401_v52, %v2338_v20  ;;  %v2404_v59 = vadd.f32 %v2403_v56, %v2402_v54  ;;  %v2426_v60 = vadd.f32 %v2425_v57, %v2424_v55 }
 0x299   :  { %v2114_v61 = vadd.f32 %v2423_v53, %v2073_v58  ;;  %v2076_v62 = vadd.f32 %v2404_v59, %v2338_v20 }
 0x29b   :  { %2121 = vst.msk [vmem:[#allocation6] sm:$0xff] %vm2120_vm13, %v2114_v61  ;;  %v2117_v63 = vadd.f32 %v2426_v60, %v2076_v62 }
 0x29d   :  { %2122 = vst.msk [vmem:[#allocation6 + $0x8] sm:$0xff] %vm2120_vm13, %v2117_v63 }
 0x29e   :  { %2825 = shalt.err (!%p2822_p12)
}
 0x29f   :  { %s2826_s29 = scalar_lea.hbm %s3087_s6, 256 }
 0x2a0   :  { %p2827_p13 = scmp.ne.s32.totalorder %s3087_s6, %s2826_s29  ;;  %p2830_p0 = scmp.lt.u32.totalorder %s2826_s29, %s3087_s6 }
 0x2a2   :  { %p2832_p1 = pnand %p2830_p0, %p2827_p13 }
 0x2a4   :  { %2835 = shalt.err (!%p2832_p1)
}
 0x2a5   :  { %s2845_s9 = smov 128   ;;  %s2846_s10 = smov 8  }
 0x2a6   :  { %2134 = dma.vmem_to_hbm [thread:$0]  %s2129_s26, 256, %s3087_s6, [#allocation5], %s2845_s9, %s2845_s9, %s2846_s10  }
 0x2a7   :  { %2838 = dma.done.wait [#allocation5], 256  }
 0x2a8   :  { %2839 = vsyncadd [#allocation5], 4294967040 }
 0x2a9   :  { %2138 = vsyncpa [#allocation4], 1 }
 0x2aa   :  { %2139 = vsyncpa [#allocation5], 1 }

// kernel: tpu_custom_call.1
= control target key start
LH: loop header
LB: loop body
LE: loop exit
PB: predicated region body
PF: predicated region fallthrough
CT: control target
= control target key end

     0   :  { %11 = vsyncpa [#allocation3], 0  ;;  %s2957_s0 = inlined_call_operand.vmem [shape: f32[16,784], index: 0, kind: input, shape index: {}]   ;;  %s2958_s1 = inlined_call_operand.hbm [shape: bf16[784,512], index: 1, kind: input, shape index: {}]   ;;  %s2959_s2 = inlined_call_operand.vmem [shape: f32[1,512], index: 2, kind: input, shape index: {}]   ;;  %s2960_s3 = inlined_call_operand.vmem [shape: bf16[512,10], index: 3, kind: input, shape index: {}]   ;;  %s2961_s4 = inlined_call_operand.vmem [shape: f32[1,10], index: 4, kind: input, shape index: {}]   ;;  %s2962_s5 = inlined_call_operand.vmem [shape: u32[16,512], index: 5, kind: input, shape index: {}]   ;;  %s2963_s6 = inlined_call_operand.hbm [shape: f32[16,10], index: 6, kind: output, shape index: {}]  }
   0x1   :  { %12 = vsyncpa [#allocation4], 0  ;;  %s2715_s21 = smov [#allocation2]   ;;  %s2667_s25 = scalar_lea.hbm %s2958_s1, 25088 }
   0x2   :  { %s20_s22 = sshll.u32 %s2715_s21, 4  ;;  %p2668_p0 = scmp.ne.s32.totalorder %s2958_s1, %s2667_s25  ;;  %s21_s22 = int_to_ptr.vmem [resolvable:$true] %s20_s22 }
   0x3   :  { %p2671_p1 = scmp.lt.u32.totalorder %s2667_s25, %s2958_s1 }
   0x5   :  { %p2673_p2 = pnand %p2671_p1, %p2668_p0 }
   0x7   :  { %2676 = shalt.err (!%p2673_p2)
}
   0x8   :  { %s2677_s30 = scalar_lea.vmem %s21_s22, 25088  ;;  %p2682_p4 = scmp.lt.s32.totalorder %s21_s22, %s21_s22 }
   0x9   :  { %p2678_p3 = scmp.ne.s32.totalorder %s21_s22, %s2677_s30  ;;  %p2683_p5 = scmp.lt.s32.totalorder %s2677_s30, %s2677_s30 }
   0xb   :  { %p2684_p6 = por %p2683_p5, %p2682_p4 }
   0xd   :  { %p2685_p7 = pnand %p2684_p6, %p2678_p3 }
   0xf   :  { %2688 = shalt.err (!%p2685_p7)
}
  0x10   :  { %s2716_s7 = smov 256   ;;  %s2717_s8 = smov 16  }
  0x11   :  { %26 = dma.hbm_to_vmem [thread:$0]  %s2958_s1, 25088, %s21_s22, [#allocation3], %s2716_s7, %s2716_s7, %s2717_s8  }
  0x12   :  { %2711 = dma.done.wait [#allocation3], 25088  }
  0x13   :  { %2712 = vsyncadd [#allocation3], 4294942208  ;;  %v2341_v0 = vld [vmem:[#allocation2 + $0x4] ss:$16 sps:$4 sm:$0xff]   ;;  %v2343_v1 = vld [vmem:[#allocation2 + $0xc] ss:$16 sps:$4 sm:$0xff]  }
  0x14   :  { %1262 = vmatprep.subr.bf16.mxu0 %v2341_v0  ;;  %v2345_v2 = vld [vmem:[#allocation2] ss:$16 sps:$4 sm:$0xff]   ;;  %v2346_v3 = vld [vmem:[#allocation2 + $0x8] ss:$16 sps:$4 sm:$0xff]   ;;  %1434 = vmatprep.subr.bf16.mxu1 %v2343_v1  ;;  %v2347_v4 = vld [vmem:[#allocation2 + $0x24] ss:$16 sps:$4 sm:$0xff]  }
  0x15   :  { %1263 = vmatpush1.bf16.msra.mxu0 %v2345_v2  ;;  %1435 = vmatpush1.bf16.msra.mxu1 %v2346_v3  ;;  %v2349_v5 = vld [vmem:[#allocation2 + $0x2c] ss:$16 sps:$4 sm:$0xff]   ;;  %v2351_v6 = vld [vmem:[#allocation2 + $0x20] ss:$16 sps:$4 sm:$0xff]   ;;  %v2352_v7 = vld [vmem:[#allocation2 + $0x28] ss:$16 sps:$4 sm:$0xff]  }
  0x16   :  { %1264 = vmatprep.subr.bf16.mxu0 %v2347_v4  ;;  %1436 = vmatprep.subr.bf16.mxu1 %v2349_v5  ;;  %v2353_v8 = vld [vmem:[#allocation2 + $0x44] ss:$16 sps:$4 sm:$0xff]   ;;  %v2355_v9 = vld [vmem:[#allocation2 + $0x4c] ss:$16 sps:$4 sm:$0xff]   ;;  %v2357_v10 = vld [vmem:[#allocation2 + $0x40] ss:$16 sps:$4 sm:$0xff]  }
  0x17   :  { %v2358_v11 = vld [vmem:[#allocation2 + $0x48] ss:$16 sps:$4 sm:$0xff]   ;;  %v2359_v12 = vld [vmem:[#allocation2 + $0x64] ss:$16 sps:$4 sm:$0xff]   ;;  %v2361_v13 = vld [vmem:[#allocation2 + $0x6c] ss:$16 sps:$4 sm:$0xff]  }
  0x18   :  { %v2363_v14 = vld [vmem:[#allocation2 + $0x60] ss:$16 sps:$4 sm:$0xff]   ;;  %v2364_v15 = vld [vmem:[#allocation2 + $0x68] ss:$16 sps:$4 sm:$0xff]   ;;  %v2365_v16 = vld [vmem:[#allocation2 + $0x84] ss:$16 sps:$4 sm:$0xff]  }
  0x19   :  { %1265 = vmatpush1.bf16.msra.mxu0 %v2351_v6  ;;  %1437 = vmatpush1.bf16.msra.mxu1 %v2352_v7  ;;  %v2367_v17 = vld [vmem:[#allocation2 + $0x8c] ss:$16 sps:$4 sm:$0xff]   ;;  %v2369_v18 = vld [vmem:[#allocation2 + $0x80] ss:$16 sps:$4 sm:$0xff]   ;;  %v2370_v19 = vld [vmem:[#allocation2 + $0x88] ss:$16 sps:$4 sm:$0xff]  }
  0x1a   :  { %1266 = vmatprep.subr.bf16.mxu0 %v2353_v8  ;;  %1438 = vmatprep.subr.bf16.mxu1 %v2355_v9  ;;  %v2371_v20 = vld [vmem:[#allocation2 + $0xa4] ss:$16 sps:$4 sm:$0xff]   ;;  %v2373_v21 = vld [vmem:[#allocation2 + $0xac] ss:$16 sps:$4 sm:$0xff]   ;;  %v2375_v22 = vld [vmem:[#allocation2 + $0xa0] ss:$16 sps:$4 sm:$0xff]  }
  0x1b   :  { %v2376_v23 = vld [vmem:[#allocation2 + $0xa8] ss:$16 sps:$4 sm:$0xff]   ;;  %v2377_v24 = vld [vmem:[#allocation2 + $0xc4] ss:$16 sps:$4 sm:$0xff]   ;;  %v2379_v25 = vld [vmem:[#allocation2 + $0xcc] ss:$16 sps:$4 sm:$0xff]  }
  0x1c   :  { %v2381_v26 = vld [vmem:[#allocation2 + $0xc0] ss:$16 sps:$4 sm:$0xff]   ;;  %v2382_v27 = vld [vmem:[#allocation2 + $0xc8] ss:$16 sps:$4 sm:$0xff]   ;;  %v2383_v28 = vld [vmem:[#allocation2 + $0xe4] ss:$16 sps:$4 sm:$0xff]  }
  0x1d   :  { %1267 = vmatpush1.bf16.msra.mxu0 %v2357_v10  ;;  %1439 = vmatpush1.bf16.msra.mxu1 %v2358_v11  ;;  %v2385_v29 = vld [vmem:[#allocation2 + $0xec] ss:$16 sps:$4 sm:$0xff]   ;;  %v2387_v30 = vld [vmem:[#allocation2 + $0xe0] ss:$16 sps:$4 sm:$0xff]   ;;  %v2388_v31 = vld [vmem:[#allocation2 + $0xe8] ss:$16 sps:$4 sm:$0xff]  }
  0x1e   :  { %1268 = vmatprep.subr.bf16.mxu0 %v2359_v12  ;;  %1440 = vmatprep.subr.bf16.mxu1 %v2361_v13  ;;  %v2389_v32 = vld [vmem:[#allocation2 + $0x104] ss:$16 sps:$4 sm:$0xff]   ;;  %v2391_v33 = vld [vmem:[#allocation2 + $0x10c] ss:$16 sps:$4 sm:$0xff]   ;;  %v2393_v34 = vld [vmem:[#allocation2 + $0x100] ss:$16 sps:$4 sm:$0xff]  }
  0x1f   :  { %v2394_v35 = vld [vmem:[#allocation2 + $0x108] ss:$16 sps:$4 sm:$0xff]   ;;  %v2395_v36 = vld [vmem:[#allocation2 + $0x124] ss:$16 sps:$4 sm:$0xff]   ;;  %v2397_v37 = vld [vmem:[#allocation2 + $0x12c] ss:$16 sps:$4 sm:$0xff]  }
  0x20   :  { %v2399_v38 = vld [vmem:[#allocation2 + $0x120] ss:$16 sps:$4 sm:$0xff]   ;;  %v2400_v39 = vld [vmem:[#allocation2 + $0x128] ss:$16 sps:$4 sm:$0xff]   ;;  %v2401_v40 = vld [vmem:[#allocation2 + $0x144] ss:$16 sps:$4 sm:$0xff]  }
  0x21   :  { %1269 = vmatpush1.bf16.msra.mxu0 %v2363_v14  ;;  %1441 = vmatpush1.bf16.msra.mxu1 %v2364_v15  ;;  %v2403_v41 = vld [vmem:[#allocation2 + $0x14c] ss:$16 sps:$4 sm:$0xff]   ;;  %v2405_v42 = vld [vmem:[#allocation2 + $0x140] ss:$16 sps:$4 sm:$0xff]   ;;  %v2406_v43 = vld [vmem:[#allocation2 + $0x148] ss:$16 sps:$4 sm:$0xff]  }
  0x22   :  { %1270 = vmatprep.subr.bf16.mxu0 %v2365_v16  ;;  %1442 = vmatprep.subr.bf16.mxu1 %v2367_v17  ;;  %v2407_v44 = vld [vmem:[#allocation2 + $0x164] ss:$16 sps:$4 sm:$0xff]   ;;  %v2409_v45 = vld [vmem:[#allocation2 + $0x16c] ss:$16 sps:$4 sm:$0xff]   ;;  %v2411_v48 = vld [vmem:[#allocation2 + $0x160] ss:$16 sps:$4 sm:$0xff]  }
  0x23   :  { %v40_v46 = vld [vmem:[%s2957_s0 + $0x8] sm:$0xff]  ;;  %v47_v47 = vld [vmem:[%s2957_s0 + $0x40] sm:$0xff]  ;;  %v46_v5 = vld [vmem:[%s2957_s0 + $0x38] sm:$0xff]  ;;  %vm1258_vm0 = vcmask 130048   ;;  %s2719_s16 = smov [#allocation5]   ;;  %vm1995_vm13 = vcmask 80896  }
  0x24   :  { %v2412_v49 = vld [vmem:[#allocation2 + $0x168] ss:$16 sps:$4 sm:$0xff]   ;;  %v54_v50 = vpack.c.bf16 %v47_v47, %v40_v46  ;;  %v2413_v51 = vld [vmem:[#allocation2 + $0x184] ss:$16 sps:$4 sm:$0xff]   ;;  %v2415_v52 = vld [vmem:[#allocation2 + $0x18c] ss:$16 sps:$4 sm:$0xff]  }
  0x25   :  { %1271 = vmatpush1.bf16.msra.mxu0 %v2369_v18  ;;  %1443 = vmatpush1.bf16.msra.mxu1 %v2370_v19  ;;  %v2417_v53 = vld [vmem:[#allocation2 + $0x180] ss:$16 sps:$4 sm:$0xff]   ;;  %v2418_v54 = vld [vmem:[#allocation2 + $0x188] ss:$16 sps:$4 sm:$0xff]   ;;  %v2419_v55 = vld [vmem:[#allocation2 + $0x1a4] ss:$16 sps:$4 sm:$0xff]  }
  0x26   :  { %1272 = vmatprep.subr.bf16.mxu0 %v2371_v20  ;;  %1444 = vmatprep.subr.bf16.mxu1 %v2373_v21  ;;  %v2421_v56 = vld [vmem:[#allocation2 + $0x1ac] ss:$16 sps:$4 sm:$0xff]   ;;  %v2423_v57 = vld [vmem:[#allocation2 + $0x1a0] ss:$16 sps:$4 sm:$0xff]   ;;  %v2424_v58 = vld [vmem:[#allocation2 + $0x1a8] ss:$16 sps:$4 sm:$0xff]  }
  0x27   :  { %1294 = vmatprep.mubr.bf16.mxu0 %v54_v50  ;;  %1466 = vmatprep.mubr.bf16.mxu1 %v54_v50  ;;  %v2425_v59 = vld [vmem:[#allocation2 + $0x1c4] ss:$16 sps:$4 sm:$0xff]   ;;  %v2427_v60 = vld [vmem:[#allocation2 + $0x1cc] ss:$16 sps:$4 sm:$0xff]   ;;  %v2429_v61 = vld [vmem:[#allocation2 + $0x1c0] ss:$16 sps:$4 sm:$0xff]  }
  0x28   :  { %v2430_v62 = vld [vmem:[#allocation2 + $0x1c8] ss:$16 sps:$4 sm:$0xff]   ;;  %v2431_v63 = vld [vmem:[#allocation2 + $0x1e4] ss:$16 sps:$4 sm:$0xff]   ;;  %v2433_v0 = vld [vmem:[#allocation2 + $0x1ec] ss:$16 sps:$4 sm:$0xff]  }
  0x29   :  { %1273 = vmatpush1.bf16.msra.mxu0 %v2375_v22  ;;  %1445 = vmatpush1.bf16.msra.mxu1 %v2376_v23  ;;  %v2435_v1 = vld [vmem:[#allocation2 + $0x1e0] ss:$16 sps:$4 sm:$0xff]   ;;  %v2436_v2 = vld [vmem:[#allocation2 + $0x1e8] ss:$16 sps:$4 sm:$0xff]   ;;  %v2439_v3 = vld [vmem:[#allocation2 + $0x204] ss:$16 sps:$4 sm:$0xff]  }
  0x2a   :  { %1274 = vmatprep.subr.bf16.mxu0 %v2377_v24  ;;  %1446 = vmatprep.subr.bf16.mxu1 %v2379_v25  ;;  %v39_v4 = vld [vmem:[%s2957_s0] sm:$0xff]  ;;  %v2442_v6 = vld [vmem:[#allocation2 + $0x20c] ss:$16 sps:$4 sm:$0xff]   ;;  %v2440_v8 = vld [vmem:[#allocation2 + $0x208] ss:$16 sps:$4 sm:$0xff]   ;;  %s2003_s17 = sshll.u32 %s2719_s16, 4  ;;  %s2004_s17 = int_to_ptr.vmem [resolvable:$true] %s2003_s17 }
  0x2b   :  { %v2437_v7 = vld [vmem:[#allocation2 + $0x200] ss:$16 sps:$4 sm:$0xff]   ;;  %v53_v9 = vpack.c.bf16 %v46_v5, %v39_v4  ;;  %v2445_v10 = vld [vmem:[#allocation2 + $0x224] ss:$16 sps:$4 sm:$0xff]   ;;  %v2448_v11 = vld [vmem:[#allocation2 + $0x22c] ss:$16 sps:$4 sm:$0xff]   ;;  %p2694_p9 = scmp.lt.s32.totalorder %s2004_s17, %s2004_s17 }
  0x2c   :  { %v2443_v12 = vld [vmem:[#allocation2 + $0x220] ss:$16 sps:$4 sm:$0xff]   ;;  %v2446_v13 = vld [vmem:[#allocation2 + $0x228] ss:$16 sps:$4 sm:$0xff]   ;;  %v2451_v14 = vld [vmem:[#allocation2 + $0x244] ss:$16 sps:$4 sm:$0xff]  }
  0x2d   :  { %1275 = vmatpush1.bf16.msra.mxu0 %v2381_v26  ;;  %1447 = vmatpush1.bf16.msra.mxu1 %v2382_v27  ;;  %v2454_v15 = vld [vmem:[#allocation2 + $0x24c] ss:$16 sps:$4 sm:$0xff]   ;;  %v2449_v16 = vld [vmem:[#allocation2 + $0x240] ss:$16 sps:$4 sm:$0xff]   ;;  %v2452_v17 = vld [vmem:[#allocation2 + $0x248] ss:$16 sps:$4 sm:$0xff]  }
  0x2e   :  { %1276 = vmatprep.subr.bf16.mxu0 %v2383_v28  ;;  %1448 = vmatprep.subr.bf16.mxu1 %v2385_v29  ;;  %v2457_v18 = vld [vmem:[#allocation2 + $0x264] ss:$16 sps:$4 sm:$0xff]   ;;  %v2460_v19 = vld [vmem:[#allocation2 + $0x26c] ss:$16 sps:$4 sm:$0xff]   ;;  %v2455_v20 = vld [vmem:[#allocation2 + $0x260] ss:$16 sps:$4 sm:$0xff]  }
  0x2f   :  { %v2458_v21 = vld [vmem:[#allocation2 + $0x268] ss:$16 sps:$4 sm:$0xff]   ;;  %v2463_v22 = vld [vmem:[#allocation2 + $0x284] ss:$16 sps:$4 sm:$0xff]   ;;  %v2466_v23 = vld [vmem:[#allocation2 + $0x28c] ss:$16 sps:$4 sm:$0xff]  }
  0x30   :  { %v2461_v24 = vld [vmem:[#allocation2 + $0x280] ss:$16 sps:$4 sm:$0xff]   ;;  %v2464_v25 = vld [vmem:[#allocation2 + $0x288] ss:$16 sps:$4 sm:$0xff]   ;;  %v2469_v26 = vld [vmem:[#allocation2 + $0x2a4] ss:$16 sps:$4 sm:$0xff]  }
  0x31   :  { %1277 = vmatpush1.bf16.msra.mxu0 %v2387_v30  ;;  %1449 = vmatpush1.bf16.msra.mxu1 %v2388_v31  ;;  %v2472_v27 = vld [vmem:[#allocation2 + $0x2ac] ss:$16 sps:$4 sm:$0xff]   ;;  %v2467_v28 = vld [vmem:[#allocation2 + $0x2a0] ss:$16 sps:$4 sm:$0xff]   ;;  %v2470_v29 = vld [vmem:[#allocation2 + $0x2a8] ss:$16 sps:$4 sm:$0xff]  }
  0x32   :  { %1278 = vmatprep.subr.bf16.mxu0 %v2389_v32  ;;  %1450 = vmatprep.subr.bf16.mxu1 %v2391_v33  ;;  %v2475_v30 = vld [vmem:[#allocation2 + $0x2c4] ss:$16 sps:$4 sm:$0xff]   ;;  %v2478_v31 = vld [vmem:[#allocation2 + $0x2cc] ss:$16 sps:$4 sm:$0xff]   ;;  %v2491_v47 = vld [vmem:[#allocation2 + $0x320] ss:$16 sps:$4 sm:$0xff]  }
  0x33   :  { %v42_v32 = vld [vmem:[%s2957_s0 + $0x18] sm:$0xff]  ;;  %v49_v33 = vld [vmem:[%s2957_s0 + $0x50] sm:$0xff] }
  0x34   :  { %v2496_v46 = vld [vmem:[#allocation2 + $0x32c] ss:$16 sps:$4 sm:$0xff]   ;;  %v2524_v4 = vld [vmem:[#allocation2 + $0x3c8] ss:$16 sps:$4 sm:$0xff]   ;;  %v2529_v5 = vld [vmem:[#allocation2 + $0x3e4] ss:$16 sps:$4 sm:$0xff]  }
  0x35   :  { %1279 = vmatpush1.bf16.msra.mxu0 %v2393_v34  ;;  %1451 = vmatpush1.bf16.msra.mxu1 %v2394_v35  ;;  %v2473_v34 = vld [vmem:[#allocation2 + $0x2c0] ss:$16 sps:$4 sm:$0xff]   ;;  %v2476_v35 = vld [vmem:[#allocation2 + $0x2c8] ss:$16 sps:$4 sm:$0xff]   ;;  %v2502_v50 = vld [vmem:[#allocation2 + $0x34c] ss:$16 sps:$4 sm:$0xff]  }
  0x36   :  { %1280 = vmatprep.subr.bf16.mxu0 %v2395_v36  ;;  %1452 = vmatprep.subr.bf16.mxu1 %v2397_v37  ;;  %v56_v36 = vpack.c.bf16 %v49_v33, %v42_v32  ;;  %v2481_v37 = vld [vmem:[#allocation2 + $0x2e4] ss:$16 sps:$4 sm:$0xff]   ;;  %v2562_v32 = vld [vmem:[#allocation2 + $0x48c] ss:$16 sps:$4 sm:$0xff]   ;;  %v2557_v33 = vld [vmem:[#allocation2 + $0x480] ss:$16 sps:$4 sm:$0xff]  }
  0x39   :  { %1281 = vmatpush1.bf16.msra.mxu0 %v2399_v38  ;;  %1453 = vmatpush1.bf16.msra.mxu1 %v2400_v39  ;;  %v2484_v38 = vld [vmem:[#allocation2 + $0x2ec] ss:$16 sps:$4 sm:$0xff]   ;;  %v2479_v39 = vld [vmem:[#allocation2 + $0x2e0] ss:$16 sps:$4 sm:$0xff]  }
  0x3a   :  { %1282 = vmatprep.subr.bf16.mxu0 %v2401_v40  ;;  %1454 = vmatprep.subr.bf16.mxu1 %v2403_v41  ;;  %v2482_v40 = vld [vmem:[#allocation2 + $0x2e8] ss:$16 sps:$4 sm:$0xff]   ;;  %v2487_v41 = vld [vmem:[#allocation2 + $0x304] ss:$16 sps:$4 sm:$0xff]  }
  0x3d   :  { %1283 = vmatpush1.bf16.msra.mxu0 %v2405_v42  ;;  %1455 = vmatpush1.bf16.msra.mxu1 %v2406_v43  ;;  %v2490_v42 = vld [vmem:[#allocation2 + $0x30c] ss:$16 sps:$4 sm:$0xff]   ;;  %v2485_v43 = vld [vmem:[#allocation2 + $0x300] ss:$16 sps:$4 sm:$0xff]  }
  0x3e   :  { %1284 = vmatprep.subr.bf16.mxu0 %v2407_v44  ;;  %1456 = vmatprep.subr.bf16.mxu1 %v2409_v45  ;;  %v2488_v44 = vld [vmem:[#allocation2 + $0x308] ss:$16 sps:$4 sm:$0xff]   ;;  %v2493_v45 = vld [vmem:[#allocation2 + $0x324] ss:$16 sps:$4 sm:$0xff]  }
  0x41   :  { %1285 = vmatpush1.bf16.msra.mxu0 %v2411_v48  ;;  %1457 = vmatpush1.bf16.msra.mxu1 %v2412_v49  ;;  %v2494_v48 = vld [vmem:[#allocation2 + $0x328] ss:$16 sps:$4 sm:$0xff]   ;;  %v2499_v49 = vld [vmem:[#allocation2 + $0x344] ss:$16 sps:$4 sm:$0xff]  }
  0x42   :  { %1286 = vmatprep.subr.bf16.mxu0 %v2413_v51  ;;  %1458 = vmatprep.subr.bf16.mxu1 %v2415_v52  ;;  %v2497_v51 = vld [vmem:[#allocation2 + $0x340] ss:$16 sps:$4 sm:$0xff]   ;;  %v2500_v52 = vld [vmem:[#allocation2 + $0x348] ss:$16 sps:$4 sm:$0xff]  }
  0x45   :  { %1287 = vmatpush1.bf16.msra.mxu0 %v2417_v53  ;;  %1459 = vmatpush1.bf16.msra.mxu1 %v2418_v54  ;;  %v2505_v53 = vld [vmem:[#allocation2 + $0x364] ss:$16 sps:$4 sm:$0xff]   ;;  %v2508_v54 = vld [vmem:[#allocation2 + $0x36c] ss:$16 sps:$4 sm:$0xff]  }
  0x46   :  { %1288 = vmatprep.subr.bf16.mxu0 %v2419_v55  ;;  %1460 = vmatprep.subr.bf16.mxu1 %v2421_v56  ;;  %v2503_v55 = vld [vmem:[#allocation2 + $0x360] ss:$16 sps:$4 sm:$0xff]   ;;  %v2506_v56 = vld [vmem:[#allocation2 + $0x368] ss:$16 sps:$4 sm:$0xff]  }
  0x49   :  { %1289 = vmatpush1.bf16.msra.mxu0 %v2423_v57  ;;  %1461 = vmatpush1.bf16.msra.mxu1 %v2424_v58  ;;  %v2511_v57 = vld [vmem:[#allocation2 + $0x384] ss:$16 sps:$4 sm:$0xff]   ;;  %v2514_v58 = vld [vmem:[#allocation2 + $0x38c] ss:$16 sps:$4 sm:$0xff]  }
  0x4a   :  { %1290 = vmatprep.subr.bf16.mxu0 %v2425_v59  ;;  %1462 = vmatprep.subr.bf16.mxu1 %v2427_v60  ;;  %v2509_v59 = vld [vmem:[#allocation2 + $0x380] ss:$16 sps:$4 sm:$0xff]   ;;  %v2512_v60 = vld [vmem:[#allocation2 + $0x388] ss:$16 sps:$4 sm:$0xff]  }
  0x4d   :  { %1291 = vmatpush1.bf16.msra.mxu0 %v2429_v61  ;;  %1463 = vmatpush1.bf16.msra.mxu1 %v2430_v62  ;;  %v2517_v61 = vld [vmem:[#allocation2 + $0x3a4] ss:$16 sps:$4 sm:$0xff]   ;;  %v2520_v62 = vld [vmem:[#allocation2 + $0x3ac] ss:$16 sps:$4 sm:$0xff]  }
  0x4e   :  { %1292 = vmatprep.subr.bf16.mxu0 %v2431_v63  ;;  %1464 = vmatprep.subr.bf16.mxu1 %v2433_v0  ;;  %v2515_v63 = vld [vmem:[#allocation2 + $0x3a0] ss:$16 sps:$4 sm:$0xff]   ;;  %v2518_v0 = vld [vmem:[#allocation2 + $0x3a8] ss:$16 sps:$4 sm:$0xff]  }
  0x51   :  { %1293 = vmatpush1.bf16.msra.mxu0 %v2435_v1  ;;  %1465 = vmatpush1.bf16.msra.mxu1 %v2436_v2  ;;  %v2523_v1 = vld [vmem:[#allocation2 + $0x3c4] ss:$16 sps:$4 sm:$0xff]   ;;  %v2526_v2 = vld [vmem:[#allocation2 + $0x3cc] ss:$16 sps:$4 sm:$0xff]  }
  0x52   :  { %1305 = vmatprep.subr.bf16.mxu0 %v2439_v3  ;;  %1477 = vmatprep.subr.bf16.mxu1 %v2442_v6  ;;  %v2521_v3 = vld [vmem:[#allocation2 + $0x3c0] ss:$16 sps:$4 sm:$0xff]   ;;  %v2532_v6 = vld [vmem:[#allocation2 + $0x3ec] ss:$16 sps:$4 sm:$0xff]  }
  0x54   :  { %1295 = vmatmul.mubr.bf16.vlgmr.msra.gmra.mrb[0].mxu0 %v53_v9  ;;  %1467 = vmatmul.mubr.bf16.vlgmr.msra.gmra.mrb[0].mxu1 %v53_v9  ;;  %v2535_v9 = vld [vmem:[#allocation2 + $0x404] ss:$16 sps:$4 sm:$0xff]  }
  0x55   :  { %1306 = vmatpush1.bf16.msra.mxu0 %v2437_v7  ;;  %1478 = vmatpush1.bf16.msra.mxu1 %v2440_v8  ;;  %v2527_v7 = vld [vmem:[#allocation2 + $0x3e0] ss:$16 sps:$4 sm:$0xff]   ;;  %v2530_v8 = vld [vmem:[#allocation2 + $0x3e8] ss:$16 sps:$4 sm:$0xff]  }
  0x56   :  { %1307 = vmatprep.subr.bf16.mxu0 %v2445_v10  ;;  %1479 = vmatprep.subr.bf16.mxu1 %v2448_v11  ;;  %v41_v10 = vld [vmem:[%s2957_s0 + $0x10] sm:$0xff]  ;;  %v48_v11 = vld [vmem:[%s2957_s0 + $0x48] sm:$0xff] }
  0x57   :  { %1337 = vmatprep.mubr.bf16.mxu0 %v56_v36  ;;  %1509 = vmatprep.mubr.bf16.mxu1 %v56_v36  ;;  %v2568_v36 = vld [vmem:[#allocation2 + $0x4ac] ss:$16 sps:$4 sm:$0xff]  }
  0x59   :  { %1308 = vmatpush1.bf16.msra.mxu0 %v2443_v12  ;;  %1480 = vmatpush1.bf16.msra.mxu1 %v2446_v13  ;;  %v2538_v12 = vld [vmem:[#allocation2 + $0x40c] ss:$16 sps:$4 sm:$0xff]   ;;  %v2533_v13 = vld [vmem:[#allocation2 + $0x400] ss:$16 sps:$4 sm:$0xff]  }
  0x5a   :  { %1309 = vmatprep.subr.bf16.mxu0 %v2451_v14  ;;  %1481 = vmatprep.subr.bf16.mxu1 %v2454_v15  ;;  %v2536_v14 = vld [vmem:[#allocation2 + $0x408] ss:$16 sps:$4 sm:$0xff]   ;;  %v55_v15 = vpack.c.bf16 %v48_v11, %v41_v10  ;;  %v2625_v11 = vld [vmem:[#allocation2 + $0x5e4] ss:$16 sps:$4 sm:$0xff]  }
  0x5b   :  { %v2620_v10 = vld [vmem:[#allocation2 + $0x5c8] ss:$16 sps:$4 sm:$0xff]  }
  0x5d   :  { %1310 = vmatpush1.bf16.msra.mxu0 %v2449_v16  ;;  %1482 = vmatpush1.bf16.msra.mxu1 %v2452_v17  ;;  %v2541_v16 = vld [vmem:[#allocation2 + $0x424] ss:$16 sps:$4 sm:$0xff]   ;;  %v2544_v17 = vld [vmem:[#allocation2 + $0x42c] ss:$16 sps:$4 sm:$0xff]  }
  0x5e   :  { %1311 = vmatprep.subr.bf16.mxu0 %v2457_v18  ;;  %1483 = vmatprep.subr.bf16.mxu1 %v2460_v19  ;;  %v44_v18 = vld [vmem:[%s2957_s0 + $0x28] sm:$0xff]  ;;  %v2539_v19 = vld [vmem:[#allocation2 + $0x420] ss:$16 sps:$4 sm:$0xff]  }
  0x61   :  { %1312 = vmatpush1.bf16.msra.mxu0 %v2455_v20  ;;  %1484 = vmatpush1.bf16.msra.mxu1 %v2458_v21  ;;  %v2542_v20 = vld [vmem:[#allocation2 + $0x428] ss:$16 sps:$4 sm:$0xff]   ;;  %v51_v21 = vld [vmem:[%s2957_s0 + $0x60] sm:$0xff] }
  0x62   :  { %1313 = vmatprep.subr.bf16.mxu0 %v2463_v22  ;;  %1485 = vmatprep.subr.bf16.mxu1 %v2466_v23  ;;  %v2547_v22 = vld [vmem:[#allocation2 + $0x444] ss:$16 sps:$4 sm:$0xff]   ;;  %v58_v23 = vpack.c.bf16 %v51_v21, %v44_v18  ;;  %v2634_v18 = vld [vmem:[#allocation2 + $0x60c] ss:$16 sps:$4 sm:$0xff]   ;;  %v2632_v21 = vld [vmem:[#allocation2 + $0x608] ss:$16 sps:$4 sm:$0xff]  }
  0x65   :  { %1314 = vmatpush1.bf16.msra.mxu0 %v2461_v24  ;;  %1486 = vmatpush1.bf16.msra.mxu1 %v2464_v25  ;;  %v2550_v24 = vld [vmem:[#allocation2 + $0x44c] ss:$16 sps:$4 sm:$0xff]   ;;  %v2545_v25 = vld [vmem:[#allocation2 + $0x440] ss:$16 sps:$4 sm:$0xff]  }
  0x66   :  { %1315 = vmatprep.subr.bf16.mxu0 %v2469_v26  ;;  %1487 = vmatprep.subr.bf16.mxu1 %v2472_v27  ;;  %v2548_v26 = vld [vmem:[#allocation2 + $0x448] ss:$16 sps:$4 sm:$0xff]   ;;  %v2553_v27 = vld [vmem:[#allocation2 + $0x464] ss:$16 sps:$4 sm:$0xff]  }
  0x69   :  { %1316 = vmatpush1.bf16.msra.mxu0 %v2467_v28  ;;  %1488 = vmatpush1.bf16.msra.mxu1 %v2470_v29  ;;  %v2556_v28 = vld [vmem:[#allocation2 + $0x46c] ss:$16 sps:$4 sm:$0xff]   ;;  %v2551_v29 = vld [vmem:[#allocation2 + $0x460] ss:$16 sps:$4 sm:$0xff]  }
  0x6a   :  { %1317 = vmatprep.subr.bf16.mxu0 %v2475_v30  ;;  %1489 = vmatprep.subr.bf16.mxu1 %v2478_v31  ;;  %v2554_v30 = vld [vmem:[#allocation2 + $0x468] ss:$16 sps:$4 sm:$0xff]   ;;  %v2559_v31 = vld [vmem:[#allocation2 + $0x484] ss:$16 sps:$4 sm:$0xff]  }
  0x6d   :  { %1318 = vmatpush1.bf16.msra.mxu0 %v2473_v34  ;;  %1490 = vmatpush1.bf16.msra.mxu1 %v2476_v35  ;;  %v2560_v34 = vld [vmem:[#allocation2 + $0x488] ss:$16 sps:$4 sm:$0xff]   ;;  %v2565_v35 = vld [vmem:[#allocation2 + $0x4a4] ss:$16 sps:$4 sm:$0xff]  }
  0x6e   :  { %1319 = vmatprep.subr.bf16.mxu0 %v2481_v37  ;;  %1491 = vmatprep.subr.bf16.mxu1 %v2484_v38  ;;  %v2563_v37 = vld [vmem:[#allocation2 + $0x4a0] ss:$16 sps:$4 sm:$0xff]   ;;  %v2566_v38 = vld [vmem:[#allocation2 + $0x4a8] ss:$16 sps:$4 sm:$0xff]  }
  0x71   :  { %1320 = vmatpush1.bf16.msra.mxu0 %v2479_v39  ;;  %1492 = vmatpush1.bf16.msra.mxu1 %v2482_v40  ;;  %v2571_v39 = vld [vmem:[#allocation2 + $0x4c4] ss:$16 sps:$4 sm:$0xff]   ;;  %v2574_v40 = vld [vmem:[#allocation2 + $0x4cc] ss:$16 sps:$4 sm:$0xff]  }
  0x72   :  { %1321 = vmatprep.subr.bf16.mxu0 %v2487_v41  ;;  %1493 = vmatprep.subr.bf16.mxu1 %v2490_v42  ;;  %v2569_v41 = vld [vmem:[#allocation2 + $0x4c0] ss:$16 sps:$4 sm:$0xff]   ;;  %v2572_v42 = vld [vmem:[#allocation2 + $0x4c8] ss:$16 sps:$4 sm:$0xff]  }
  0x75   :  { %1322 = vmatpush1.bf16.msra.mxu0 %v2485_v43  ;;  %1494 = vmatpush1.bf16.msra.mxu1 %v2488_v44  ;;  %v2577_v43 = vld [vmem:[#allocation2 + $0x4e4] ss:$16 sps:$4 sm:$0xff]   ;;  %v2580_v44 = vld [vmem:[#allocation2 + $0x4ec] ss:$16 sps:$4 sm:$0xff]  }
  0x76   :  { %1323 = vmatprep.subr.bf16.mxu0 %v2493_v45  ;;  %1495 = vmatprep.subr.bf16.mxu1 %v2496_v46  ;;  %v2575_v45 = vld [vmem:[#allocation2 + $0x4e0] ss:$16 sps:$4 sm:$0xff]   ;;  %v2578_v46 = vld [vmem:[#allocation2 + $0x4e8] ss:$16 sps:$4 sm:$0xff]  }
  0x79   :  { %1324 = vmatpush1.bf16.msra.mxu0 %v2491_v47  ;;  %1496 = vmatpush1.bf16.msra.mxu1 %v2494_v48  ;;  %v2583_v47 = vld [vmem:[#allocation2 + $0x504] ss:$16 sps:$4 sm:$0xff]   ;;  %v2586_v48 = vld [vmem:[#allocation2 + $0x50c] ss:$16 sps:$4 sm:$0xff]  }
  0x7a   :  { %1325 = vmatprep.subr.bf16.mxu0 %v2499_v49  ;;  %1497 = vmatprep.subr.bf16.mxu1 %v2502_v50  ;;  %v2581_v49 = vld [vmem:[#allocation2 + $0x500] ss:$16 sps:$4 sm:$0xff]   ;;  %v2584_v50 = vld [vmem:[#allocation2 + $0x508] ss:$16 sps:$4 sm:$0xff]  }
  0x7d   :  { %1326 = vmatpush1.bf16.msra.mxu0 %v2497_v51  ;;  %1498 = vmatpush1.bf16.msra.mxu1 %v2500_v52  ;;  %v2589_v51 = vld [vmem:[#allocation2 + $0x524] ss:$16 sps:$4 sm:$0xff]   ;;  %v2592_v52 = vld [vmem:[#allocation2 + $0x52c] ss:$16 sps:$4 sm:$0xff]  }
  0x7e   :  { %1327 = vmatprep.subr.bf16.mxu0 %v2505_v53  ;;  %1499 = vmatprep.subr.bf16.mxu1 %v2508_v54  ;;  %v2587_v53 = vld [vmem:[#allocation2 + $0x520] ss:$16 sps:$4 sm:$0xff]   ;;  %v2590_v54 = vld [vmem:[#allocation2 + $0x528] ss:$16 sps:$4 sm:$0xff]  }
  0x81   :  { %1328 = vmatpush1.bf16.msra.mxu0 %v2503_v55  ;;  %1500 = vmatpush1.bf16.msra.mxu1 %v2506_v56  ;;  %v2595_v55 = vld [vmem:[#allocation2 + $0x544] ss:$16 sps:$4 sm:$0xff]   ;;  %v2598_v56 = vld [vmem:[#allocation2 + $0x54c] ss:$16 sps:$4 sm:$0xff]  }
  0x82   :  { %1329 = vmatprep.subr.bf16.mxu0 %v2511_v57  ;;  %1501 = vmatprep.subr.bf16.mxu1 %v2514_v58  ;;  %v2593_v57 = vld [vmem:[#allocation2 + $0x540] ss:$16 sps:$4 sm:$0xff]   ;;  %v2596_v58 = vld [vmem:[#allocation2 + $0x548] ss:$16 sps:$4 sm:$0xff]  }
  0x85   :  { %1330 = vmatpush1.bf16.msra.mxu0 %v2509_v59  ;;  %1502 = vmatpush1.bf16.msra.mxu1 %v2512_v60  ;;  %v2601_v59 = vld [vmem:[#allocation2 + $0x564] ss:$16 sps:$4 sm:$0xff]   ;;  %v2604_v60 = vld [vmem:[#allocation2 + $0x56c] ss:$16 sps:$4 sm:$0xff]  }
  0x86   :  { %1331 = vmatprep.subr.bf16.mxu0 %v2517_v61  ;;  %1503 = vmatprep.subr.bf16.mxu1 %v2520_v62  ;;  %v2599_v61 = vld [vmem:[#allocation2 + $0x560] ss:$16 sps:$4 sm:$0xff]   ;;  %v2602_v62 = vld [vmem:[#allocation2 + $0x568] ss:$16 sps:$4 sm:$0xff]  }
  0x89   :  { %1332 = vmatpush1.bf16.msra.mxu0 %v2515_v63  ;;  %1504 = vmatpush1.bf16.msra.mxu1 %v2518_v0  ;;  %v2607_v63 = vld [vmem:[#allocation2 + $0x584] ss:$16 sps:$4 sm:$0xff]   ;;  %v2610_v0 = vld [vmem:[#allocation2 + $0x58c] ss:$16 sps:$4 sm:$0xff]  }
  0x8a   :  { %1333 = vmatprep.subr.bf16.mxu0 %v2523_v1  ;;  %1505 = vmatprep.subr.bf16.mxu1 %v2526_v2  ;;  %v2605_v1 = vld [vmem:[#allocation2 + $0x580] ss:$16 sps:$4 sm:$0xff]   ;;  %v2608_v2 = vld [vmem:[#allocation2 + $0x588] ss:$16 sps:$4 sm:$0xff]  }
  0x8d   :  { %1334 = vmatpush1.bf16.msra.mxu0 %v2521_v3  ;;  %1506 = vmatpush1.bf16.msra.mxu1 %v2524_v4  ;;  %v2613_v3 = vld [vmem:[#allocation2 + $0x5a4] ss:$16 sps:$4 sm:$0xff]   ;;  %v2616_v4 = vld [vmem:[#allocation2 + $0x5ac] ss:$16 sps:$4 sm:$0xff]  }
  0x8e   :  { %1335 = vmatprep.subr.bf16.mxu0 %v2529_v5  ;;  %1507 = vmatprep.subr.bf16.mxu1 %v2532_v6  ;;  %v2611_v5 = vld [vmem:[#allocation2 + $0x5a0] ss:$16 sps:$4 sm:$0xff]   ;;  %v2614_v6 = vld [vmem:[#allocation2 + $0x5a8] ss:$16 sps:$4 sm:$0xff]  }
  0x91   :  { %1336 = vmatpush1.bf16.msra.mxu0 %v2527_v7  ;;  %1508 = vmatpush1.bf16.msra.mxu1 %v2530_v8  ;;  %v2619_v7 = vld [vmem:[#allocation2 + $0x5c4] ss:$16 sps:$4 sm:$0xff]   ;;  %v2622_v8 = vld [vmem:[#allocation2 + $0x5cc] ss:$16 sps:$4 sm:$0xff]  }
  0x92   :  { %1348 = vmatprep.subr.bf16.mxu0 %v2535_v9  ;;  %1520 = vmatprep.subr.bf16.mxu1 %v2538_v12  ;;  %v2617_v9 = vld [vmem:[#allocation2 + $0x5c0] ss:$16 sps:$4 sm:$0xff]   ;;  %v2628_v12 = vld [vmem:[#allocation2 + $0x5ec] ss:$16 sps:$4 sm:$0xff]  }
  0x94   :  { %1338 = vmatmul.mubr.bf16.vlgmr.msra.gmra.mrb[0].mxu0 %v55_v15  ;;  %1510 = vmatmul.mubr.bf16.vlgmr.msra.gmra.mrb[0].mxu1 %v55_v15  ;;  %v43_v15 = vld [vmem:[%s2957_s0 + $0x20] sm:$0xff] }
  0x95   :  { %1349 = vmatpush1.bf16.msra.mxu0 %v2533_v13  ;;  %1521 = vmatpush1.bf16.msra.mxu1 %v2536_v14  ;;  %v2623_v13 = vld [vmem:[#allocation2 + $0x5e0] ss:$16 sps:$4 sm:$0xff]   ;;  %v2626_v14 = vld [vmem:[#allocation2 + $0x5e8] ss:$16 sps:$4 sm:$0xff]  }
  0x96   :  { %1350 = vmatprep.subr.bf16.mxu0 %v2541_v16  ;;  %1522 = vmatprep.subr.bf16.mxu1 %v2544_v17  ;;  %v50_v16 = vld [vmem:[%s2957_s0 + $0x58] sm:$0xff]  ;;  %v2631_v17 = vld [vmem:[#allocation2 + $0x604] ss:$16 sps:$4 sm:$0xff]  }
  0x97   :  { %1380 = vmatprep.mubr.bf16.mxu0 %v58_v23  ;;  %1552 = vmatprep.mubr.bf16.mxu1 %v58_v23  ;;  %v2636_v23 = vld [vmem:[%s2960_s3 + $0xc0] sm:$0xff]  }
  0x99   :  { %1351 = vmatpush1.bf16.msra.mxu0 %v2539_v19  ;;  %1523 = vmatpush1.bf16.msra.mxu1 %v2542_v20  ;;  %v57_v19 = vpack.c.bf16 %v50_v16, %v43_v15  ;;  %v2629_v20 = vld [vmem:[#allocation2 + $0x600] ss:$16 sps:$4 sm:$0xff]  }
  0x9a   :  { %1352 = vmatprep.subr.bf16.mxu0 %v2547_v22  ;;  %1524 = vmatprep.subr.bf16.mxu1 %v2550_v24  ;;  %v2635_v22 = vld [vmem:[%s2960_s3 + $0x40] sm:$0xff]   ;;  %v2718_v24 = vmov 0  }
  0x9d   :  { %1353 = vmatpush1.bf16.msra.mxu0 %v2545_v25  ;;  %1525 = vmatpush1.bf16.msra.mxu1 %v2548_v26  ;;  %v45_v25 = vld [vmem:[%s2957_s0 + $0x30] sm:$0xff]  ;;  %v52_v26 = vld [vmem:[%s2957_s0 + $0x68] sm:$0xff] }
  0x9e   :  { %1354 = vmatprep.subr.bf16.mxu0 %v2553_v27  ;;  %1526 = vmatprep.subr.bf16.mxu1 %v2556_v28  ;;  %v59_v27 = vpack.c.bf16 %v52_v26, %v45_v25  ;;  %v2637_v28 = vld [vmem:[%s2960_s3] sm:$0xff]  }
  0xa1   :  { %1355 = vmatpush1.bf16.msra.mxu0 %v2551_v29  ;;  %1527 = vmatpush1.bf16.msra.mxu1 %v2554_v30  ;;  %v2638_v29 = vld [vmem:[%s2960_s3 + $0x80] sm:$0xff]   ;;  %v2639_v30 = vld [vmem:[%s2960_s3 + $0x48] sm:$0xff]  }
  0xa2   :  { %1356 = vmatprep.subr.bf16.mxu0 %v2559_v31  ;;  %1528 = vmatprep.subr.bf16.mxu1 %v2562_v32  ;;  %v2640_v31 = vld [vmem:[%s2960_s3 + $0xc8] sm:$0xff]  }
  0xa3   :  { %v2641_v32 = vld [vmem:[%s2960_s3 + $0x8] sm:$0xff]  }
  0xa5   :  { %1357 = vmatpush1.bf16.msra.mxu0 %v2557_v33  ;;  %1529 = vmatpush1.bf16.msra.mxu1 %v2560_v34  ;;  %v2642_v33 = vld [vmem:[%s2960_s3 + $0x88] sm:$0xff]   ;;  %v2643_v34 = vld [vmem:[%s2960_s3 + $0x50] sm:$0xff]  }
  0xa6   :  { %1358 = vmatprep.subr.bf16.mxu0 %v2565_v35  ;;  %1530 = vmatprep.subr.bf16.mxu1 %v2568_v36  ;;  %v2644_v35 = vld [vmem:[%s2960_s3 + $0xd0] sm:$0xff]  }
  0xa7   :  { %v2645_v36 = vld [vmem:[%s2960_s3 + $0x10] sm:$0xff]  }
  0xa9   :  { %1359 = vmatpush1.bf16.msra.mxu0 %v2563_v37  ;;  %1531 = vmatpush1.bf16.msra.mxu1 %v2566_v38  ;;  %v2646_v37 = vld [vmem:[%s2960_s3 + $0x90] sm:$0xff]   ;;  %v2647_v38 = vld [vmem:[%s2960_s3 + $0x58] sm:$0xff]  }
  0xaa   :  { %1360 = vmatprep.subr.bf16.mxu0 %v2571_v39  ;;  %1532 = vmatprep.subr.bf16.mxu1 %v2574_v40  ;;  %v2648_v39 = vld [vmem:[%s2960_s3 + $0xd8] sm:$0xff]  }
  0xab   :  { %v2649_v40 = vld [vmem:[%s2960_s3 + $0x18] sm:$0xff]  }
  0xad   :  { %1361 = vmatpush1.bf16.msra.mxu0 %v2569_v41  ;;  %1533 = vmatpush1.bf16.msra.mxu1 %v2572_v42  ;;  %v2650_v41 = vld [vmem:[%s2960_s3 + $0x98] sm:$0xff]   ;;  %v2651_v42 = vld [vmem:[%s2960_s3 + $0x60] sm:$0xff]  }
  0xae   :  { %1362 = vmatprep.subr.bf16.mxu0 %v2577_v43  ;;  %1534 = vmatprep.subr.bf16.mxu1 %v2580_v44  ;;  %v2652_v43 = vld [vmem:[%s2960_s3 + $0xe0] sm:$0xff]  }
  0xaf   :  { %v2653_v44 = vld [vmem:[%s2960_s3 + $0x20] sm:$0xff]  }
  0xb1   :  { %1363 = vmatpush1.bf16.msra.mxu0 %v2575_v45  ;;  %1535 = vmatpush1.bf16.msra.mxu1 %v2578_v46  ;;  %v2654_v45 = vld [vmem:[%s2960_s3 + $0xa0] sm:$0xff]   ;;  %v2655_v46 = vld [vmem:[%s2960_s3 + $0x68] sm:$0xff]  }
  0xb2   :  { %1364 = vmatprep.subr.bf16.mxu0 %v2583_v47  ;;  %1536 = vmatprep.subr.bf16.mxu1 %v2586_v48  ;;  %v2656_v47 = vld [vmem:[%s2960_s3 + $0xe8] sm:$0xff]  }
  0xb3   :  { %v2657_v48 = vld [vmem:[%s2960_s3 + $0x28] sm:$0xff]  }
  0xb5   :  { %1365 = vmatpush1.bf16.msra.mxu0 %v2581_v49  ;;  %1537 = vmatpush1.bf16.msra.mxu1 %v2584_v50  ;;  %v2658_v49 = vld [vmem:[%s2960_s3 + $0xa8] sm:$0xff]   ;;  %v2659_v50 = vld [vmem:[%s2960_s3 + $0x70] sm:$0xff]  }
  0xb6   :  { %1366 = vmatprep.subr.bf16.mxu0 %v2589_v51  ;;  %1538 = vmatprep.subr.bf16.mxu1 %v2592_v52  ;;  %v2660_v51 = vld [vmem:[%s2960_s3 + $0xf0] sm:$0xff]  }
  0xb7   :  { %v2661_v52 = vld [vmem:[%s2960_s3 + $0x30] sm:$0xff]  }
  0xb9   :  { %1367 = vmatpush1.bf16.msra.mxu0 %v2587_v53  ;;  %1539 = vmatpush1.bf16.msra.mxu1 %v2590_v54  ;;  %v2662_v53 = vld [vmem:[%s2960_s3 + $0xb0] sm:$0xff]   ;;  %v2663_v54 = vld [vmem:[%s2960_s3 + $0x78] sm:$0xff]  }
  0xba   :  { %1368 = vmatprep.subr.bf16.mxu0 %v2595_v55  ;;  %1540 = vmatprep.subr.bf16.mxu1 %v2598_v56  ;;  %v2664_v55 = vld [vmem:[%s2960_s3 + $0xf8] sm:$0xff]  }
  0xbb   :  { %v2665_v56 = vld [vmem:[%s2960_s3 + $0x38] sm:$0xff]  }
  0xbd   :  { %1369 = vmatpush1.bf16.msra.mxu0 %v2593_v57  ;;  %1541 = vmatpush1.bf16.msra.mxu1 %v2596_v58  ;;  %v2666_v57 = vld [vmem:[%s2960_s3 + $0xb8] sm:$0xff]   ;;  %v258_v58 = vlaneseq }
  0xbe   :  { %1370 = vmatprep.subr.bf16.mxu0 %v2601_v59  ;;  %1542 = vmatprep.subr.bf16.mxu1 %v2604_v60 }
  0xbf   :  { %v259_v59 = vshrl.u32 %v258_v58, 7 }
  0xc1   :  { %1371 = vmatpush1.bf16.msra.mxu0 %v2599_v61  ;;  %1543 = vmatpush1.bf16.msra.mxu1 %v2602_v62  ;;  %v260_v60 = vsub.s32 0, %v259_v59  ;;  %v268_v61 = vsub.s32 2, %v259_v59  ;;  %v256_v62 = vld [vmem:[%s2959_s2] sm:$0xf] }
  0xc2   :  { %1372 = vmatprep.subr.bf16.mxu0 %v2607_v63  ;;  %1544 = vmatprep.subr.bf16.mxu1 %v2610_v0  ;;  %v264_v63 = vsub.s32 1, %v259_v59  ;;  %v272_v0 = vsub.s32 3, %v259_v59 }
  0xc5   :  { %1373 = vmatpush1.bf16.msra.mxu0 %v2605_v1  ;;  %1545 = vmatpush1.bf16.msra.mxu1 %v2608_v2  ;;  %v261_v1 = vrot.slane %v256_v62, %v260_v60  ;;  %v269_v2 = vrot.slane %v256_v62, %v268_v61 }
  0xc6   :  { %1374 = vmatprep.subr.bf16.mxu0 %v2613_v3  ;;  %1546 = vmatprep.subr.bf16.mxu1 %v2616_v4  ;;  %v1615_v3 = vld [vmem:[%s2962_s5 + $0x8] sm:$0xff]  ;;  %v265_v4 = vrot.slane %v256_v62, %v264_v63 }
  0xc7   :  { %vm1623_vm1 = vcmp.ge.u32.totalorder %v1615_v3, 858993459 }
  0xc9   :  { %1375 = vmatpush1.bf16.msra.mxu0 %v2611_v5  ;;  %1547 = vmatpush1.bf16.msra.mxu1 %v2614_v6  ;;  %v273_v5 = vrot.slane %v256_v62, %v272_v0  ;;  %v1619_v6 = vld [vmem:[%s2962_s5 + $0x28] sm:$0xff] }
  0xca   :  { %1376 = vmatprep.subr.bf16.mxu0 %v2619_v7  ;;  %1548 = vmatprep.subr.bf16.mxu1 %v2622_v8  ;;  %v1617_v7 = vld [vmem:[%s2962_s5 + $0x18] sm:$0xff]  ;;  %vm1627_vm2 = vcmp.ge.u32.totalorder %v1619_v6, 858993459 }
  0xcb   :  { %v1621_v8 = vld [vmem:[%s2962_s5 + $0x38] sm:$0xff]  ;;  %vm1625_vm3 = vcmp.ge.u32.totalorder %v1617_v7, 858993459  ;;  %vm2246_vm9 = vmpackc.low %vm1627_vm2, %vm1623_vm1 }
  0xcc   :  { %vm1629_vm4 = vcmp.ge.u32.totalorder %v1621_v8, 858993459 }
  0xcd   :  { %1377 = vmatpush1.bf16.msra.mxu0 %v2617_v9  ;;  %1549 = vmatpush1.bf16.msra.mxu1 %v2620_v10  ;;  %vm2252_vm10 = vmpackc.low %vm1629_vm4, %vm1625_vm3 }
  0xce   :  { %1378 = vmatprep.subr.bf16.mxu0 %v2625_v11  ;;  %1550 = vmatprep.subr.bf16.mxu1 %v2628_v12 }
  0xd1   :  { %1379 = vmatpush1.bf16.msra.mxu0 %v2623_v13  ;;  %1551 = vmatpush1.bf16.msra.mxu1 %v2626_v14 }
  0xd2   :  { %1391 = vmatprep.subr.bf16.mxu0 %v2631_v17  ;;  %1563 = vmatprep.subr.bf16.mxu1 %v2634_v18 }
  0xd4   :  { %1381 = vmatmul.mubr.bf16.vlgmr.msra.gmra.mrb[0].mxu0 %v57_v19  ;;  %1553 = vmatmul.mubr.bf16.vlgmr.msra.gmra.mrb[0].mxu1 %v57_v19  ;;  %v1614_v19 = vld [vmem:[%s2962_s5] sm:$0xff] }
  0xd5   :  { %1392 = vmatpush1.bf16.msra.mxu0 %v2629_v20  ;;  %1564 = vmatpush1.bf16.msra.mxu1 %v2632_v21  ;;  %v1618_v20 = vld [vmem:[%s2962_s5 + $0x20] sm:$0xff]  ;;  %vm1622_vm5 = vcmp.ge.u32.totalorder %v1614_v19, 858993459 }
  0xd6   :  { %1423 = vmatprep.mubr.bf16.mxu0 %v2718_v24  ;;  %1595 = vmatprep.mubr.bf16.mxu1 %v2718_v24  ;;  %vm1626_vm6 = vcmp.ge.u32.totalorder %v1618_v20, 858993459 }
  0xd7   :  { %2258 = vmatprep.subr.bf16.mxu0 %v2635_v22  ;;  %2280 = vmatprep.subr.bf16.mxu1 %v2636_v23  ;;  %vm2249_vm11 = vmpackc.low %vm1626_vm6, %vm1622_vm5 }
  0xe0   :  { %2211 = vmatmul.mubr.msk.bf16.vlgmr.msra.gmra.mrb[0].mxu0 %vm1258_vm0, %v59_v27  ;;  %2212 = vmatmul.mubr.msk.bf16.vlgmr.msra.gmra.mrb[0].mxu1 %vm1258_vm0, %v59_v27  ;;  %v1616_v27 = vld [vmem:[%s2962_s5 + $0x10] sm:$0xff] }
  0xe1   :  { %2259 = vmatpush3.bf16.msra.mxu0 %v2637_v28  ;;  %2281 = vmatpush3.bf16.msra.mxu1 %v2638_v29  ;;  %v1620_v28 = vld [vmem:[%s2962_s5 + $0x30] sm:$0xff]  ;;  %vm1624_vm7 = vcmp.ge.u32.totalorder %v1616_v27, 858993459 }
  0xe2   :  { %2260 = vmatprep.subr.bf16.mxu0 %v2639_v30  ;;  %2282 = vmatprep.subr.bf16.mxu1 %v2640_v31  ;;  %vm1628_vm8 = vcmp.ge.u32.totalorder %v1620_v28, 858993459 }
  0xe3   :  { %vm2255_vm12 = vmpackc.low %vm1628_vm8, %vm1624_vm7 }
  0xe5   :  { %2261 = vmatpush3.bf16.msra.mxu0 %v2641_v32  ;;  %2283 = vmatpush3.bf16.msra.mxu1 %v2642_v33 }
  0xe6   :  { %2262 = vmatprep.subr.bf16.mxu0 %v2643_v34  ;;  %2284 = vmatprep.subr.bf16.mxu1 %v2644_v35 }
  0xe9   :  { %2263 = vmatpush3.bf16.msra.mxu0 %v2645_v36  ;;  %2285 = vmatpush3.bf16.msra.mxu1 %v2646_v37 }
  0xea   :  { %2264 = vmatprep.subr.bf16.mxu0 %v2647_v38  ;;  %2286 = vmatprep.subr.bf16.mxu1 %v2648_v39 }
  0xed   :  { %2265 = vmatpush3.bf16.msra.mxu0 %v2649_v40  ;;  %2287 = vmatpush3.bf16.msra.mxu1 %v2650_v41 }
  0xee   :  { %2266 = vmatprep.subr.bf16.mxu0 %v2651_v42  ;;  %2288 = vmatprep.subr.bf16.mxu1 %v2652_v43 }
  0xf1   :  { %2267 = vmatpush3.bf16.msra.mxu0 %v2653_v44  ;;  %2289 = vmatpush3.bf16.msra.mxu1 %v2654_v45 }
  0xf2   :  { %2268 = vmatprep.subr.bf16.mxu0 %v2655_v46  ;;  %2290 = vmatprep.subr.bf16.mxu1 %v2656_v47 }
  0xf5   :  { %2269 = vmatpush3.bf16.msra.mxu0 %v2657_v48  ;;  %2291 = vmatpush3.bf16.msra.mxu1 %v2658_v49 }
  0xf6   :  { %2270 = vmatprep.subr.bf16.mxu0 %v2659_v50  ;;  %2292 = vmatprep.subr.bf16.mxu1 %v2660_v51  ;;  %v2213_v51 = vld [vmem:[%s2961_s4] ss:$0 sm:$0xff]  ;;  %s2689_s4 = scalar_lea.vmem %s2004_s17, 256 }
  0xf7   :  { %p2690_p8 = scmp.ne.s32.totalorder %s2004_s17, %s2689_s4  ;;  %p2695_p10 = scmp.lt.s32.totalorder %s2689_s4, %s2689_s4 }
  0xf9   :  { %2271 = vmatpush3.bf16.msra.mxu0 %v2661_v52  ;;  %2293 = vmatpush3.bf16.msra.mxu1 %v2662_v53  ;;  %p2696_p11 = por %p2695_p10, %p2694_p9 }
  0xfa   :  { %2272 = vmatprep.subr.bf16.mxu0 %v2663_v54  ;;  %2294 = vmatprep.subr.bf16.mxu1 %v2664_v55 }
  0xfb   :  { %p2697_p12 = pnand %p2696_p11, %p2690_p8 }
  0xfd   :  { %2273 = vmatpush3.bf16.msra.mxu0 %v2665_v56  ;;  %2295 = vmatpush3.bf16.msra.mxu1 %v2666_v57 }
 0x1b3   :  { %v1425_v9 = vpop.f32.mrb[0].mxu0  ;;  %v1597_v10 = vpop.f32.mrb[0].mxu1 }
 0x1b4   :  { %v2302_v11 = vadd.f32 %v1425_v9, %v261_v1  ;;  %v2306_v12 = vadd.f32 %v1597_v10, %v269_v2  ;;  %v1427_v13 = vpop.f32.mrb[1].mxu0  ;;  %v1599_v14 = vpop.f32.mrb[1].mxu1 }
 0x1b5   :  { %v2303_v15 = vadd.f32 %v1427_v13, %v265_v4  ;;  %v2307_v16 = vadd.f32 %v1599_v14, %v273_v5  ;;  %v1429_v17 = vpop.f32.mrb[2].mxu0  ;;  %v1601_v18 = vpop.f32.mrb[2].mxu1 }
 0x1b6   :  { %v1606_v21 = vmax.f32 %v2302_v11, 0.0  ;;  %v1608_v22 = vmax.f32 %v2306_v12, 0.0  ;;  %v2304_v23 = vadd.f32 %v1429_v17, %v261_v1  ;;  %v2308_v24 = vadd.f32 %v1601_v18, %v269_v2  ;;  %v1431_v25 = vpop.f32.mrb[3].mxu0  ;;  %v1603_v26 = vpop.f32.mrb[3].mxu1 }
 0x1b7   :  { %v1607_v29 = vmax.f32 %v2303_v15, 0.0  ;;  %v1609_v30 = vmax.f32 %v2307_v16, 0.0  ;;  %v2305_v31 = vadd.f32 %v1431_v25, %v265_v4  ;;  %v2309_v32 = vadd.f32 %v1603_v26, %v273_v5 }
 0x1b8   :  { %v1610_v33 = vmax.f32 %v2304_v23, 0.0  ;;  %v1612_v34 = vmax.f32 %v2308_v24, 0.0  ;;  %v1630_v37 = vmul.f32 1.25, %v1606_v21  ;;  %v1632_v38 = vmul.f32 1.25, %v1608_v22 }
 0x1b9   :  { %v1611_v35 = vmax.f32 %v2305_v31, 0.0  ;;  %v1613_v36 = vmax.f32 %v2309_v32, 0.0  ;;  %v1631_v41 = vmul.f32 1.25, %v1607_v29  ;;  %v1633_v42 = vmul.f32 1.25, %v1609_v30 }
 0x1ba   :  { %v1634_v39 = vmul.f32 1.25, %v1610_v33  ;;  %v1636_v40 = vmul.f32 1.25, %v1612_v34 }
 0x1bb   :  { %v1635_v43 = vmul.f32 1.25, %v1611_v35  ;;  %v1637_v44 = vmul.f32 1.25, %v1613_v36 }
 0x1bc   :  { %v2250_v45 = vpack.c.bf16 %v1634_v39, %v1630_v37  ;;  %v2256_v46 = vpack.c.bf16 %v1636_v40, %v1632_v38 }
 0x1bd   :  { %v2247_v47 = vpack.c.bf16 %v1635_v43, %v1631_v41  ;;  %v2253_v48 = vpack.c.bf16 %v1637_v44, %v1633_v42 }
 0x1bf   :  { %2248 = vmatprep.mubr.msk.bf16.mxu0 %vm2246_vm9, %v2247_v47  ;;  %2254 = vmatprep.mubr.msk.bf16.mxu1 %vm2252_vm10, %v2253_v48 }
 0x1c0   :  { %2251 = vmatmul.mubr.msk.bf16.vlgmr.msra.gmra.mrb[4].mxu0 %vm2249_vm11, %v2250_v45  ;;  %2257 = vmatmul.mubr.msk.bf16.vlgmr.msra.gmra.mrb[4].mxu1 %vm2255_vm12, %v2256_v46 }
 0x293   :  { %v2274_v49 = vpop.f32.mrb[4].mxu0  ;;  %v2296_v50 = vpop.f32.mrb[4].mxu1 }
 0x294   :  { %v2275_v52 = vpop.f32.mrb[5].mxu0  ;;  %v2297_v53 = vpop.f32.mrb[5].mxu1 }
 0x295   :  { %v2276_v54 = vadd.f32 %v2275_v52, %v2274_v49  ;;  %v2298_v55 = vadd.f32 %v2297_v53, %v2296_v50  ;;  %v2277_v56 = vpop.f32.mrb[6].mxu0  ;;  %v2299_v57 = vpop.f32.mrb[6].mxu1 }
 0x296   :  { %v2278_v58 = vpop.f32.mrb[7].mxu0  ;;  %v2300_v59 = vpop.f32.mrb[7].mxu1 }
 0x297   :  { %v1948_v60 = vadd.f32 %v2276_v54, %v2213_v51  ;;  %v2279_v61 = vadd.f32 %v2278_v58, %v2277_v56  ;;  %v2301_v62 = vadd.f32 %v2300_v59, %v2299_v57 }
 0x299   :  { %v1989_v63 = vadd.f32 %v2298_v55, %v1948_v60  ;;  %v1951_v0 = vadd.f32 %v2279_v61, %v2213_v51 }
 0x29b   :  { %1996 = vst.msk [vmem:[#allocation5] sm:$0xff] %vm1995_vm13, %v1989_v63  ;;  %v1992_v1 = vadd.f32 %v2301_v62, %v1951_v0 }
 0x29d   :  { %1997 = vst.msk [vmem:[#allocation5 + $0x8] sm:$0xff] %vm1995_vm13, %v1992_v1 }
 0x29e   :  { %2700 = shalt.err (!%p2697_p12)
}
 0x29f   :  { %s2701_s20 = scalar_lea.hbm %s2963_s6, 256 }
 0x2a0   :  { %p2702_p13 = scmp.ne.s32.totalorder %s2963_s6, %s2701_s20  ;;  %p2705_p0 = scmp.lt.u32.totalorder %s2701_s20, %s2963_s6 }
 0x2a2   :  { %p2707_p1 = pnand %p2705_p0, %p2702_p13 }
 0x2a4   :  { %2710 = shalt.err (!%p2707_p1)
}
 0x2a5   :  { %s2720_s0 = smov 128   ;;  %s2721_s25 = smov 8  }
 0x2a6   :  { %2009 = dma.vmem_to_hbm [thread:$0]  %s2004_s17, 256, %s2963_s6, [#allocation4], %s2720_s0, %s2720_s0, %s2721_s25  }
 0x2a7   :  { %2713 = dma.done.wait [#allocation4], 256  }
 0x2a8   :  { %2714 = vsyncadd [#allocation4], 4294967040 }
 0x2a9   :  { %2013 = vsyncpa [#allocation3], 1 }
 0x2aa   :  { %2014 = vsyncpa [#allocation4], 1 }

</bundles_post_ra>
